<compile_context>
chip_gen: v5e
topology: v5e:2x2
jax: 0.10.0
libtpu: 0.0.40
codegen_flags: <defaults>
</compile_context>

<pallas_src>
import jax
import jax.numpy as jnp
from jax.experimental import pallas as pl
from jax.experimental.pallas import tpu as pltpu


def _pick_th(H, W, Cin, B):
    """Rows of `x` handled per grid step.  Always an exact divisor of H."""
    # Aim for a few hundred matmul rows per block, while keeping the constant
    # interleave matmul (which scales with (th*W)^2) at roughly <= 2x the main
    # matmul flops.  MXU stays hidden under the HBM-bound DMA either way.
    target_rows = min(512, max(64, Cin))
    cap = max(1, target_rows // max(W, 1))
    th = 1
    for cand in range(1, H + 1):
        if H % cand == 0 and cand <= cap:
            th = cand
    if B == 1 and th == H and H > 1:
        # Guarantee >= 2 blocks on a "parallel" grid axis (v7x megacore).
        th = max(d for d in range(1, H) if H % d == 0)
    return th


def _up_concat_kernel(x_ref, skip_ref, w_ref, b_ref, de_ref, do_ref, o_ref):
    """One (batch, row-tile) step of the fused deconv + pixel-shuffle + concat."""
    _, th, W, Cin = x_ref.shape
    C4 = w_ref.shape[1]
    Cout = C4 // 4
    Cskip = skip_ref.shape[4]

    # ---- fused channel concat: skip tile goes to out[..., :Cskip] -------------
    o_ref[0, :, :, :, :Cskip] = skip_ref[0].astype(o_ref.dtype)

    # ---- deconv as one matmul against the VMEM-resident (Cin, 4*Cout) weight --
    # In-kernel bf16 cast of the f32 activations (no extra XLA pass over x).
    x = x_ref[0].astype(jnp.bfloat16).reshape(th * W, Cin)
    y = jnp.dot(x, w_ref[...], preferred_element_type=jnp.float32) + b_ref[...]
    # y columns are ordered (ky, kx, co) -- keep consistent with the wrapper!

    # ---- 2x2 pixel shuffle fused into the store --------------------------------
    # Output block is (th, 2, 2W, Ctot): the ky tap selects dim 1 (pure
    # addressing).  The kx interleave along the 2W axis is done by multiplying
    # with constant 0/1 placement matrices (de/do), so stores stay dense and
    # lane-aligned.
    for ky in range(2):
        a = y[:, (2 * ky) * Cout:(2 * ky + 1) * Cout].astype(jnp.bfloat16)  # kx=0
        c = y[:, (2 * ky + 1) * Cout:(2 * ky + 2) * Cout].astype(jnp.bfloat16)  # kx=1
        v = (jnp.dot(de_ref[...], a, preferred_element_type=jnp.float32)
             + jnp.dot(do_ref[...], c, preferred_element_type=jnp.float32))
        o_ref[0, :, ky, :, Cskip:] = v.reshape(th, 2 * W, Cout).astype(o_ref.dtype)


def up_concat(x_nhwc, skip_nhwc, w, b, *, out_dtype=None):
    """UpConcat.forward.

    x_nhwc:    (B, H, W, Cin)        -- `inputs`
    skip_nhwc: (B, 2H, 2W, Cskip)    -- `down_outputs`
    w:         (Cin, Cout, 2, 2)     -- PyTorch ConvTranspose2d weight layout
    b:         (Cout,)
    returns    (B, 2H, 2W, Cskip + Cout)
    """
    B, H, W, Cin = x_nhwc.shape
    Bs, H2, W2, Cskip = skip_nhwc.shape
    assert (Bs, H2, W2) == (B, 2 * H, 2 * W), (x_nhwc.shape, skip_nhwc.shape)
    assert w.shape[0] == Cin and w.shape[2:] == (2, 2), w.shape
    Cout = w.shape[1]
    Ctot = Cskip + Cout
    if out_dtype is None:
        out_dtype = x_nhwc.dtype

    # (Cin, Cout, ky, kx) -> (Cin, ky, kx, Cout) -> (Cin, 4*Cout): column index is
    # (ky*2 + kx)*Cout + co; the bias is tiled 4x to match.  (Tiny weight -> the
    # external bf16 cast here is cheap; activations are cast in-kernel.)
    wf = jnp.transpose(w, (0, 2, 3, 1)).reshape(Cin, 4 * Cout).astype(jnp.bfloat16)
    bias4 = jnp.tile(b.astype(jnp.float32), 4).reshape(1, 4 * Cout)

    th = _pick_th(H, W, Cin, B)
    grid = (B, H // th)
    rows = th * W            # matmul rows per block
    rows2 = th * 2 * W       # interleaved output rows per (block, ky)

    # Constant 0/1 placement matrices for the kx interleave:
    #   output row r = h*2W + (2w + kx)   <--   y row s = h*W + w
    # (Pure function of static shapes -> constant-folded by XLA.)
    r = jnp.arange(rows2)
    s = jnp.arange(rows)
    src = (r // (2 * W)) * W + (r % (2 * W)) // 2
    hit = s[None, :] == src[:, None]
    d_even = jnp.where(hit & (r[:, None] % 2 == 0), 1.0, 0.0).astype(jnp.bfloat16)
    d_odd = jnp.where(hit & (r[:, None] % 2 == 1), 1.0, 0.0).astype(jnp.bfloat16)

    # (B, 2H, 2W, Cskip) viewed as (B, H, 2, 2W, Cskip): free bitcast (leading
    # dim split; trailing two dims untouched).
    skip6 = skip_nhwc.reshape(B, H, 2, 2 * W, Cskip)

    out6 = pl.pallas_call(
        _up_concat_kernel,
        out_shape=jax.ShapeDtypeStruct((B, H, 2, 2 * W, Ctot), out_dtype),
        grid_spec=pltpu.PrefetchScalarGridSpec(
            num_scalar_prefetch=0,
            grid=grid,
            in_specs=[
                pl.BlockSpec((1, th, W, Cin), lambda bi, hi: (bi, hi, 0, 0)),
                pl.BlockSpec((1, th, 2, 2 * W, Cskip),
                             lambda bi, hi: (bi, hi, 0, 0, 0)),
                # Weight / bias / interleave matrices: same block every step ->
                # VMEM-resident, fetched once.
                pl.BlockSpec((Cin, 4 * Cout), lambda bi, hi: (0, 0)),
                pl.BlockSpec((1, 4 * Cout), lambda bi, hi: (0, 0)),
                pl.BlockSpec((rows2, rows), lambda bi, hi: (0, 0)),
                pl.BlockSpec((rows2, rows), lambda bi, hi: (0, 0)),
            ],
            out_specs=pl.BlockSpec((1, th, 2, 2 * W, Ctot),
                                   lambda bi, hi: (bi, hi, 0, 0, 0)),
        ),
        compiler_params=pltpu.CompilerParams(
            dimension_semantics=("parallel", "parallel"),
            vmem_limit_bytes=48 * 1024 * 1024),
    )(x_nhwc, skip6, wf, bias4, d_even, d_odd)

    # (B, H, 2, 2W, Ctot) -> (B, 2H, 2W, Ctot): free bitcast (leading dims merge).
    return out6.reshape(B, 2 * H, 2 * W, Ctot)


def up_concat_reference(x_nhwc, skip_nhwc, w, b):
    """Pure-JAX f32 reference (independent of the Pallas path)."""
    B, H, W, Cin = x_nhwc.shape
    Cout = w.shape[1]
    y = jnp.einsum('bhwi,ioyx->bhywxo', x_nhwc, w,
                   precision=jax.lax.Precision.HIGHEST)
    y = y.reshape(B, 2 * H, 2 * W, Cout) + b
    return jnp.concatenate([skip_nhwc, y], axis=-1)


if __name__ == "__main__":
    key = jax.random.PRNGKey(0)
    B, H, W = 2, 16, 16
    in_feat, out_feat, skip_feat = 256, 128, 128

    k1, k2, k3, k4 = jax.random.split(key, 4)
    # PyTorch-convention NCHW tensors; NHWC inside the implementation.
    x_nchw = jax.random.normal(k1, (B, in_feat, H, W), jnp.float32)
    skip_nchw = jax.random.normal(k2, (B, skip_feat, 2 * H, 2 * W), jnp.float32)
    w = (1.0 / jnp.sqrt(jnp.float32(in_feat * 4))) * jax.random.normal(
        k3, (in_feat, out_feat, 2, 2), jnp.float32)
    bias = 0.1 * jax.random.normal(k4, (out_feat,), jnp.float32)

    to_nhwc = lambda t: jnp.transpose(t, (0, 2, 3, 1))
    x = to_nhwc(x_nchw)
    skip = to_nhwc(skip_nchw)

    fwd = jax.jit(up_concat)
    out = jax.block_until_ready(fwd(x, skip, w, bias))
    assert out.shape == (B, 2 * H, 2 * W, skip_feat + out_feat), out.shape

    ref = up_concat_reference(x, skip, w, bias)
    rel_err = float(jnp.max(jnp.abs(out - ref)) / (jnp.max(jnp.abs(ref)) + 1e-6))
    assert rel_err < 5e-2, rel_err            # bf16-MXU vs f32 reference
    assert bool(jnp.all(jnp.isfinite(out)))

    out_nchw = jnp.transpose(out, (0, 3, 1, 2))   # back to PyTorch layout
    assert out_nchw.shape == (B, skip_feat + out_feat, 2 * H, 2 * W), out_nchw.shape
    print("KERNEL_OK")
</pallas_src>

<mosaic_0001>
module attributes {stable_mosaic.version = 11 : i64} {
  func.func @_up_concat_kernel(%arg0: i32, %arg1: i32, %arg2: memref<1x16x16x256xf32, #tpu.memory_space<vmem>>, %arg3: memref<1x16x2x32x128xf32, #tpu.memory_space<vmem>>, %arg4: memref<256x512xbf16, #tpu.memory_space<vmem>>, %arg5: memref<1x512xf32, #tpu.memory_space<vmem>>, %arg6: memref<512x256xbf16, #tpu.memory_space<vmem>>, %arg7: memref<512x256xbf16, #tpu.memory_space<vmem>>, %arg8: memref<1x16x2x32x256xf32, #tpu.memory_space<vmem>>) attributes {dimension_semantics = [#tpu.dimension_semantics<parallel>, #tpu.dimension_semantics<parallel>], iteration_bounds = array<i64: 2, 1>, scalar_prefetch = 0 : i64, scratch_operands = 0 : i64, tpu.core_type = #tpu.core_type<tc>, window_params = [{transform_indices = @transform_0, window_bounds = array<i64: 1, 16, 16, 256>}, {transform_indices = @transform_1, window_bounds = array<i64: 1, 16, 2, 32, 128>}, {pipeline_mode = #tpu.pipeline_mode<synchronous>, transform_indices = @transform_2, window_bounds = array<i64: 256, 512>}, {pipeline_mode = #tpu.pipeline_mode<synchronous>, transform_indices = @transform_3, window_bounds = array<i64: 1, 512>}, {pipeline_mode = #tpu.pipeline_mode<synchronous>, transform_indices = @transform_4, window_bounds = array<i64: 512, 256>}, {pipeline_mode = #tpu.pipeline_mode<synchronous>, transform_indices = @transform_5, window_bounds = array<i64: 512, 256>}, {transform_indices = @transform_6, window_bounds = array<i64: 1, 16, 2, 32, 256>}]} {
    %c0 = arith.constant 0 : index
    %c0_0 = arith.constant 0 : index
    %c0_1 = arith.constant 0 : index
    %c0_2 = arith.constant 0 : index
    %c0_3 = arith.constant 0 : index
    %0 = vector.load %arg3[%c0, %c0_0, %c0_1, %c0_2, %c0_3] : memref<1x16x2x32x128xf32, #tpu.memory_space<vmem>>, vector<1x16x2x32x128xf32>
    %1 = vector.shape_cast %0 : vector<1x16x2x32x128xf32> to vector<16x2x32x128xf32>
    %c0_4 = arith.constant 0 : index
    %c0_5 = arith.constant 0 : index
    %c0_6 = arith.constant 0 : index
    %c0_7 = arith.constant 0 : index
    %c0_8 = arith.constant 0 : index
    %2 = vector.load %arg8[%c0_4, %c0_5, %c0_6, %c0_7, %c0_8] : memref<1x16x2x32x256xf32, #tpu.memory_space<vmem>>, vector<1x16x2x32x128xf32>
    %3 = vector.shape_cast %2 : vector<1x16x2x32x128xf32> to vector<16x2x32x128xf32>
    %4 = vector.shape_cast %1 : vector<16x2x32x128xf32> to vector<1x16x2x32x128xf32>
    tpu.vector_store %arg8[%c0_4, %c0_5, %c0_6, %c0_7, %c0_8], %4 {strides = array<i32>} : memref<1x16x2x32x256xf32, #tpu.memory_space<vmem>>, vector<1x16x2x32x128xf32>,
    %c0_9 = arith.constant 0 : index
    %c0_10 = arith.constant 0 : index
    %c0_11 = arith.constant 0 : index
    %c0_12 = arith.constant 0 : index
    %5 = vector.load %arg2[%c0_9, %c0_10, %c0_11, %c0_12] : memref<1x16x16x256xf32, #tpu.memory_space<vmem>>, vector<1x16x16x256xf32>
    %6 = vector.shape_cast %5 : vector<1x16x16x256xf32> to vector<16x16x256xf32>
    %7 = arith.truncf %6 : vector<16x16x256xf32> to vector<16x16x256xbf16>
    %8 = vector.shape_cast %7 : vector<16x16x256xbf16> to vector<256x256xbf16>
    %c0_13 = arith.constant 0 : index
    %c0_14 = arith.constant 0 : index
    %9 = vector.load %arg4[%c0_13, %c0_14] : memref<256x512xbf16, #tpu.memory_space<vmem>>, vector<256x512xbf16>
    %cst = arith.constant dense<0.000000e+00> : vector<256x512xf32>
    %10 = tpu.matmul %8, %9, %cst {dimension_numbers = #tpu.dot_dimension_numbers<[1], [0], [0], [1], [0, 0, 1, 1], [], []>} : vector<256x256xbf16>, vector<256x512xbf16>, vector<256x512xf32> -> vector<256x512xf32>
    %c0_15 = arith.constant 0 : index
    %c0_16 = arith.constant 0 : index
    %11 = vector.load %arg5[%c0_15, %c0_16] : memref<1x512xf32, #tpu.memory_space<vmem>>, vector<1x512xf32>
    %12 = vector.broadcast %11 : vector<1x512xf32> to vector<256x512xf32>
    %13 = arith.addf %10, %12 : vector<256x512xf32>
    %14 = vector.extract_strided_slice %13 {offsets = [0, 0], sizes = [256, 128], strides = [1, 1]} : vector<256x512xf32> to vector<256x128xf32>
    %15 = arith.truncf %14 : vector<256x128xf32> to vector<256x128xbf16>
    %16 = vector.extract_strided_slice %13 {offsets = [0, 128], sizes = [256, 128], strides = [1, 1]} : vector<256x512xf32> to vector<256x128xf32>
    %17 = arith.truncf %16 : vector<256x128xf32> to vector<256x128xbf16>
    %c0_17 = arith.constant 0 : index
    %c0_18 = arith.constant 0 : index
    %18 = vector.load %arg6[%c0_17, %c0_18] : memref<512x256xbf16, #tpu.memory_space<vmem>>, vector<512x256xbf16>
    %cst_19 = arith.constant dense<0.000000e+00> : vector<512x128xf32>
    %19 = tpu.matmul %18, %15, %cst_19 {dimension_numbers = #tpu.dot_dimension_numbers<[1], [0], [0], [1], [0, 0, 1, 1], [], []>} : vector<512x256xbf16>, vector<256x128xbf16>, vector<512x128xf32> -> vector<512x128xf32>
    %c0_20 = arith.constant 0 : index
    %c0_21 = arith.constant 0 : index
    %20 = vector.load %arg7[%c0_20, %c0_21] : memref<512x256xbf16, #tpu.memory_space<vmem>>, vector<512x256xbf16>
    %cst_22 = arith.constant dense<0.000000e+00> : vector<512x128xf32>
    %21 = tpu.matmul %20, %17, %cst_22 {dimension_numbers = #tpu.dot_dimension_numbers<[1], [0], [0], [1], [0, 0, 1, 1], [], []>} : vector<512x256xbf16>, vector<256x128xbf16>, vector<512x128xf32> -> vector<512x128xf32>
    %22 = arith.addf %19, %21 : vector<512x128xf32>
    %23 = vector.shape_cast %22 : vector<512x128xf32> to vector<16x32x128xf32>
    %c0_23 = arith.constant 0 : index
    %c0_24 = arith.constant 0 : index
    %c0_25 = arith.constant 0 : index
    %c0_26 = arith.constant 0 : index
    %c128 = arith.constant 128 : index
    %24 = vector.load %arg8[%c0_23, %c0_24, %c0_25, %c0_26, %c128] : memref<1x16x2x32x256xf32, #tpu.memory_space<vmem>>, vector<1x16x1x32x128xf32>
    %25 = vector.shape_cast %24 : vector<1x16x1x32x128xf32> to vector<16x32x128xf32>
    %26 = vector.shape_cast %23 : vector<16x32x128xf32> to vector<1x16x1x32x128xf32>
    tpu.vector_store %arg8[%c0_23, %c0_24, %c0_25, %c0_26, %c128], %26 {strides = array<i32>} : memref<1x16x2x32x256xf32, #tpu.memory_space<vmem>>, vector<1x16x1x32x128xf32>,
    %27 = vector.extract_strided_slice %13 {offsets = [0, 256], sizes = [256, 128], strides = [1, 1]} : vector<256x512xf32> to vector<256x128xf32>
    %28 = arith.truncf %27 : vector<256x128xf32> to vector<256x128xbf16>
    %29 = vector.extract_strided_slice %13 {offsets = [0, 384], sizes = [256, 128], strides = [1, 1]} : vector<256x512xf32> to vector<256x128xf32>
    %30 = arith.truncf %29 : vector<256x128xf32> to vector<256x128xbf16>
    %c0_27 = arith.constant 0 : index
    %c0_28 = arith.constant 0 : index
    %31 = vector.load %arg6[%c0_27, %c0_28] : memref<512x256xbf16, #tpu.memory_space<vmem>>, vector<512x256xbf16>
    %cst_29 = arith.constant dense<0.000000e+00> : vector<512x128xf32>
    %32 = tpu.matmul %31, %28, %cst_29 {dimension_numbers = #tpu.dot_dimension_numbers<[1], [0], [0], [1], [0, 0, 1, 1], [], []>} : vector<512x256xbf16>, vector<256x128xbf16>, vector<512x128xf32> -> vector<512x128xf32>
    %c0_30 = arith.constant 0 : index
    %c0_31 = arith.constant 0 : index
    %33 = vector.load %arg7[%c0_30, %c0_31] : memref<512x256xbf16, #tpu.memory_space<vmem>>, vector<512x256xbf16>
    %cst_32 = arith.constant dense<0.000000e+00> : vector<512x128xf32>
    %34 = tpu.matmul %33, %30, %cst_32 {dimension_numbers = #tpu.dot_dimension_numbers<[1], [0], [0], [1], [0, 0, 1, 1], [], []>} : vector<512x256xbf16>, vector<256x128xbf16>, vector<512x128xf32> -> vector<512x128xf32>
    %35 = arith.addf %32, %34 : vector<512x128xf32>
    %36 = vector.shape_cast %35 : vector<512x128xf32> to vector<16x32x128xf32>
    %c0_33 = arith.constant 0 : index
    %c0_34 = arith.constant 0 : index
    %c1 = arith.constant 1 : index
    %c0_35 = arith.constant 0 : index
    %c128_36 = arith.constant 128 : index
    %37 = vector.load %arg8[%c0_33, %c0_34, %c1, %c0_35, %c128_36] : memref<1x16x2x32x256xf32, #tpu.memory_space<vmem>>, vector<1x16x1x32x128xf32>
    %38 = vector.shape_cast %37 : vector<1x16x1x32x128xf32> to vector<16x32x128xf32>
    %39 = vector.shape_cast %36 : vector<16x32x128xf32> to vector<1x16x1x32x128xf32>
    tpu.vector_store %arg8[%c0_33, %c0_34, %c1, %c0_35, %c128_36], %39 {strides = array<i32>} : memref<1x16x2x32x256xf32, #tpu.memory_space<vmem>>, vector<1x16x1x32x128xf32>,
    return
  }
  func.func @transform_0(%arg0: i32, %arg1: i32) -> (i32, i32, i32, i32) {
    %c0_i32 = arith.constant 0 : i32
    %c0_i32_0 = arith.constant 0 : i32
    %c0_i32_1 = arith.constant 0 : i32
    return %arg0, %arg1, %c0_i32, %c0_i32_0 : i32, i32, i32, i32
  }
  func.func @transform_1(%arg0: i32, %arg1: i32) -> (i32, i32, i32, i32, i32) {
    %c0_i32 = arith.constant 0 : i32
    %c0_i32_0 = arith.constant 0 : i32
    %c0_i32_1 = arith.constant 0 : i32
    %c0_i32_2 = arith.constant 0 : i32
    return %arg0, %arg1, %c0_i32, %c0_i32_0, %c0_i32_1 : i32, i32, i32, i32, i32
  }
  func.func @transform_2(%arg0: i32, %arg1: i32) -> (i32, i32) {
    %c0_i32 = arith.constant 0 : i32
    %c0_i32_0 = arith.constant 0 : i32
    %c0_i32_1 = arith.constant 0 : i32
    return %c0_i32, %c0_i32_0 : i32, i32
  }
  func.func @transform_3(%arg0: i32, %arg1: i32) -> (i32, i32) {
    %c0_i32 = arith.constant 0 : i32
    %c0_i32_0 = arith.constant 0 : i32
    %c0_i32_1 = arith.constant 0 : i32
    return %c0_i32, %c0_i32_0 : i32, i32
  }
  func.func @transform_4(%arg0: i32, %arg1: i32) -> (i32, i32) {
    %c0_i32 = arith.constant 0 : i32
    %c0_i32_0 = arith.constant 0 : i32
    %c0_i32_1 = arith.constant 0 : i32
    return %c0_i32, %c0_i32_0 : i32, i32
  }
  func.func @transform_5(%arg0: i32, %arg1: i32) -> (i32, i32) {
    %c0_i32 = arith.constant 0 : i32
    %c0_i32_0 = arith.constant 0 : i32
    %c0_i32_1 = arith.constant 0 : i32
    return %c0_i32, %c0_i32_0 : i32, i32
  }
  func.func @transform_6(%arg0: i32, %arg1: i32) -> (i32, i32, i32, i32, i32) {
    %c0_i32 = arith.constant 0 : i32
    %c0_i32_0 = arith.constant 0 : i32
    %c0_i32_1 = arith.constant 0 : i32
    %c0_i32_2 = arith.constant 0 : i32
    return %arg0, %arg1, %c0_i32, %c0_i32_0, %c0_i32_1 : i32, i32, i32, i32, i32
  }
}

</mosaic_0001>

<bundles_post_ra>
// kernel: tile.8
= control target key start
LH: loop header
LB: loop body
LE: loop exit
PB: predicated region body
PF: predicated region fallthrough
CT: control target
= control target key end

     0   :  { %2 = vsyncpa [#allocation1], 0  ;;  %s48_s8 = smov [#allocation0]   ;;  %s65_s0 = inlined_call_operand.hbm [shape: f32[128], index: 0, kind: input, shape index: {}]   ;;  %s66_s1 = inlined_call_operand.vmem [shape: f32[4,128], index: 1, kind: output, shape index: {}]  }
   0x1   :  { %s8_s0 = sshll.u32 %s65_s0, 4  ;;  %s10_s9 = sshll.u32 %s48_s8, 4  ;;  %s9_s0 = int_to_ptr.hbm [resolvable:$true] %s8_s0  ;;  %s11_s9 = int_to_ptr.vmem [resolvable:$true] %s10_s9 }
   0x2   :  { %13 = dma.hbm_to_vmem [thread:$0]  %s9_s0, 16, %s11_s9, [#allocation1]  }
   0x3   :  { %46 = dma.done.wait [#allocation1], 16  }
   0x4   :  { %47 = vsyncadd [#allocation1], 4294967280  ;;  %v18_v0 = vld [vmem:[#allocation0] ss:$0 sm:$0xff] }
   0x5   :  { %19 = vst [vmem:[%s66_s1] sm:$0xf] %v18_v0 }
   0x6   :  { %20 = vsyncpa [#allocation1], 1 }

// kernel: up_concat.1
= control target key start
LH: loop header
LB: loop body
LE: loop exit
PB: predicated region body
PF: predicated region fallthrough
CT: control target
= control target key end

     0   :  { %s10404_s0 = inlined_call_operand.hbm [shape: f32[2,16,16,256], index: 0, kind: input, shape index: {}]   ;;  %s10405_s1 = inlined_call_operand.hbm [shape: f32[2,16,2,32,128], index: 1, kind: input, shape index: {}]   ;;  %s10406_s2 = inlined_call_operand.vmem [shape: bf16[256,512], index: 2, kind: input, shape index: {}]   ;;  %s10407_s3 = inlined_call_operand.vmem [shape: f32[1,512], index: 3, kind: input, shape index: {}]   ;;  %s10408_s4 = inlined_call_operand.vmem [shape: bf16[512,256], index: 4, kind: input, shape index: {}]   ;;  %s10409_s5 = inlined_call_operand.vmem [shape: bf16[512,256], index: 5, kind: input, shape index: {}]   ;;  %s10410_s6 = inlined_call_operand.hbm [shape: f32[2,16,2,32,256], index: 6, kind: output, shape index: {}]  }
   0x1   :  { %10467 = sst [smem:[#allocation41_spill]] %s10404_s0 }
   0x2   :  { %11 = vsyncpa [#allocation3], 0 }
   0x3   :  { %13 = vsyncpa [#allocation3 + $0x1], 0 }
   0x4   :  { %14 = vsyncpa [#allocation6], 0 }
   0x5   :  { %16 = vsyncpa [#allocation6 + $0x1], 0 }
   0x6   :  { %17 = vsyncpa [#allocation4], 0 }
   0x7   :  { %19 = vsyncpa [#allocation4 + $0x1], 0  ;;  %s7121_s21 = smov 0   ;;  %s7123_s22 = smov 0  }
   0x8   :  { %s7125_s23 = smov 0   ;;  %s7127_s24 = smov 0  }
   0x9   :  { %s7129_s25 = smov 0   ;;  %s7131_s26 = smov 0  }
   0xa LB: > { %10468 = sst [smem:[#allocation11_spill]] %s7066_s23  ;;  %s5172_s27 = sadd.s32 4294967295, %s7078_s26   ;;  %s7078_s26 = sphi %s7131_s26, %s25_s26   ;;  %s7074_s25 = sphi %s7129_s25, %s10566_s25   ;;  %s7070_s24 = sphi %s7127_s24, %s10565_s24   ;;  %s7066_s23 = sphi %s7125_s23, %s10561_s23   ;;  %s7062_s22 = sphi %s7123_s22, %s10564_s22   ;;  %s7058_s21 = sphi %s7121_s21, %s10563_s21  }
   0xb   : > { %s5173_s28 = sadd.s32 4294967294, %s7078_s26   ;;  %s37_s29 = sadd.s32 1, %s7074_s25 }
   0xc   : > { %s46_s30 = sadd.s32 1, %s7066_s23  ;;  %p39_p0 = scmp.ge.s32.totalorder %s37_s29, 2 }
   0xd   : > { %p53_p1 = scmp.ne.s32.totalorder %s7066_s23, %s7062_s22  ;;  %p54_p2 = scmp.eq.s32.totalorder %s7078_s26, 0 }
   0xe   : > { %p59_p3 = scmp.ne.s32.totalorder %s7062_s22, %s7058_s21  ;;  %s10568_s29 = smov (%p39_p0, %s37_s29), 0 }
   0xf   : > { %10469 = sst [smem:[#allocation12_spill]] %s10568_s29  ;;  %p7162_p4 = por %p54_p2, %p53_p1 }
  0x10   : > { %p60_p5 = scmp.eq.s32.totalorder %s5172_s27, 0  ;;  %s41_s8 = ssub.s32 %s7074_s25, %s10568_s29 }
  0x11   : > { %p197_p6 = scmp.eq.s32.totalorder %s5172_s27, 1  ;;  %p44_p7 = scmp.eq.s32.totalorder %s41_s8, 0 }
  0x12   : > { %p7168_p8 = por %p60_p5, %p59_p3  ;;  %p203_p10 = scmp.eq.s32.totalorder %s5173_s28, 1 }
  0x13   : > { %p7172_p9 = por %p197_p6, %p53_p1  ;;  %p5175_p12 = scmp.ge.s32.totalorder %s7078_s26, 2 }
  0x14   : > { %s7177_s11 = scalar_select %p44_p7, %s7066_s23, %s46_s30  }
  0x15   : > { %p7179_p11 = por %p203_p10, %p59_p3  ;;  %p6875_p13 = scmp.lt.s32.totalorder %s7078_s26, 2 }
  0x16   : > { %10473 = sst [smem:[#allocation13_spill]] %s7177_s11  ;;  %s7186_s13 = sand.u32 1, %s7066_s23  }
  0x17   : > { %s10474_s12 = scalar_select %p7179_p11, 1, 0 }
  0x18   : > { %s5176_s14 = sshll.u32 %s7186_s13, 9  ;;  %s6535_s15 = sshll.u32 %s7074_s25, 9 }
  0x19   : > { %10475 = sst [smem:[#allocation14_spill]] %s10474_s12  ;;  %s239_s19 = scalar_lea.vmem [#allocation2], %s5176_s14 }
  0x1a   : > { %s10476_s0 = sld [smem:[#allocation41_spill]]  ;;  %s250_s20 = sshll.u32 %s239_s19, 4  ;;  %s251_s20 = int_to_ptr.vmem [resolvable:$true] %s250_s20 }
  0x1b   : > { %p7195_p0 = pnand %p6875_p13, %p7162_p4  ;;  %p5182_p1 = scmp.ge.s32.totalorder %s7078_s26, 1 }
  0x1c   : > { %s236_s30 = scalar_lea.sflag [#allocation3], %s7186_s13  ;;  %s7080_s8 = smov 256  }
  0x1d   : > { %s7081_s29 = smov 16   ;;  %p283_p2 = scmp.lt.s32.totalorder %s7078_s26, 3 }
  0x1e   : > { %s5179_s14 = sshll.u32 %s7186_s13, 10  ;;  %s261_s11 = scalar_lea.sflag [#allocation6], %s7186_s13 }
  0x1f   : > { %p284_p3 = pnand %p5182_p1, %p283_p2  ;;  %s7082_s23 = smov 128  }
  0x20   : > { %s247_s18 = scalar_lea.hbm %s10476_s0, %s6535_s15  ;;  %s6536_s15 = sshll.u32 %s7074_s25, 10 }
  0x21   : > { %s248_s27 = sshll.u32 %s247_s18, 4  ;;  %s272_s7 = scalar_lea.hbm %s10405_s1, %s6536_s15  ;;  %s249_s27 = int_to_ptr.hbm [resolvable:$true] %s248_s27 }
  0x22   : > { %6867 = dma.hbm_to_vmem [thread:$0]  (!%p7195_p0), %s249_s27, 8192, %s251_s20, %s236_s30, %s7080_s8, %s7080_s8, %s7081_s29  }
  0x23   : > { %s264_s18 = scalar_lea.vmem [#allocation5], %s5179_s14  ;;  %s273_s0 = sshll.u32 %s272_s7, 4  ;;  %s274_s0 = int_to_ptr.hbm [resolvable:$true] %s273_s0 }
  0x24   : > { %s275_s19 = sshll.u32 %s264_s18, 4  ;;  %s7083_s12 = smov 8   ;;  %s276_s19 = int_to_ptr.vmem [resolvable:$true] %s275_s19 }
  0x25   : > { %6870 = dma.hbm_to_vmem [thread:$0]  (!%p7195_p0), %s274_s0, 16384, %s276_s19, %s261_s11, %s7082_s23, %s7082_s23, %s7083_s12  }
  0x26   : > { %287 = sbr.rel (%p284_p3) target bundleno = 1795 (0x703), region = 44 }
  0x2b   : > { %s7213_s29 = sand.u32 1, %s7062_s22  }
  0x2c   : > { %s5183_s20 = sshll.u32 %s7213_s29, 9  ;;  %s290_s27 = scalar_lea.sflag [#allocation3], %s7213_s29 }
  0x2d   : > { %s7217_s30 = scalar_lea.vmem [#allocation2], %s5183_s20 }
  0x2e   : > { %7045 = dma.done.wait (%p7168_p8), %s290_s27, 8192  }
  0x2f   : > { %7047 = vsyncadd (%p7168_p8), %s290_s27, 4294959104  ;;  %s5184_s0 = sshll.u32 %s7213_s29, 10  ;;  %s300_s23 = scalar_lea.sflag [#allocation6], %s7213_s29 }
  0x30   : > { %s7225_s11 = scalar_lea.vmem [#allocation5], %s5184_s0 }
  0x31   : > { %7049 = dma.done.wait (%p7168_p8), %s300_s23, 16384  }
  0x32   : > { %7051 = vsyncadd (%p7168_p8), %s300_s23, 4294950912  ;;  %v5300_v0 = vld [vmem:[%s10406_s2 + $0xe0] sm:$0xf]  ;;  %v6567_v1 = vld [vmem:[%s10406_s2 + $0xec] sm:$0xf0]  ;;  %s5185_s19 = sshll.u32 %s7213_s29, 11 }
  0x33   : > { %v5428_v2 = vld [vmem:[%s10406_s2 + $0x1e0] sm:$0xf]  ;;  %v5301_v3 = vor.u32 %v6567_v1, %v5300_v0  ;;  %v6599_v4 = vld [vmem:[%s10406_s2 + $0x1ec] sm:$0xf0]  ;;  %v6565_v5 = vld [vmem:[%s10406_s2 + $0xe4] sm:$0xf] }
  0x34   : > { %v5302_v6 = vld [vmem:[%s10406_s2 + $0xf0] sm:$0xf0]  ;;  %v5429_v7 = vor.u32 %v6599_v4, %v5428_v2  ;;  %v6597_v9 = vld [vmem:[%s10406_s2 + $0x1e4] sm:$0xf]  ;;  %v5284_v11 = vld [vmem:[%s10406_s2 + $0xc0] sm:$0xf] }
  0x35   : > { %v5305_v8 = vor.u32 %v6565_v5, %v5302_v6  ;;  %v5430_v10 = vld [vmem:[%s10406_s2 + $0x1f0] sm:$0xf0]  ;;  %1247 = vmatpush.bf16.msra.mxu0 %v5301_v3  ;;  %v6563_v13 = vld [vmem:[%s10406_s2 + $0xcc] sm:$0xf0]  ;;  %v5412_v14 = vld [vmem:[%s10406_s2 + $0x1c0] sm:$0xf] }
  0x36   : > { %v5433_v12 = vor.u32 %v6597_v9, %v5430_v10  ;;  %v6595_v15 = vld [vmem:[%s10406_s2 + $0x1cc] sm:$0xf0]  ;;  %1336 = vmatpush.bf16.msra.mxu1 %v5429_v7  ;;  %v5285_v16 = vor.u32 %v6563_v13, %v5284_v11  ;;  %v6561_v18 = vld [vmem:[%s10406_s2 + $0xc4] sm:$0xf]  ;;  %v5286_v19 = vld [vmem:[%s10406_s2 + $0xd0] sm:$0xf0] }
  0x37   : > { %1425 = vmatpush.bf16.msra.mxu2 %v5305_v8  ;;  %v5413_v17 = vor.u32 %v6595_v15, %v5412_v14  ;;  %v6593_v20 = vld [vmem:[%s10406_s2 + $0x1c4] sm:$0xf]  ;;  %v5289_v21 = vor.u32 %v6561_v18, %v5286_v19  ;;  %v5414_v22 = vld [vmem:[%s10406_s2 + $0x1d0] sm:$0xf0]  ;;  %v5268_v23 = vld [vmem:[%s10406_s2 + $0xa0] sm:$0xf] }
  0x38   : > { %1514 = vmatpush.bf16.msra.mxu3 %v5433_v12  ;;  %v6559_v24 = vld [vmem:[%s10406_s2 + $0xac] sm:$0xf0]  ;;  %v5417_v25 = vor.u32 %v6593_v20, %v5414_v22  ;;  %v5396_v26 = vld [vmem:[%s10406_s2 + $0x1a0] sm:$0xf]  ;;  %v6557_v28 = vld [vmem:[%s10406_s2 + $0xa4] sm:$0xf] }
  0x39   : > { %v6591_v27 = vld [vmem:[%s10406_s2 + $0x1ac] sm:$0xf0]  ;;  %1248 = vmatpush.bf16.msra.mxu0 %v5285_v16  ;;  %v5269_v29 = vor.u32 %v6559_v24, %v5268_v23  ;;  %v5270_v30 = vld [vmem:[%s10406_s2 + $0xb0] sm:$0xf0]  ;;  %v6589_v31 = vld [vmem:[%s10406_s2 + $0x1a4] sm:$0xf] }
  0x3a   : > { %v5398_v32 = vld [vmem:[%s10406_s2 + $0x1b0] sm:$0xf0]  ;;  %1337 = vmatpush.bf16.msra.mxu1 %v5413_v17  ;;  %v5397_v33 = vor.u32 %v6591_v27, %v5396_v26  ;;  %v5273_v34 = vor.u32 %v6557_v28, %v5270_v30  ;;  %v5252_v35 = vld [vmem:[%s10406_s2 + $0x80] sm:$0xf]  ;;  %v6555_v36 = vld [vmem:[%s10406_s2 + $0x8c] sm:$0xf0] }
  0x3b   : > { %1426 = vmatpush.bf16.msra.mxu2 %v5289_v21  ;;  %v5380_v37 = vld [vmem:[%s10406_s2 + $0x180] sm:$0xf]  ;;  %v5401_v38 = vor.u32 %v6589_v31, %v5398_v32  ;;  %v6587_v39 = vld [vmem:[%s10406_s2 + $0x18c] sm:$0xf0]  ;;  %v6553_v40 = vld [vmem:[%s10406_s2 + $0x84] sm:$0xf]  ;;  %v5253_v44 = vor.u32 %v6555_v36, %v5252_v35 }
  0x3c   : > { %1515 = vmatpush.bf16.msra.mxu3 %v5417_v25  ;;  %v5254_v41 = vld [vmem:[%s10406_s2 + $0x90] sm:$0xf0]  ;;  %v6585_v42 = vld [vmem:[%s10406_s2 + $0x184] sm:$0xf]  ;;  %v5381_v45 = vor.u32 %v6587_v39, %v5380_v37  ;;  %v5236_v47 = vld [vmem:[%s10406_s2 + $0x60] sm:$0xf] }
  0x3d   : > { %v5382_v43 = vld [vmem:[%s10406_s2 + $0x190] sm:$0xf0]  ;;  %1249 = vmatpush.bf16.msra.mxu0 %v5269_v29  ;;  %v5257_v46 = vor.u32 %v6553_v40, %v5254_v41  ;;  %v6551_v48 = vld [vmem:[%s10406_s2 + $0x6c] sm:$0xf0]  ;;  %v5364_v49 = vld [vmem:[%s10406_s2 + $0x160] sm:$0xf] }
  0x3e   : > { %1338 = vmatpush.bf16.msra.mxu1 %v5397_v33  ;;  %v5385_v50 = vor.u32 %v6585_v42, %v5382_v43  ;;  %v6583_v51 = vld [vmem:[%s10406_s2 + $0x16c] sm:$0xf0]  ;;  %v6549_v52 = vld [vmem:[%s10406_s2 + $0x64] sm:$0xf]  ;;  %v5238_v53 = vld [vmem:[%s10406_s2 + $0x70] sm:$0xf0]  ;;  %v5237_v56 = vor.u32 %v6551_v48, %v5236_v47 }
  0x3f   : > { %1427 = vmatpush.bf16.msra.mxu2 %v5273_v34  ;;  %v6581_v54 = vld [vmem:[%s10406_s2 + $0x164] sm:$0xf]  ;;  %v5366_v55 = vld [vmem:[%s10406_s2 + $0x170] sm:$0xf0]  ;;  %v5365_v57 = vor.u32 %v6583_v51, %v5364_v49  ;;  %v5241_v58 = vor.u32 %v6549_v52, %v5238_v53  ;;  %v5220_v59 = vld [vmem:[%s10406_s2 + $0x40] sm:$0xf] }
  0x40   : > { %1516 = vmatpush.bf16.msra.mxu3 %v5401_v38  ;;  %v6547_v60 = vld [vmem:[%s10406_s2 + $0x4c] sm:$0xf0]  ;;  %v5348_v61 = vld [vmem:[%s10406_s2 + $0x140] sm:$0xf]  ;;  %v5369_v62 = vor.u32 %v6581_v54, %v5366_v55  ;;  %v6545_v0 = vld [vmem:[%s10406_s2 + $0x44] sm:$0xf] }
  0x41   : > { %1250 = vmatpush.bf16.msra.mxu0 %v5253_v44  ;;  %v6579_v63 = vld [vmem:[%s10406_s2 + $0x14c] sm:$0xf0]  ;;  %v5222_v1 = vld [vmem:[%s10406_s2 + $0x50] sm:$0xf0]  ;;  %v6577_v2 = vld [vmem:[%s10406_s2 + $0x144] sm:$0xf]  ;;  %v5221_v4 = vor.u32 %v6547_v60, %v5220_v59 }
  0x42   : > { %1339 = vmatpush.bf16.msra.mxu1 %v5381_v45  ;;  %v5350_v3 = vld [vmem:[%s10406_s2 + $0x150] sm:$0xf0]  ;;  %v5204_v5 = vld [vmem:[%s10406_s2 + $0x20] sm:$0xf]  ;;  %v6543_v6 = vld [vmem:[%s10406_s2 + $0x2c] sm:$0xf0]  ;;  %v5349_v8 = vor.u32 %v6579_v63, %v5348_v61  ;;  %v5225_v9 = vor.u32 %v6545_v0, %v5222_v1 }
  0x43   : > { %1428 = vmatpush.bf16.msra.mxu2 %v5257_v46  ;;  %v5332_v7 = vld [vmem:[%s10406_s2 + $0x120] sm:$0xf]  ;;  %v6575_v10 = vld [vmem:[%s10406_s2 + $0x12c] sm:$0xf0]  ;;  %v6541_v11 = vld [vmem:[%s10406_s2 + $0x24] sm:$0xf]  ;;  %v5353_v13 = vor.u32 %v6577_v2, %v5350_v3  ;;  %v5205_v21 = vor.u32 %v6543_v6, %v5204_v5 }
  0x44   : > { %1517 = vmatpush.bf16.msra.mxu3 %v5385_v50  ;;  %v5206_v12 = vld [vmem:[%s10406_s2 + $0x30] sm:$0xf0]  ;;  %v6573_v14 = vld [vmem:[%s10406_s2 + $0x124] sm:$0xf]  ;;  %v598_v16 = vld [vmem:[%s7217_s30 + $0x8] sm:$0xff]  ;;  %v5333_v23 = vor.u32 %v6575_v10, %v5332_v7  ;;  %s8637_s0 = scalar_lea.vmem [#allocation7], %s5185_s19 }
  0x45   : > { %1251 = vmatpush.bf16.msra.mxu0 %v5237_v56  ;;  %v597_v15 = vld [vmem:[%s7217_s30] sm:$0xff]  ;;  %v5334_v17 = vld [vmem:[%s10406_s2 + $0x130] sm:$0xf0]  ;;  %v600_v19 = vld [vmem:[%s7217_s30 + $0x18] sm:$0xff]  ;;  %v5209_v24 = vor.u32 %v6541_v11, %v5206_v12  ;;  %s6857_s20 = sshll.u32 %s7070_s24, 11  ;;  %s5056_s24 = sshll.u32 %s8637_s0, 4  ;;  %s5057_s24 = int_to_ptr.vmem [resolvable:$true] %s5056_s24 }
  0x46   : > { %1340 = vmatpush.bf16.msra.mxu1 %v5365_v57  ;;  %v599_v18 = vld [vmem:[%s7217_s30 + $0x10] sm:$0xff]  ;;  %v661_v20 = vpack.c.bf16 %v598_v16, %v597_v15  ;;  %v5188_v25 = vld [vmem:[%s10406_s2] sm:$0xf]  ;;  %v5337_v28 = vor.u32 %v6573_v14, %v5334_v17  ;;  %v6537_v30 = vld [vmem:[%s10406_s2 + $0x4] sm:$0xf]  ;;  %s5055_s12 = scalar_lea.hbm %s10410_s6, %s6857_s20  ;;  %s7012_s16 = scalar_lea.hbm %s10410_s6, 4096 }
  0x47   : > { %1429 = vmatpush.bf16.msra.mxu2 %v5241_v58  ;;  %v662_v22 = vpack.c.bf16 %v600_v19, %v599_v18  ;;  %v6539_v26 = vld [vmem:[%s10406_s2 + $0xc] sm:$0xf0]  ;;  %v5316_v27 = vld [vmem:[%s10406_s2 + $0x100] sm:$0xf]  ;;  %v5190_v31 = vld [vmem:[%s10406_s2 + $0x10] sm:$0xf0] }
  0x48   : > { %1518 = vmatpush.bf16.msra.mxu3 %v5369_v62  ;;  %v6571_v29 = vld [vmem:[%s10406_s2 + $0x10c] sm:$0xf0]  ;;  %v6569_v32 = vld [vmem:[%s10406_s2 + $0x104] sm:$0xf]  ;;  %v5318_v33 = vld [vmem:[%s10406_s2 + $0x110] sm:$0xf0]  ;;  %v799_v34 = vunpack.c.l.b16 %v661_v20  ;;  %v5189_v36 = vor.u32 %v6539_v26, %v5188_v25  ;;  %v800_v37 = vunpack.c.h.b16 %v661_v20  ;;  %v5193_v40 = vor.u32 %v6537_v30, %v5190_v31 }
  0x49   : > { %1252 = vmatpush.bf16.msra.mxu0 %v5221_v4  ;;  %v801_v35 = vunpack.c.l.b16 %v662_v22  ;;  %v802_v38 = vunpack.c.h.b16 %v662_v22  ;;  %v5317_v39 = vor.u32 %v6571_v29, %v5316_v27  ;;  %v5321_v41 = vor.u32 %v6569_v32, %v5318_v33  ;;  %v601_v44 = vld [vmem:[%s7217_s30 + $0x20] sm:$0xff]  ;;  %v602_v45 = vld [vmem:[%s7217_s30 + $0x28] sm:$0xff]  ;;  %v603_v46 = vld [vmem:[%s7217_s30 + $0x30] sm:$0xff]  ;;  %s5058_s13 = sshll.u32 %s5055_s12, 4  ;;  %s5059_s13 = int_to_ptr.hbm [resolvable:$true] %s5058_s13 }
  0x4a   : > { %1341 = vmatpush.bf16.msra.mxu1 %v5349_v8  ;;  %v604_v47 = vld [vmem:[%s7217_s30 + $0x38] sm:$0xff]  ;;  %v663_v48 = vpack.c.bf16 %v602_v45, %v601_v44  ;;  %v605_v56 = vld [vmem:[%s7217_s30 + $0x40] sm:$0xff]  ;;  %v606_v57 = vld [vmem:[%s7217_s30 + $0x48] sm:$0xff]  ;;  %s7006_s28 = sshra.s32 %s5059_s13, 4  ;;  %s7007_s28 = int_to_ptr.hbm [resolvable:$true] %s7006_s28 }
  0x4b   : > { %1430 = vmatpush.bf16.msra.mxu2 %v5225_v9  ;;  %v7427_v42 = vpack.c.b16 %v801_v35, %v799_v34  ;;  %v7429_v43 = vpack.c.b16 %v802_v38, %v800_v37  ;;  %v664_v49 = vpack.c.bf16 %v604_v47, %v603_v46  ;;  %v607_v58 = vld [vmem:[%s7217_s30 + $0x50] sm:$0xff]  ;;  %v608_v59 = vld [vmem:[%s7217_s30 + $0x58] sm:$0xff]  ;;  %v665_v60 = vpack.c.bf16 %v606_v57, %v605_v56  ;;  %v609_v4 = vld [vmem:[%s7217_s30 + $0x60] sm:$0xff]  ;;  %s7008_s8 = scalar_lea.hbm %s7007_s28, 2048  ;;  %p7013_p7 = scmp.lt.s32.totalorder %s7007_s28, %s10410_s6 }
  0x4c   : > { %1519 = vmatpush.bf16.msra.mxu3 %v5353_v13  ;;  %v803_v50 = vunpack.c.l.b16 %v663_v48  ;;  %v804_v52 = vunpack.c.h.b16 %v663_v48  ;;  %v666_v61 = vpack.c.bf16 %v608_v59, %v607_v58  ;;  %v610_v5 = vld [vmem:[%s7217_s30 + $0x68] sm:$0xff]  ;;  %v611_v6 = vld [vmem:[%s7217_s30 + $0x70] sm:$0xff]  ;;  %v612_v7 = vld [vmem:[%s7217_s30 + $0x78] sm:$0xff]  ;;  %p7009_p4 = scmp.ne.s32.totalorder %s7007_s28, %s7008_s8  ;;  %p7014_p8 = scmp.lt.s32.totalorder %s7012_s16, %s7008_s8 }
  0x4d   : > { %1253 = vmatpush.bf16.msra.mxu0 %v5205_v21  ;;  %v805_v51 = vunpack.c.l.b16 %v664_v49  ;;  %v806_v53 = vunpack.c.h.b16 %v664_v49  ;;  %v807_v62 = vunpack.c.l.b16 %v665_v60  ;;  %v808_v0 = vunpack.c.h.b16 %v665_v60  ;;  %v613_v16 = vld [vmem:[%s7217_s30 + $0x80] sm:$0xff]  ;;  %v614_v17 = vld [vmem:[%s7217_s30 + $0x88] sm:$0xff]  ;;  %v615_v18 = vld [vmem:[%s7217_s30 + $0x90] sm:$0xff] }
  0x4e   : > { %1342 = vmatpush.bf16.msra.mxu1 %v5333_v23  ;;  %v809_v63 = vunpack.c.l.b16 %v666_v61  ;;  %v810_v1 = vunpack.c.h.b16 %v666_v61  ;;  %v667_v8 = vpack.c.bf16 %v610_v5, %v609_v4  ;;  %v668_v9 = vpack.c.bf16 %v612_v7, %v611_v6  ;;  %v616_v19 = vld [vmem:[%s7217_s30 + $0x98] sm:$0xff]  ;;  %v618_v29 = vld [vmem:[%s7217_s30 + $0xa8] sm:$0xff]  ;;  %v619_v30 = vld [vmem:[%s7217_s30 + $0xb0] sm:$0xff]  ;;  %p7010_p5 = pnand %p7009_p4, %p7172_p9  ;;  %p7015_p10 = por %p7014_p8, %p7013_p7 }
  0x4f   : > { %1431 = vmatpush.bf16.msra.mxu2 %v5209_v24  ;;  %v7439_v54 = vpack.c.b16 %v805_v51, %v803_v50  ;;  %v7441_v55 = vpack.c.b16 %v806_v53, %v804_v52  ;;  %v669_v20 = vpack.c.bf16 %v614_v17, %v613_v16  ;;  %v670_v21 = vpack.c.bf16 %v616_v19, %v615_v18  ;;  %v620_v31 = vld [vmem:[%s7217_s30 + $0xb8] sm:$0xff]  ;;  %v623_v44 = vld [vmem:[%s7217_s30 + $0xd0] sm:$0xff]  ;;  %v625_v56 = vld [vmem:[%s7217_s30 + $0xe0] sm:$0xff] }
  0x50   : > { %1520 = vmatpush.bf16.msra.mxu3 %v5337_v28  ;;  %v7451_v2 = vpack.c.b16 %v809_v63, %v807_v62  ;;  %v7453_v3 = vpack.c.b16 %v810_v1, %v808_v0  ;;  %v811_v10 = vunpack.c.l.b16 %v667_v8  ;;  %v813_v11 = vunpack.c.l.b16 %v668_v9  ;;  %v617_v28 = vld [vmem:[%s7217_s30 + $0xa0] sm:$0xff]  ;;  %v624_v45 = vld [vmem:[%s7217_s30 + $0xd8] sm:$0xff]  ;;  %v6566_v57 = vld [vmem:[%s10406_s2 + $0xec] sm:$0xf]  ;;  %p7011_p6 = pneg %p7010_p5 }
  0x51   : > { %1254 = vmatpush.bf16.msra.mxu0 %v5189_v36  ;;  %v812_v12 = vunpack.c.h.b16 %v667_v8  ;;  %v814_v13 = vunpack.c.h.b16 %v668_v9  ;;  %v815_v22 = vunpack.c.l.b16 %v669_v20  ;;  %v817_v23 = vunpack.c.l.b16 %v670_v21  ;;  %v5310_v58 = vld [vmem:[%s10406_s2 + $0xf8] sm:$0xf0]  ;;  %v626_v59 = vld [vmem:[%s7217_s30 + $0xe8] sm:$0xff]  ;;  %v627_v60 = vld [vmem:[%s7217_s30 + $0xf0] sm:$0xff] }
  0x52   : > { %1343 = vmatpush.bf16.msra.mxu1 %v5317_v39  ;;  %v7463_v14 = vpack.c.b16 %v813_v11, %v811_v10  ;;  %v816_v24 = vunpack.c.h.b16 %v669_v20  ;;  %v818_v25 = vunpack.c.h.b16 %v670_v21  ;;  %v671_v32 = vpack.c.bf16 %v618_v29, %v617_v28  ;;  %v628_v61 = vld [vmem:[%s7217_s30 + $0xf8] sm:$0xff]  ;;  %v6598_v63 = vld [vmem:[%s10406_s2 + $0x1ec] sm:$0xf]  ;;  %v5308_v1 = vld [vmem:[%s10406_s2 + $0xe8] sm:$0xf]  ;;  %p7016_p13 = pnand %p7015_p10, %p7011_p6 }
  0x53   : > { %1432 = vmatpush.bf16.msra.mxu2 %v5193_v40  ;;  %v7465_v15 = vpack.c.b16 %v814_v13, %v812_v12  ;;  %v7475_v26 = vpack.c.b16 %v817_v23, %v815_v22  ;;  %v672_v33 = vpack.c.bf16 %v620_v31, %v619_v30  ;;  %v621_v40 = vld [vmem:[%s7217_s30 + $0xc0] sm:$0xff]  ;;  %v674_v47 = vpack.c.bf16 %v624_v45, %v623_v44  ;;  %v5438_v0 = vld [vmem:[%s10406_s2 + $0x1f8] sm:$0xf0]  ;;  %v6568_v5 = vld [vmem:[%s10406_s2 + $0xf4] sm:$0xf0] }
  0x54   : > { %1521 = vmatpush.bf16.msra.mxu3 %v5321_v41  ;;  %1255 = vmatmul.bf16.vlgmr.msra.gmra.mxu0 %v7427_v42  ;;  %10478 = vst [vmem:[#allocation15_spill] sm:$0xff] %v7463_v14  ;;  %v7477_v27 = vpack.c.b16 %v818_v25, %v816_v24  ;;  %v819_v34 = vunpack.c.l.b16 %v671_v32  ;;  %v820_v36 = vunpack.c.h.b16 %v671_v32  ;;  %v622_v41 = vld [vmem:[%s7217_s30 + $0xc8] sm:$0xff]  ;;  %v5313_v62 = vor.u32 %v6566_v57, %v5310_v58  ;;  %v6600_v7 = vld [vmem:[%s10406_s2 + $0x1f4] sm:$0xf0]  ;;  %v629_v20 = vld [vmem:[%s7217_s30 + $0x100] sm:$0xff] }
  0x55   : > { %1344 = vmatmul.bf16.vlgmr.msra.gmra.mxu1 %v7429_v43  ;;  %10479 = vst [vmem:[#allocation16_spill] sm:$0xff] %v7465_v15  ;;  %v821_v35 = vunpack.c.l.b16 %v672_v33  ;;  %v822_v37 = vunpack.c.h.b16 %v672_v33  ;;  %v673_v46 = vpack.c.bf16 %v622_v41, %v621_v40  ;;  %v825_v49 = vunpack.c.l.b16 %v674_v47  ;;  %v5436_v6 = vld [vmem:[%s10406_s2 + $0x1e8] sm:$0xf]  ;;  %v631_v22 = vld [vmem:[%s7217_s30 + $0x110] sm:$0xff]  ;;  %v632_v23 = vld [vmem:[%s7217_s30 + $0x118] sm:$0xff] }
  0x56   : > { %1433 = vmatmul.bf16.vlgmr.msra.gmra.mxu2 %v7427_v42  ;;  %10480 = vst [vmem:[#allocation17_spill] sm:$0xff] %v7475_v26  ;;  %v826_v51 = vunpack.c.h.b16 %v674_v47  ;;  %v5441_v4 = vor.u32 %v6598_v63, %v5438_v0  ;;  %v675_v8 = vpack.c.bf16 %v626_v59, %v625_v56  ;;  %v676_v9 = vpack.c.bf16 %v628_v61, %v627_v60  ;;  %v630_v21 = vld [vmem:[%s7217_s30 + $0x108] sm:$0xff]  ;;  %v757_v28 = vld [vmem:[%s10407_s3] sm:$0xf]  ;;  %v5422_v57 = vld [vmem:[%s10406_s2 + $0x1d8] sm:$0xf0] }
  0x57   : > { %1522 = vmatmul.bf16.vlgmr.msra.gmra.mxu3 %v7429_v43  ;;  %10481 = vst [vmem:[#allocation18_spill] sm:$0xff] %v7477_v27  ;;  %v7487_v38 = vpack.c.b16 %v821_v35, %v819_v34  ;;  %v7489_v39 = vpack.c.b16 %v822_v37, %v820_v36  ;;  %v823_v48 = vunpack.c.l.b16 %v673_v46  ;;  %v824_v50 = vunpack.c.h.b16 %v673_v46  ;;  %1781 = vmatpush.bf16.msrb.mxu2 %v5313_v62  ;;  %v633_v44 = vld [vmem:[%s7217_s30 + $0x120] sm:$0xff]  ;;  %v634_v45 = vld [vmem:[%s7217_s30 + $0x128] sm:$0xff]  ;;  %v635_v46 = vld [vmem:[%s7217_s30 + $0x130] sm:$0xff] }
  0x58   : > { %v5309_v10 = vor.u32 %v6568_v5, %v5308_v1  ;;  %v5437_v11 = vor.u32 %v6600_v7, %v5436_v6  ;;  %1870 = vmatpush.bf16.msrb.mxu3 %v5441_v4  ;;  %v827_v12 = vunpack.c.l.b16 %v675_v8  ;;  %v829_v13 = vunpack.c.l.b16 %v676_v9  ;;  %v6594_v56 = vld [vmem:[%s10406_s2 + $0x1cc] sm:$0xf]  ;;  %v5292_v58 = vld [vmem:[%s10406_s2 + $0xc8] sm:$0xf]  ;;  %v6564_v60 = vld [vmem:[%s10406_s2 + $0xd4] sm:$0xf0] }
  0x59   : > { %10482 = vst [vmem:[#allocation19_spill] sm:$0xff] %v7487_v38  ;;  %v7499_v52 = vpack.c.b16 %v825_v49, %v823_v48  ;;  %v7501_v53 = vpack.c.b16 %v826_v51, %v824_v50  ;;  %v828_v16 = vunpack.c.h.b16 %v675_v8  ;;  %v830_v17 = vunpack.c.h.b16 %v676_v9  ;;  %v636_v48 = vld [vmem:[%s7217_s30 + $0x138] sm:$0xff]  ;;  %v6562_v49 = vld [vmem:[%s10406_s2 + $0xcc] sm:$0xf]  ;;  %v5420_v61 = vld [vmem:[%s10406_s2 + $0x1c8] sm:$0xf] }
  0x5a   : > { %10483 = vst [vmem:[#allocation20_spill] sm:$0xff] %v7489_v39  ;;  %1603 = vmatpush.bf16.msrb.mxu0 %v5309_v10  ;;  %1692 = vmatpush.bf16.msrb.mxu1 %v5437_v11  ;;  %v7535_v18 = vpack.c.b16 %v829_v13, %v827_v12  ;;  %v677_v24 = vpack.c.bf16 %v630_v21, %v629_v20  ;;  %v7550_v33 = vperm.slane %v757_v28, 0  ;;  %v7565_v47 = vperm.slane %v757_v28, 1  ;;  %v5294_v50 = vld [vmem:[%s10406_s2 + $0xd8] sm:$0xf0] }
  0x5b   : > { %10484 = vst [vmem:[#allocation21_spill] sm:$0xff] %v7499_v52  ;;  %v7537_v19 = vpack.c.b16 %v830_v17, %v828_v16  ;;  %v678_v25 = vpack.c.bf16 %v632_v23, %v631_v22  ;;  %v5297_v51 = vor.u32 %v6562_v49, %v5294_v50  ;;  %v5425_v59 = vor.u32 %v6594_v56, %v5422_v57  ;;  %v6596_v62 = vld [vmem:[%s10406_s2 + $0x1d4] sm:$0xf0] }
  0x5c   : > { %10485 = vst [vmem:[#allocation22_spill] sm:$0xff] %v7501_v53  ;;  %v831_v29 = vunpack.c.l.b16 %v677_v24  ;;  %v832_v31 = vunpack.c.h.b16 %v677_v24  ;;  %v679_v0 = vpack.c.bf16 %v634_v45, %v633_v44  ;;  %v680_v1 = vpack.c.bf16 %v636_v48, %v635_v46  ;;  %v638_v44 = vld [vmem:[%s7217_s30 + $0x148] sm:$0xff]  ;;  %v639_v45 = vld [vmem:[%s7217_s30 + $0x150] sm:$0xff]  ;;  %v640_v46 = vld [vmem:[%s7217_s30 + $0x158] sm:$0xff] }
  0x5d   : > { %10486 = vst [vmem:[#allocation23_spill] sm:$0xff] %v7535_v18  ;;  %v833_v30 = vunpack.c.l.b16 %v678_v25  ;;  %v834_v32 = vunpack.c.h.b16 %v678_v25  ;;  %1782 = vmatpush.bf16.msrb.mxu2 %v5297_v51  ;;  %v5293_v4 = vor.u32 %v6564_v60, %v5292_v58  ;;  %v5421_v5 = vor.u32 %v6596_v62, %v5420_v61  ;;  %1871 = vmatpush.bf16.msrb.mxu3 %v5425_v59 }
  0x5e   : > { %10487 = vst [vmem:[#allocation24_spill] sm:$0xff] %v7537_v19  ;;  %v835_v13 = vunpack.c.l.b16 %v679_v0  ;;  %v837_v16 = vunpack.c.l.b16 %v680_v1  ;;  %v836_v17 = vunpack.c.h.b16 %v679_v0  ;;  %v838_v20 = vunpack.c.h.b16 %v680_v1 }
  0x5f   : > { %v7552_v34 = vpack.c.b16 %v833_v30, %v831_v29  ;;  %v7554_v36 = vpack.c.b16 %v834_v32, %v832_v31  ;;  %1604 = vmatpush.bf16.msrb.mxu0 %v5293_v4  ;;  %1693 = vmatpush.bf16.msrb.mxu1 %v5421_v5  ;;  %v682_v50 = vpack.c.bf16 %v640_v46, %v639_v45  ;;  %v6590_v45 = vld [vmem:[%s10406_s2 + $0x1ac] sm:$0xf]  ;;  %v5406_v46 = vld [vmem:[%s10406_s2 + $0x1b8] sm:$0xf0] }
  0x60   : > { %v7601_v23 = vpack.c.b16 %v837_v16, %v835_v13  ;;  %v7604_v29 = vpack.c.b16 %v838_v20, %v836_v17 }
  0x61   : > { %10488 = vst [vmem:[#allocation25_spill] sm:$0xff] %v7552_v34  ;;  %v842_v1 = vunpack.c.h.b16 %v682_v50 }
  0x62   : > { %10489 = vst [vmem:[#allocation26_spill] sm:$0xff] %v7554_v36 }
  0x63   : > { %10490 = vst [vmem:[#allocation27_spill] sm:$0xff] %v7601_v23 }
  0x64   : > { %1260 = vmatmul.bf16.gmra.mxu0 %v7439_v54  ;;  %10491 = vst [vmem:[#allocation28_spill] sm:$0xff] %v7604_v29 }
  0x65   : > { %1349 = vmatmul.bf16.gmra.mxu1 %v7441_v55 }
  0x66   : > { %1438 = vmatmul.bf16.gmra.mxu2 %v7439_v54 }
  0x67   : > { %1527 = vmatmul.bf16.gmra.mxu3 %v7441_v55 }
  0x74   : > { %1265 = vmatmul.bf16.gmra.mxu0 %v7451_v2 }
  0x75   : > { %1354 = vmatmul.bf16.gmra.mxu1 %v7453_v3 }
  0x76   : > { %1443 = vmatmul.bf16.gmra.mxu2 %v7451_v2 }
  0x77   : > { %1532 = vmatmul.bf16.gmra.mxu3 %v7453_v3 }
  0x84   : > { %1270 = vmatmul.bf16.gmra.mxu0 %v7463_v14 }
  0x85   : > { %1359 = vmatmul.bf16.gmra.mxu1 %v7465_v15 }
  0x86   : > { %1448 = vmatmul.bf16.gmra.mxu2 %v7463_v14 }
  0x87   : > { %1537 = vmatmul.bf16.gmra.mxu3 %v7465_v15 }
  0x94   : > { %1275 = vmatmul.bf16.gmra.mxu0 %v7475_v26 }
  0x95   : > { %1364 = vmatmul.bf16.gmra.mxu1 %v7477_v27 }
  0x96   : > { %1453 = vmatmul.bf16.gmra.mxu2 %v7475_v26 }
  0x97   : > { %1542 = vmatmul.bf16.gmra.mxu3 %v7477_v27 }
  0xa4   : > { %1280 = vmatmul.bf16.gmra.mxu0 %v7487_v38 }
  0xa5   : > { %1369 = vmatmul.bf16.gmra.mxu1 %v7489_v39 }
  0xa6   : > { %1458 = vmatmul.bf16.gmra.mxu2 %v7487_v38 }
  0xa7   : > { %1547 = vmatmul.bf16.gmra.mxu3 %v7489_v39 }
  0xb4   : > { %1285 = vmatmul.bf16.gmra.mxu0 %v7499_v52 }
  0xb5   : > { %1374 = vmatmul.bf16.gmra.mxu1 %v7501_v53 }
  0xb6   : > { %1463 = vmatmul.bf16.gmra.mxu2 %v7499_v52 }
  0xb7   : > { %1552 = vmatmul.bf16.gmra.mxu3 %v7501_v53 }
  0xc4   : > { %1290 = vmatmul.bf16.gmra.mxu0 %v7535_v18 }
  0xc5   : > { %1379 = vmatmul.bf16.gmra.mxu1 %v7537_v19 }
  0xc6   : > { %1468 = vmatmul.bf16.gmra.mxu2 %v7535_v18  ;;  %v660_v18 = vld [vmem:[%s7217_s30 + $0x1f8] sm:$0xff] }
  0xc7   : > { %1557 = vmatmul.bf16.gmra.mxu3 %v7537_v19  ;;  %v659_v19 = vld [vmem:[%s7217_s30 + $0x1f0] sm:$0xff] }
  0xd1   : > { %v1256_v35 = vpop.f32.mrf.mxu0 }
  0xd2   : > { %v1257_v37 = vadd.f32 %v1256_v35, %v7550_v33  ;;  %v1345_v40 = vpop.f32.mrf.mxu1 }
  0xd4   : > { %v7557_v41 = vadd.f32 %v1345_v40, %v1257_v37  ;;  %1295 = vmatmul.bf16.gmra.mxu0 %v7552_v34  ;;  %v637_v37 = vld [vmem:[%s7217_s30 + $0x140] sm:$0xff]  ;;  %v6556_v40 = vld [vmem:[%s10406_s2 + $0x94] sm:$0xf0] }
  0xd5   : > { %1384 = vmatmul.bf16.gmra.mxu1 %v7554_v36  ;;  %v681_v49 = vpack.c.bf16 %v638_v44, %v637_v37  ;;  %v5278_v37 = vld [vmem:[%s10406_s2 + $0xb8] sm:$0xf0] }
  0xd6   : > { %1473 = vmatmul.bf16.gmra.mxu2 %v7552_v34  ;;  %v658_v34 = vld [vmem:[%s7217_s30 + $0x1e8] sm:$0xff] }
  0xd7   : > { %1562 = vmatmul.bf16.gmra.mxu3 %v7554_v36  ;;  %v839_v62 = vunpack.c.l.b16 %v681_v49  ;;  %v840_v0 = vunpack.c.h.b16 %v681_v49  ;;  %v5409_v49 = vor.u32 %v6590_v45, %v5406_v46 }
  0xd9   : > { %v1434_v63 = vpop.f32.mrf.mxu2  ;;  %v1258_v8 = vpop.f32.mrf.mxu0  ;;  %1872 = vmatpush.bf16.msrb.mxu3 %v5409_v49 }
  0xda   : > { %v1435_v6 = vadd.f32 %v1434_v63, %v7565_v47  ;;  %v1523_v7 = vpop.f32.mrf.mxu3  ;;  %v1259_v9 = vadd.f32 %v1258_v8, %v7550_v33  ;;  %v1347_v10 = vpop.f32.mrf.mxu1  ;;  %v841_v63 = vunpack.c.l.b16 %v682_v50  ;;  %v6560_v50 = vld [vmem:[%s10406_s2 + $0xb4] sm:$0xf0] }
  0xdc   : > { %v7595_v11 = vadd.f32 %v1523_v7, %v1435_v6  ;;  %v7597_v12 = vadd.f32 %v1347_v10, %v1259_v9  ;;  %v7629_v6 = vpack.c.b16 %v841_v63, %v839_v62  ;;  %v7632_v10 = vpack.c.b16 %v842_v1, %v840_v0 }
  0xde   : > { %10492 = vst [vmem:[#allocation29_spill] sm:$0xff] %v7629_v6 }
  0xdf   : > { %10493 = vst [vmem:[#allocation30_spill] sm:$0xff] %v7632_v10 }
  0xe1   : > { %v1436_v22 = vpop.f32.mrf.mxu2  ;;  %v1261_v28 = vpop.f32.mrf.mxu0 }
  0xe2   : > { %v1437_v24 = vadd.f32 %v1436_v22, %v7565_v47  ;;  %v1525_v25 = vpop.f32.mrf.mxu3  ;;  %v1262_v30 = vadd.f32 %v1261_v28, %v7550_v33  ;;  %v1350_v31 = vpop.f32.mrf.mxu1  ;;  %v641_v22 = vld [vmem:[%s7217_s30 + $0x160] sm:$0xff] }
  0xe4   : > { %v7607_v32 = vadd.f32 %v1525_v25, %v1437_v24  ;;  %v7609_v35 = vadd.f32 %v1350_v31, %v1262_v30  ;;  %1300 = vmatmul.bf16.gmra.mxu0 %v7601_v23  ;;  %v642_v24 = vld [vmem:[%s7217_s30 + $0x168] sm:$0xff]  ;;  %v643_v25 = vld [vmem:[%s7217_s30 + $0x170] sm:$0xff]  ;;  %v644_v30 = vld [vmem:[%s7217_s30 + $0x178] sm:$0xff] }
  0xe5   : > { %1389 = vmatmul.bf16.gmra.mxu1 %v7604_v29  ;;  %v6558_v31 = vld [vmem:[%s10406_s2 + $0xac] sm:$0xf] }
  0xe6   : > { %1478 = vmatmul.bf16.gmra.mxu2 %v7601_v23  ;;  %v5281_v44 = vor.u32 %v6558_v31, %v5278_v37 }
  0xe7   : > { %1567 = vmatmul.bf16.gmra.mxu3 %v7604_v29 }
  0xe8   : > { %1783 = vmatpush.bf16.msrb.mxu2 %v5281_v44 }
  0xe9   : > { %v1439_v48 = vpop.f32.mrf.mxu2  ;;  %v1263_v57 = vpop.f32.mrf.mxu0 }
  0xea   : > { %v1440_v51 = vadd.f32 %v1439_v48, %v7565_v47  ;;  %v1528_v56 = vpop.f32.mrf.mxu3  ;;  %v1264_v58 = vadd.f32 %v1263_v57, %v7550_v33  ;;  %v1352_v59 = vpop.f32.mrf.mxu1  ;;  %v5276_v48 = vld [vmem:[%s10406_s2 + $0xa8] sm:$0xf] }
  0xeb   : > { %v5277_v62 = vor.u32 %v6560_v50, %v5276_v48 }
  0xec   : > { %v7623_v60 = vadd.f32 %v1528_v56, %v1440_v51  ;;  %v7625_v61 = vadd.f32 %v1352_v59, %v1264_v58  ;;  %v5404_v51 = vld [vmem:[%s10406_s2 + $0x1a8] sm:$0xf]  ;;  %v6592_v56 = vld [vmem:[%s10406_s2 + $0x1b4] sm:$0xf0]  ;;  %v683_v58 = vpack.c.bf16 %v642_v24, %v641_v22  ;;  %v684_v59 = vpack.c.bf16 %v644_v30, %v643_v25 }
  0xed   : > { %v5405_v63 = vor.u32 %v6592_v56, %v5404_v51  ;;  %1605 = vmatpush.bf16.msrb.mxu0 %v5277_v62  ;;  %v647_v62 = vld [vmem:[%s7217_s30 + $0x190] sm:$0xff] }
  0xee   : > { %v845_v22 = vunpack.c.l.b16 %v684_v59  ;;  %v844_v24 = vunpack.c.h.b16 %v683_v58  ;;  %v846_v25 = vunpack.c.h.b16 %v684_v59  ;;  %v646_v59 = vld [vmem:[%s7217_s30 + $0x188] sm:$0xff] }
  0xef   : > { %1694 = vmatpush.bf16.msrb.mxu1 %v5405_v63  ;;  %v648_v63 = vld [vmem:[%s7217_s30 + $0x198] sm:$0xff] }
  0xf0   : > { %v7684_v48 = vpack.c.b16 %v846_v25, %v844_v24 }
  0xf1   : > { %v1441_v5 = vpop.f32.mrf.mxu2  ;;  %v1266_v9 = vpop.f32.mrf.mxu0 }
  0xf2   : > { %v1442_v7 = vadd.f32 %v1441_v5, %v7565_v47  ;;  %v1530_v8 = vpop.f32.mrf.mxu3  ;;  %v1267_v13 = vadd.f32 %v1266_v9, %v7550_v33  ;;  %v1355_v16 = vpop.f32.mrf.mxu1  ;;  %10495 = vst [vmem:[#allocation32_spill] sm:$0xff] %v7684_v48 }
  0xf4   : > { %v7635_v17 = vadd.f32 %v1530_v8, %v1442_v7  ;;  %v7637_v20 = vadd.f32 %v1355_v16, %v1267_v13  ;;  %1305 = vmatmul.bf16.gmra.mxu0 %v7629_v6  ;;  %v843_v16 = vunpack.c.l.b16 %v683_v58 }
  0xf5   : > { %1394 = vmatmul.bf16.gmra.mxu1 %v7632_v10 }
  0xf6   : > { %1483 = vmatmul.bf16.gmra.mxu2 %v7629_v6  ;;  %v7681_v37 = vpack.c.b16 %v845_v22, %v843_v16 }
  0xf7   : > { %1572 = vmatmul.bf16.gmra.mxu3 %v7632_v10  ;;  %v5230_v10 = vld [vmem:[%s10406_s2 + $0x58] sm:$0xf0] }
  0xf8   : > { %10494 = vst [vmem:[#allocation31_spill] sm:$0xff] %v7681_v37 }
  0xf9   : > { %v1444_v57 = vpop.f32.mrf.mxu2  ;;  %v1268_v5 = vpop.f32.mrf.mxu0 }
  0xfa   : > { %v1445_v0 = vadd.f32 %v1444_v57, %v7565_v47  ;;  %v1533_v1 = vpop.f32.mrf.mxu3  ;;  %v1269_v7 = vadd.f32 %v1268_v5, %v7550_v33  ;;  %v1357_v8 = vpop.f32.mrf.mxu1  ;;  %v645_v57 = vld [vmem:[%s7217_s30 + $0x180] sm:$0xff]  ;;  %v686_v5 = vpack.c.bf16 %v648_v63, %v647_v62 }
  0xfc   : > { %v7675_v9 = vadd.f32 %v1533_v1, %v1445_v0  ;;  %v7677_v13 = vadd.f32 %v1357_v8, %v1269_v7  ;;  %v685_v1 = vpack.c.bf16 %v646_v59, %v645_v57 }
 0x101   : > { %v1446_v31 = vpop.f32.mrf.mxu2  ;;  %v1271_v46 = vpop.f32.mrf.mxu0 }
 0x102   : > { %v1447_v44 = vadd.f32 %v1446_v31, %v7565_v47  ;;  %v1535_v45 = vpop.f32.mrf.mxu3  ;;  %v1272_v49 = vadd.f32 %v1271_v46, %v7550_v33  ;;  %v1360_v50 = vpop.f32.mrf.mxu1  ;;  %v848_v46 = vunpack.c.h.b16 %v685_v1 }
 0x104   : > { %v7687_v51 = vadd.f32 %v1535_v45, %v1447_v44  ;;  %v7689_v56 = vadd.f32 %v1360_v50, %v1272_v49  ;;  %1310 = vmatmul.bf16.gmra.mxu0 %v7681_v37  ;;  %v847_v44 = vunpack.c.l.b16 %v685_v1  ;;  %v849_v45 = vunpack.c.l.b16 %v686_v5 }
 0x105   : > { %1399 = vmatmul.bf16.gmra.mxu1 %v7684_v48  ;;  %v850_v49 = vunpack.c.h.b16 %v686_v5  ;;  %v649_v5 = vld [vmem:[%s7217_s30 + $0x1a0] sm:$0xff] }
 0x106   : > { %1488 = vmatmul.bf16.gmra.mxu2 %v7681_v37  ;;  %v7709_v59 = vpack.c.b16 %v849_v45, %v847_v44  ;;  %v651_v44 = vld [vmem:[%s7217_s30 + $0x1b0] sm:$0xff] }
 0x107   : > { %1577 = vmatmul.bf16.gmra.mxu3 %v7684_v48 }
 0x108   : > { %10496 = vst [vmem:[#allocation33_spill] sm:$0xff] %v7709_v59 }
 0x109   : > { %v1449_v0 = vpop.f32.mrf.mxu2  ;;  %v1273_v16 = vpop.f32.mrf.mxu0 }
 0x10a   : > { %v1450_v7 = vadd.f32 %v1449_v0, %v7565_v47  ;;  %v1538_v8 = vpop.f32.mrf.mxu3  ;;  %v1274_v22 = vadd.f32 %v1273_v16, %v7550_v33  ;;  %v1362_v24 = vpop.f32.mrf.mxu1 }
 0x10c   : > { %v7703_v25 = vadd.f32 %v1538_v8, %v1450_v7  ;;  %v7705_v31 = vadd.f32 %v1362_v24, %v1274_v22  ;;  %v7712_v7 = vpack.c.b16 %v850_v49, %v848_v46  ;;  %v650_v24 = vld [vmem:[%s7217_s30 + $0x1a8] sm:$0xff]  ;;  %v652_v46 = vld [vmem:[%s7217_s30 + $0x1b8] sm:$0xff] }
 0x10d   : > { %v6554_v49 = vld [vmem:[%s10406_s2 + $0x8c] sm:$0xf]  ;;  %v687_v21 = vpack.c.bf16 %v650_v24, %v649_v5  ;;  %v688_v58 = vpack.c.bf16 %v652_v46, %v651_v44 }
 0x10e   : > { %10497 = vst [vmem:[#allocation34_spill] sm:$0xff] %v7712_v7 }
 0x10f   : > { %v851_v5 = vunpack.c.l.b16 %v687_v21  ;;  %v853_v24 = vunpack.c.l.b16 %v688_v58  ;;  %v854_v44 = vunpack.c.h.b16 %v688_v58  ;;  %v653_v58 = vld [vmem:[%s7217_s30 + $0x1c0] sm:$0xff] }
 0x111   : > { %v1451_v57 = vpop.f32.mrf.mxu2  ;;  %v1276_v0 = vpop.f32.mrf.mxu0 }
 0x112   : > { %v1452_v62 = vadd.f32 %v1451_v57, %v7565_v47  ;;  %v1540_v63 = vpop.f32.mrf.mxu3  ;;  %v1277_v8 = vadd.f32 %v1276_v0, %v7550_v33  ;;  %v1365_v16 = vpop.f32.mrf.mxu1  ;;  %v5262_v57 = vld [vmem:[%s10406_s2 + $0x98] sm:$0xf0] }
 0x113   : > { %v5390_v0 = vld [vmem:[%s10406_s2 + $0x198] sm:$0xf0] }
 0x114   : > { %v7715_v22 = vadd.f32 %v1540_v63, %v1452_v62  ;;  %v7717_v1 = vadd.f32 %v1365_v16, %v1277_v8  ;;  %1315 = vmatmul.bf16.gmra.mxu0 %v7709_v59  ;;  %v5265_v62 = vor.u32 %v6554_v49, %v5262_v57  ;;  %v6586_v63 = vld [vmem:[%s10406_s2 + $0x18c] sm:$0xf]  ;;  %v5260_v8 = vld [vmem:[%s10406_s2 + $0x88] sm:$0xf]  ;;  %v6588_v57 = vld [vmem:[%s10406_s2 + $0x194] sm:$0xf0] }
 0x115   : > { %1404 = vmatmul.bf16.gmra.mxu1 %v7712_v7  ;;  %v5393_v16 = vor.u32 %v6586_v63, %v5390_v0  ;;  %v5388_v49 = vld [vmem:[%s10406_s2 + $0x188] sm:$0xf]  ;;  %v5261_v4 = vor.u32 %v6556_v40, %v5260_v8  ;;  %v852_v40 = vunpack.c.h.b16 %v687_v21  ;;  %v5246_v21 = vld [vmem:[%s10406_s2 + $0x78] sm:$0xf0] }
 0x116   : > { %1493 = vmatmul.bf16.gmra.mxu2 %v7709_v59  ;;  %v5389_v45 = vor.u32 %v6588_v57, %v5388_v49  ;;  %v654_v49 = vld [vmem:[%s7217_s30 + $0x1c8] sm:$0xff]  ;;  %v655_v57 = vld [vmem:[%s7217_s30 + $0x1d0] sm:$0xff] }
 0x117   : > { %1582 = vmatmul.bf16.gmra.mxu3 %v7712_v7  ;;  %1784 = vmatpush.bf16.msrb.mxu2 %v5265_v62  ;;  %v689_v23 = vpack.c.bf16 %v654_v49, %v653_v58  ;;  %v5358_v58 = vld [vmem:[%s10406_s2 + $0x158] sm:$0xf0] }
 0x118   : > { %1873 = vmatpush.bf16.msrb.mxu3 %v5393_v16  ;;  %1606 = vmatpush.bf16.msrb.mxu0 %v5261_v4  ;;  %v7768_v16 = vpack.c.b16 %v854_v44, %v852_v40  ;;  %v5372_v40 = vld [vmem:[%s10406_s2 + $0x168] sm:$0xf]  ;;  %v6584_v44 = vld [vmem:[%s10406_s2 + $0x174] sm:$0xf0] }
 0x119   : > { %v1454_v28 = vpop.f32.mrf.mxu2  ;;  %v7754_v30 = vpop.f32.mrf.mxu0  ;;  %1695 = vmatpush.bf16.msrb.mxu1 %v5389_v45  ;;  %v6550_v45 = vld [vmem:[%s10406_s2 + $0x6c] sm:$0xf]  ;;  %v5373_v48 = vor.u32 %v6584_v44, %v5372_v40  ;;  %v5214_v44 = vld [vmem:[%s10406_s2 + $0x38] sm:$0xf0] }
 0x11a   : > { %v1455_v63 = vadd.f32 %v1454_v28, %v7565_v47  ;;  %v1543_v0 = vpop.f32.mrf.mxu3  ;;  %v7756_v50 = vpop.f32.mrf.mxu1  ;;  %v7762_v28 = vpack.c.b16 %v853_v24, %v851_v5  ;;  %10499 = vst [vmem:[#allocation36_spill] sm:$0xff] %v7768_v16  ;;  %v5244_v5 = vld [vmem:[%s10406_s2 + $0x68] sm:$0xf]  ;;  %v6552_v24 = vld [vmem:[%s10406_s2 + $0x74] sm:$0xf0] }
 0x11b   : > { %v5245_v59 = vor.u32 %v6552_v24, %v5244_v5  ;;  %v6548_v5 = vld [vmem:[%s10406_s2 + $0x54] sm:$0xf0]  ;;  %v5356_v24 = vld [vmem:[%s10406_s2 + $0x148] sm:$0xf] }
 0x11c   : > { %v7758_v7 = vadd.f32 %v1543_v0, %v1455_v63  ;;  %10498 = vst [vmem:[#allocation35_spill] sm:$0xff] %v7762_v28  ;;  %v656_v63 = vld [vmem:[%s7217_s30 + $0x1d8] sm:$0xff]  ;;  %v5249_v0 = vor.u32 %v6550_v45, %v5246_v21  ;;  %v6582_v45 = vld [vmem:[%s10406_s2 + $0x16c] sm:$0xf] }
 0x11d   : > { %v5374_v21 = vld [vmem:[%s10406_s2 + $0x178] sm:$0xf0]  ;;  %v690_v36 = vpack.c.bf16 %v656_v63, %v655_v57  ;;  %1607 = vmatpush.bf16.msrb.mxu0 %v5245_v59  ;;  %1696 = vmatpush.bf16.msrb.mxu1 %v5373_v48  ;;  %v6580_v48 = vld [vmem:[%s10406_s2 + $0x154] sm:$0xf0]  ;;  %v6578_v59 = vld [vmem:[%s10406_s2 + $0x14c] sm:$0xf] }
 0x11e   : > { %1785 = vmatpush.bf16.msrb.mxu2 %v5249_v0  ;;  %v5377_v37 = vor.u32 %v6582_v45, %v5374_v21  ;;  %v5228_v0 = vld [vmem:[%s10406_s2 + $0x48] sm:$0xf]  ;;  %v5357_v57 = vor.u32 %v6580_v48, %v5356_v24  ;;  %v5361_v63 = vor.u32 %v6578_v59, %v5358_v58  ;;  %v855_v21 = vunpack.c.l.b16 %v689_v23 }
 0x11f   : > { %v5340_v24 = vld [vmem:[%s10406_s2 + $0x128] sm:$0xf]  ;;  %v856_v48 = vunpack.c.h.b16 %v689_v23  ;;  %v858_v59 = vunpack.c.h.b16 %v690_v36  ;;  %v5198_v23 = vld [vmem:[%s10406_s2 + $0x18] sm:$0xf0] }
 0x120   : > { %1874 = vmatpush.bf16.msrb.mxu3 %v5377_v37  ;;  %v6542_v37 = vld [vmem:[%s10406_s2 + $0x2c] sm:$0xf] }
 0x121   : > { %v7760_v46 = vpop.f32.mrf.mxu2  ;;  %v7766_v8 = vpop.f32.mrf.mxu0  ;;  %v5217_v45 = vor.u32 %v6542_v37, %v5214_v44  ;;  %1697 = vmatpush.bf16.msrb.mxu1 %v5357_v57  ;;  %v6574_v57 = vld [vmem:[%s10406_s2 + $0x12c] sm:$0xf]  ;;  %v5342_v37 = vld [vmem:[%s10406_s2 + $0x138] sm:$0xf0] }
 0x122   : > { %v7764_v62 = vpop.f32.mrf.mxu3  ;;  %v7770_v4 = vpop.f32.mrf.mxu1 }
 0x124   : > { %1320 = vmatmul.bf16.gmra.mxu0 %v7762_v28  ;;  %1875 = vmatpush.bf16.msrb.mxu3 %v5361_v63 }
 0x125   : > { %1409 = vmatmul.bf16.gmra.mxu1 %v7768_v16 }
 0x126   : > { %1498 = vmatmul.bf16.gmra.mxu2 %v7762_v28  ;;  %v6546_v28 = vld [vmem:[%s10406_s2 + $0x4c] sm:$0xf] }
 0x127   : > { %1587 = vmatmul.bf16.gmra.mxu3 %v7768_v16  ;;  %v5233_v6 = vor.u32 %v6546_v28, %v5230_v10  ;;  %v5229_v28 = vor.u32 %v6548_v5, %v5228_v0  ;;  %v857_v0 = vunpack.c.l.b16 %v690_v36  ;;  %v5212_v5 = vld [vmem:[%s10406_s2 + $0x28] sm:$0xf]  ;;  %v5345_v16 = vor.u32 %v6574_v57, %v5342_v37  ;;  %v6538_v36 = vld [vmem:[%s10406_s2 + $0xc] sm:$0xf] }
 0x128   : > { %v5201_v63 = vor.u32 %v6538_v36, %v5198_v23 }
 0x129   : > { %v7810_v29 = vpop.f32.mrf.mxu2  ;;  %v7823_v10 = vpop.f32.mrf.mxu0  ;;  %1786 = vmatpush.bf16.msrb.mxu2 %v5233_v6  ;;  %1608 = vmatpush.bf16.msrb.mxu0 %v5229_v28  ;;  %v6544_v6 = vld [vmem:[%s10406_s2 + $0x34] sm:$0xf0] }
 0x12a   : > { %v7821_v40 = vpop.f32.mrf.mxu3  ;;  %v7834_v49 = vpop.f32.mrf.mxu1  ;;  %v5213_v58 = vor.u32 %v6544_v6, %v5212_v5  ;;  %v6576_v28 = vld [vmem:[%s10406_s2 + $0x134] sm:$0xf0]  ;;  %v7868_v6 = vpack.c.b16 %v857_v0, %v855_v21  ;;  %v7881_v21 = vpack.c.b16 %v858_v59, %v856_v48  ;;  %1876 = vmatpush.bf16.msrb.mxu3 %v5345_v16  ;;  %v657_v16 = vld [vmem:[%s7217_s30 + $0x1e0] sm:$0xff]  ;;  %s5041_s30 = scalar_lea.sflag [#allocation4], %s7213_s29 }
 0x12b   : > { %v5341_v44 = vor.u32 %v6576_v28, %v5340_v24  ;;  %v6540_v24 = vld [vmem:[%s10406_s2 + $0x14] sm:$0xf0]  ;;  %v5324_v28 = vld [vmem:[%s10406_s2 + $0x108] sm:$0xf] }
 0x12c   : > { %10500 = vst [vmem:[#allocation37_spill] sm:$0xff] %v7868_v6  ;;  %v6572_v0 = vld [vmem:[%s10406_s2 + $0x114] sm:$0xf0] }
 0x12d   : > { %1787 = vmatpush.bf16.msrb.mxu2 %v5217_v45  ;;  %1609 = vmatpush.bf16.msrb.mxu0 %v5213_v58  ;;  %v5196_v45 = vld [vmem:[%s10406_s2 + $0x8] sm:$0xf]  ;;  %10501 = vst [vmem:[#allocation38_spill] sm:$0xff] %v7881_v21  ;;  %v6570_v58 = vld [vmem:[%s10406_s2 + $0x10c] sm:$0xf]  ;;  %v5325_v48 = vor.u32 %v6572_v0, %v5324_v28 }
 0x12e   : > { %1698 = vmatpush.bf16.msrb.mxu1 %v5341_v44  ;;  %v5326_v44 = vld [vmem:[%s10406_s2 + $0x118] sm:$0xf0]  ;;  %v5197_v23 = vor.u32 %v6540_v24, %v5196_v45  ;;  %v692_v45 = vpack.c.bf16 %v660_v18, %v659_v19 }
 0x12f   : > { %v5329_v59 = vor.u32 %v6570_v58, %v5326_v44 }
 0x130   : > { %v861_v44 = vunpack.c.l.b16 %v692_v45  ;;  %v862_v52 = vunpack.c.h.b16 %v692_v45 }
 0x131   : > { %v7866_v5 = vpop.f32.mrf.mxu2  ;;  %v1286_v37 = vpop.f32.mrf.mxu0  ;;  %1788 = vmatpush.bf16.msrb.mxu2 %v5201_v63  ;;  %1610 = vmatpush.bf16.msrb.mxu0 %v5197_v23  ;;  %v691_v63 = vpack.c.bf16 %v658_v34, %v657_v16 }
 0x132   : > { %v7879_v57 = vpop.f32.mrf.mxu3  ;;  %v1375_v36 = vpop.f32.mrf.mxu1  ;;  %1699 = vmatpush.bf16.msrb.mxu1 %v5325_v48  ;;  %1877 = vmatpush.bf16.msrb.mxu3 %v5329_v59 }
 0x133   : > { %v859_v58 = vunpack.c.l.b16 %v691_v63  ;;  %v860_v48 = vunpack.c.h.b16 %v691_v63  ;;  %v1287_v63 = vadd.f32 %v1286_v37, %v7550_v33 }
 0x134   : > { %1325 = vmatmul.bf16.gmra.mxu0 %v7868_v6 }
 0x135   : > { %1414 = vmatmul.bf16.gmra.mxu1 %v7881_v21  ;;  %v7900_v38 = vpack.c.b16 %v861_v44, %v859_v58  ;;  %v7902_v26 = vpack.c.b16 %v862_v52, %v860_v48  ;;  %v1284_v44 = vadd.f32 %v7823_v10, %v7550_v33  ;;  %v1376_v15 = vadd.f32 %v1375_v36, %v1287_v63 }
 0x136   : > { %1503 = vmatmul.bf16.gmra.mxu2 %v7868_v6 }
 0x137   : > { %1592 = vmatmul.bf16.gmra.mxu3 %v7881_v21  ;;  %10502 = vst [vmem:[#allocation39_spill] sm:$0xff] %v7900_v38  ;;  %v1373_v10 = vadd.f32 %v7834_v49, %v1284_v44 }
 0x138   : > { %10503 = vst [vmem:[#allocation40_spill] sm:$0xff] %v7902_v26 }
 0x139   : > { %v1464_v53 = vpop.f32.mrf.mxu2  ;;  %v1288_v28 = vpop.f32.mrf.mxu0 }
 0x13a   : > { %v1553_v24 = vpop.f32.mrf.mxu3  ;;  %v1377_v0 = vpop.f32.mrf.mxu1  ;;  %v1289_v59 = vadd.f32 %v1288_v28, %v7550_v33 }
 0x13c   : > { %v1378_v48 = vadd.f32 %v1377_v0, %v1289_v59 }
 0x13e   : > { %v1965_v0 = vpack.c.bf16 %v1378_v48, %v1376_v15 }
 0x141   : > { %v1466_v39 = vpop.f32.mrf.mxu2  ;;  %v1291_v27 = vpop.f32.mrf.mxu0 }
 0x142   : > { %v1555_v6 = vpop.f32.mrf.mxu3  ;;  %v1380_v21 = vpop.f32.mrf.mxu1  ;;  %v1292_v18 = vadd.f32 %v1291_v27, %v7550_v33  ;;  %v1282_v27 = vadd.f32 %v7766_v8, %v7550_v33  ;;  %v1467_v28 = vadd.f32 %v1466_v39, %v7565_v47  ;;  %v1465_v8 = vadd.f32 %v1464_v53, %v7565_v47 }
 0x143   : > { %v1460_v53 = vadd.f32 %v7810_v29, %v7565_v47 }
 0x144   : > { %1330 = vmatmul.bf16.gmra.mxu0 %v7900_v38  ;;  %v1381_v45 = vadd.f32 %v1380_v21, %v1292_v18  ;;  %v1279_v18 = vadd.f32 %v7754_v30, %v7550_v33  ;;  %v1556_v30 = vadd.f32 %v1555_v6, %v1467_v28 }
 0x145   : > { %1419 = vmatmul.bf16.gmra.mxu1 %v7902_v26  ;;  %v1549_v29 = vadd.f32 %v7821_v40, %v1460_v53 }
 0x146   : > { %1508 = vmatmul.bf16.gmra.mxu2 %v7900_v38  ;;  %v1368_v15 = vadd.f32 %v7756_v50, %v1279_v18 }
 0x147   : > { %1597 = vmatmul.bf16.gmra.mxu3 %v7902_v26 }
 0x149   : > { %v1469_v19 = vpop.f32.mrf.mxu2  ;;  %v1293_v23 = vpop.f32.mrf.mxu0 }
 0x14a   : > { %v1558_v34 = vpop.f32.mrf.mxu3  ;;  %v1294_v16 = vadd.f32 %v1293_v23, %v7550_v33  ;;  %v1382_v52 = vpop.f32.mrf.mxu1  ;;  %v1470_v26 = vadd.f32 %v1469_v19, %v7565_v47 }
 0x14c   : > { %v1383_v58 = vadd.f32 %v1382_v52, %v1294_v16  ;;  %v1559_v36 = vadd.f32 %v1558_v34, %v1470_v26 }
 0x14e   : > { %v1966_v38 = vpack.c.bf16 %v1383_v58, %v1381_v45  ;;  %v1963_v45 = vpack.c.bf16 %v1368_v15, %v7717_v1  ;;  %v10504_v1 = vpack.c.bf16 %v7705_v31, %v7689_v56  ;;  %v10505_v56 = vpack.c.bf16 %v7677_v13, %v7637_v20 }
 0x150   : > { %3097 = vmatpush.bf16.msra.mxu2 %v1966_v38  ;;  %v1371_v38 = vadd.f32 %v7770_v4, %v1282_v27  ;;  %v1554_v4 = vadd.f32 %v1553_v24, %v1465_v8 }
 0x151   : > { %v1471_v14 = vpop.f32.mrf.mxu2  ;;  %v1296_v21 = vpop.f32.mrf.mxu0 }
 0x152   : > { %v1472_v23 = vadd.f32 %v1471_v14, %v7565_v47  ;;  %v1560_v37 = vpop.f32.mrf.mxu3  ;;  %v1297_v19 = vadd.f32 %v1296_v21, %v7550_v33  ;;  %v1385_v59 = vpop.f32.mrf.mxu1  ;;  %v1462_v14 = vadd.f32 %v7866_v5, %v7565_v47  ;;  %v1964_v26 = vpack.c.bf16 %v1373_v10, %v1371_v38 }
 0x153   : > { %v1457_v5 = vadd.f32 %v7760_v46, %v7565_v47  ;;  %v1981_v52 = vpack.c.bf16 %v1556_v30, %v1554_v4 }
 0x154   : > { %v1561_v16 = vadd.f32 %v1560_v37, %v1472_v23  ;;  %v7925_v39 = vadd.f32 %v1385_v59, %v1297_v19  ;;  %1611 = vmatmul.bf16.vlgmr.msrb.gmra.mxu0 %v7427_v42  ;;  %3098 = vmatpush.bf16.msra.mxu2 %v1965_v0  ;;  %v1551_v6 = vadd.f32 %v7879_v57, %v1462_v14 }
 0x155   : > { %1700 = vmatmul.bf16.vlgmr.msrb.gmra.mxu1 %v7429_v43  ;;  %v1546_v46 = vadd.f32 %v7764_v62, %v1457_v5  ;;  %v10507_v19 = vpack.c.bf16 %v7625_v61, %v7609_v35  ;;  %v10510_v61 = vpack.c.bf16 %v7635_v17, %v7623_v60 }
 0x156   : > { %v1982_v49 = vpack.c.bf16 %v1561_v16, %v1559_v36  ;;  %1789 = vmatmul.bf16.vlgmr.msrb.gmra.mxu2 %v7427_v42  ;;  %v1980_v57 = vpack.c.bf16 %v1551_v6, %v1549_v29  ;;  %v10513_v29 = vld [vmem:[#allocation16_spill] sm:$0xff] }
 0x157   : > { %1878 = vmatmul.bf16.vlgmr.msrb.gmra.mxu3 %v7429_v43  ;;  %v1979_v40 = vpack.c.bf16 %v1546_v46, %v7758_v7  ;;  %v10506_v7 = vpack.c.bf16 %v7715_v22, %v7703_v25  ;;  %v10509_v25 = vpack.c.bf16 %v7597_v12, %v7557_v41  ;;  %v10511_v41 = vpack.c.bf16 %v7607_v32, %v7595_v11 }
 0x158   : > { %2439 = vmatpush.bf16.msra.mxu0 %v1982_v49  ;;  %3099 = vmatpush.bf16.msra.mxu2 %v1964_v26 }
 0x159   : > { %v1474_v34 = vpop.f32.mrf.mxu2  ;;  %v1298_v50 = vpop.f32.mrf.mxu0 }
 0x15a   : > { %v1475_v42 = vadd.f32 %v1474_v34, %v7565_v47  ;;  %v1563_v63 = vpop.f32.mrf.mxu3  ;;  %v1299_v43 = vadd.f32 %v1298_v50, %v7550_v33  ;;  %v1387_v58 = vpop.f32.mrf.mxu1 }
 0x15c   : > { %v7943_v24 = vadd.f32 %v1563_v63, %v1475_v42  ;;  %2440 = vmatpush.bf16.msra.mxu0 %v1981_v52  ;;  %v7945_v44 = vadd.f32 %v1387_v58, %v1299_v43  ;;  %3100 = vmatpush.bf16.msra.mxu2 %v1963_v45  ;;  %v10512_v43 = vld [vmem:[#allocation15_spill] sm:$0xff] }
 0x160   : > { %2441 = vmatpush.bf16.msra.mxu0 %v1980_v57  ;;  %3101 = vmatpush.bf16.msra.mxu2 %v10504_v1 }
 0x161   : > { %v1476_v27 = vpop.f32.mrf.mxu2  ;;  %v1301_v37 = vpop.f32.mrf.mxu0 }
 0x162   : > { %v1477_v28 = vadd.f32 %v1476_v27, %v7565_v47  ;;  %v1565_v23 = vpop.f32.mrf.mxu3  ;;  %v1302_v21 = vadd.f32 %v1301_v37, %v7550_v33  ;;  %v1390_v18 = vpop.f32.mrf.mxu1 }
 0x164   : > { %v7956_v62 = vadd.f32 %v1565_v23, %v1477_v28  ;;  %2442 = vmatpush.bf16.msra.mxu0 %v1979_v40  ;;  %v7958_v10 = vadd.f32 %v1390_v18, %v1302_v21  ;;  %3102 = vmatpush.bf16.msra.mxu2 %v10505_v56 }
 0x165   : > { %1616 = vmatmul.bf16.gmra.mxu0 %v7439_v54  ;;  %1705 = vmatmul.bf16.gmra.mxu1 %v7441_v55 }
 0x166   : > { %1794 = vmatmul.bf16.gmra.mxu2 %v7439_v54  ;;  %v10508_v54 = vpack.c.bf16 %v7687_v51, %v7675_v9 }
 0x167   : > { %1883 = vmatmul.bf16.gmra.mxu3 %v7441_v55 }
 0x168   : > { %2443 = vmatpush.bf16.msra.mxu0 %v10506_v7  ;;  %3103 = vmatpush.bf16.msra.mxu2 %v10507_v19 }
 0x169   : > { %v1479_v0 = vpop.f32.mrf.mxu2  ;;  %v1303_v59 = vpop.f32.mrf.mxu0 }
 0x16a   : > { %v1480_v20 = vadd.f32 %v1479_v0, %v7565_v47  ;;  %v1568_v13 = vpop.f32.mrf.mxu3  ;;  %v1304_v8 = vadd.f32 %v1303_v59, %v7550_v33  ;;  %v1392_v36 = vpop.f32.mrf.mxu1 }
 0x16c   : > { %v7977_v16 = vadd.f32 %v1568_v13, %v1480_v20  ;;  %2444 = vmatpush.bf16.msra.mxu0 %v10508_v54  ;;  %v7982_v55 = vadd.f32 %v1392_v36, %v1304_v8  ;;  %3104 = vmatpush.bf16.msra.mxu2 %v10509_v25  ;;  %v10514_v8 = vld [vmem:[#allocation17_spill] sm:$0xff]  ;;  %v10515_v54 = vld [vmem:[#allocation18_spill] sm:$0xff] }
 0x16e   : > { %v1968_v35 = vpack.c.bf16 %v7982_v55, %v7958_v10 }
 0x170   : > { %2445 = vmatpush.bf16.msra.mxu0 %v10510_v61 }
 0x171   : > { %v1481_v22 = vpop.f32.mrf.mxu2  ;;  %v1306_v30 = vpop.f32.mrf.mxu0 }
 0x172   : > { %v1482_v38 = vadd.f32 %v1481_v22, %v7565_v47  ;;  %v1570_v14 = vpop.f32.mrf.mxu3  ;;  %v1307_v9 = vadd.f32 %v1306_v30, %v7550_v33  ;;  %v1395_v51 = vpop.f32.mrf.mxu1 }
 0x174   : > { %v7994_v49 = vadd.f32 %v1570_v14, %v1482_v38  ;;  %2446 = vmatpush.bf16.msra.mxu0 %v10511_v41  ;;  %v7999_v12 = vadd.f32 %v1395_v51, %v1307_v9 }
 0x175   : > { %1621 = vmatmul.bf16.gmra.mxu0 %v7451_v2  ;;  %1710 = vmatmul.bf16.gmra.mxu1 %v7453_v3 }
 0x176   : > { %1799 = vmatmul.bf16.gmra.mxu2 %v7451_v2  ;;  %v10528_v55 = vpack.c.bf16 %v7994_v49, %v7977_v16  ;;  %v10531_v49 = vld [vmem:[#allocation30_spill] sm:$0xff] }
 0x177   : > { %1888 = vmatmul.bf16.gmra.mxu3 %v7453_v3 }
 0x179   : > { %v1484_v17 = vpop.f32.mrf.mxu2  ;;  %v1308_v53 = vpop.f32.mrf.mxu0 }
 0x17a   : > { %v1485_v15 = vadd.f32 %v1484_v17, %v7565_v47  ;;  %v1573_v26 = vpop.f32.mrf.mxu3  ;;  %v1309_v11 = vadd.f32 %v1308_v53, %v7550_v33  ;;  %v1397_v32 = vpop.f32.mrf.mxu1 }
 0x17c   : > { %v8009_v4 = vadd.f32 %v1573_v26, %v1485_v15  ;;  %v8011_v34 = vadd.f32 %v1397_v32, %v1309_v11  ;;  %v10516_v15 = vld [vmem:[#allocation19_spill] sm:$0xff]  ;;  %v10517_v26 = vld [vmem:[#allocation20_spill] sm:$0xff] }
 0x17e   : > { %v1969_v5 = vpack.c.bf16 %v8011_v34, %v7999_v12 }
 0x181   : > { %v1486_v6 = vpop.f32.mrf.mxu2  ;;  %v1311_v3 = vpop.f32.mrf.mxu0 }
 0x182   : > { %v1487_v2 = vadd.f32 %v1486_v6, %v7565_v47  ;;  %v1575_v52 = vpop.f32.mrf.mxu3  ;;  %v1312_v42 = vadd.f32 %v1311_v3, %v7550_v33  ;;  %v1400_v63 = vpop.f32.mrf.mxu1 }
 0x184   : > { %v8017_v50 = vadd.f32 %v1575_v52, %v1487_v2  ;;  %v8019_v45 = vadd.f32 %v1400_v63, %v1312_v42  ;;  %v10518_v63 = vld [vmem:[#allocation21_spill] sm:$0xff] }
 0x185   : > { %1626 = vmatmul.bf16.gmra.mxu0 %v10512_v43  ;;  %1715 = vmatmul.bf16.gmra.mxu1 %v10513_v29 }
 0x186   : > { %v1985_v58 = vpack.c.bf16 %v8017_v50, %v8009_v4  ;;  %1804 = vmatmul.bf16.gmra.mxu2 %v10512_v43  ;;  %v10519_v43 = vld [vmem:[#allocation22_spill] sm:$0xff] }
 0x187   : > { %1893 = vmatmul.bf16.gmra.mxu3 %v10513_v29 }
 0x189   : > { %v1489_v46 = vpop.f32.mrf.mxu2  ;;  %v1313_v1 = vpop.f32.mrf.mxu0 }
 0x18a   : > { %v1490_v57 = vadd.f32 %v1489_v46, %v7565_v47  ;;  %v1578_v27 = vpop.f32.mrf.mxu3  ;;  %v1314_v40 = vadd.f32 %v1313_v1, %v7550_v33  ;;  %v1402_v28 = vpop.f32.mrf.mxu1 }
 0x18c   : > { %v8029_v23 = vadd.f32 %v1578_v27, %v1490_v57  ;;  %v8031_v37 = vadd.f32 %v1402_v28, %v1314_v40 }
 0x18e   : > { %v1970_v21 = vpack.c.bf16 %v8031_v37, %v8019_v45  ;;  %v10526_v37 = vld [vmem:[#allocation28_spill] sm:$0xff] }
 0x191   : > { %v1491_v18 = vpop.f32.mrf.mxu2  ;;  %v1316_v0 = vpop.f32.mrf.mxu0 }
 0x192   : > { %v1492_v56 = vadd.f32 %v1491_v18, %v7565_v47  ;;  %v1580_v7 = vpop.f32.mrf.mxu3  ;;  %v1317_v19 = vadd.f32 %v1316_v0, %v7550_v33  ;;  %v1405_v20 = vpop.f32.mrf.mxu1 }
 0x194   : > { %v8037_v13 = vadd.f32 %v1580_v7, %v1492_v56  ;;  %v8039_v59 = vadd.f32 %v1405_v20, %v1317_v19  ;;  %v10520_v56 = vld [vmem:[#allocation23_spill] sm:$0xff]  ;;  %v10521_v7 = vld [vmem:[#allocation24_spill] sm:$0xff] }
 0x195   : > { %1631 = vmatmul.bf16.gmra.mxu0 %v10514_v8  ;;  %1720 = vmatmul.bf16.gmra.mxu1 %v10515_v54 }
 0x196   : > { %v1986_v36 = vpack.c.bf16 %v8037_v13, %v8029_v23  ;;  %1809 = vmatmul.bf16.gmra.mxu2 %v10514_v8  ;;  %v10527_v13 = vpack.c.bf16 %v7945_v44, %v7925_v39  ;;  %v10529_v39 = vpack.c.bf16 %v7956_v62, %v7943_v24 }
 0x197   : > { %1898 = vmatmul.bf16.gmra.mxu3 %v10515_v54 }
 0x199   : > { %v1494_v25 = vpop.f32.mrf.mxu2  ;;  %v1318_v38 = vpop.f32.mrf.mxu0 }
 0x19a   : > { %v1495_v61 = vadd.f32 %v1494_v25, %v7565_v47  ;;  %v1583_v22 = vpop.f32.mrf.mxu3  ;;  %v8048_v14 = vpop.f32.mrf.mxu1 }
 0x19c   : > { %v8050_v30 = vadd.f32 %v1583_v22, %v1495_v61 }
 0x1a1   : > { %v8052_v9 = vpop.f32.mrf.mxu2  ;;  %v1321_v41 = vpop.f32.mrf.mxu0 }
 0x1a2   : > { %v8054_v51 = vpop.f32.mrf.mxu3  ;;  %v1410_v17 = vpop.f32.mrf.mxu1 }
 0x1a5   : > { %1636 = vmatmul.bf16.gmra.mxu0 %v10516_v15  ;;  %1725 = vmatmul.bf16.gmra.mxu1 %v10517_v26 }
 0x1a6   : > { %1814 = vmatmul.bf16.gmra.mxu2 %v10516_v15 }
 0x1a7   : > { %1903 = vmatmul.bf16.gmra.mxu3 %v10517_v26 }
 0x1a9   : > { %v8060_v53 = vpop.f32.mrf.mxu2  ;;  %v1323_v32 = vpop.f32.mrf.mxu0 }
 0x1aa   : > { %v8062_v11 = vpop.f32.mrf.mxu3  ;;  %v1412_v6 = vpop.f32.mrf.mxu1 }
 0x1b1   : > { %v1501_v2 = vpop.f32.mrf.mxu2  ;;  %v1326_v3 = vpop.f32.mrf.mxu0 }
 0x1b2   : > { %v8064_v52 = vpop.f32.mrf.mxu3  ;;  %v1415_v42 = vpop.f32.mrf.mxu1  ;;  %v1327_v22 = vadd.f32 %v1326_v3, %v7550_v33 }
 0x1b5   : > { %1641 = vmatmul.bf16.gmra.mxu0 %v10518_v63  ;;  %1730 = vmatmul.bf16.gmra.mxu1 %v10519_v43 }
 0x1b6   : > { %1819 = vmatmul.bf16.gmra.mxu2 %v10518_v63  ;;  %v1324_v63 = vadd.f32 %v1323_v32, %v7550_v33 }
 0x1b7   : > { %1908 = vmatmul.bf16.gmra.mxu3 %v10519_v43 }
 0x1b9   : > { %v1504_v29 = vpop.f32.mrf.mxu2  ;;  %v1328_v57 = vpop.f32.mrf.mxu0 }
 0x1ba   : > { %v1593_v46 = vpop.f32.mrf.mxu3  ;;  %v1417_v27 = vpop.f32.mrf.mxu1  ;;  %v1329_v54 = vadd.f32 %v1328_v57, %v7550_v33  ;;  %v1322_v57 = vadd.f32 %v1321_v41, %v7550_v33 }
 0x1bc   : > { %v1418_v43 = vadd.f32 %v1417_v27, %v1329_v54  ;;  %v1413_v54 = vadd.f32 %v1412_v6, %v1324_v63 }
 0x1c1   : > { %v1506_v1 = vpop.f32.mrf.mxu2  ;;  %v1331_v28 = vpop.f32.mrf.mxu0 }
 0x1c2   : > { %v1595_v40 = vpop.f32.mrf.mxu3  ;;  %v1420_v18 = vpop.f32.mrf.mxu1  ;;  %v1332_v0 = vadd.f32 %v1331_v28, %v7550_v33  ;;  %v6931_v28 = vld [vmem:[%s10407_s3] sm:$0xf]  ;;  %v1507_v3 = vadd.f32 %v1506_v1, %v7565_v47 }
 0x1c4   : > { %v1421_v15 = vadd.f32 %v1420_v18, %v1332_v0  ;;  %v1319_v0 = vadd.f32 %v1318_v38, %v7550_v33  ;;  %v1596_v1 = vadd.f32 %v1595_v40, %v1507_v3  ;;  %v8097_v38 = vperm.slane %v6931_v28, 3 }
 0x1c5   : > { %1646 = vmatmul.bf16.gmra.mxu0 %v10520_v56  ;;  %1735 = vmatmul.bf16.gmra.mxu1 %v10521_v7 }
 0x1c6   : > { %1824 = vmatmul.bf16.gmra.mxu2 %v10520_v56  ;;  %v1408_v6 = vadd.f32 %v8048_v14, %v1319_v0 }
 0x1c7   : > { %1913 = vmatmul.bf16.gmra.mxu3 %v10521_v7  ;;  %v8082_v7 = vperm.slane %v6931_v28, 2 }
 0x1c9   : > { %v1509_v19 = vpop.f32.mrf.mxu2  ;;  %v1333_v8 = vpop.f32.mrf.mxu0 }
 0x1ca   : > { %v1598_v20 = vpop.f32.mrf.mxu3  ;;  %v1334_v25 = vadd.f32 %v1333_v8, %v7550_v33  ;;  %v1422_v61 = vpop.f32.mrf.mxu1  ;;  %v1510_v31 = vadd.f32 %v1509_v19, %v7565_v47  ;;  %v1416_v8 = vadd.f32 %v1415_v42, %v1327_v22  ;;  %v1505_v19 = vadd.f32 %v1504_v29, %v7565_v47  ;;  %v10523_v33 = vld [vmem:[#allocation26_spill] sm:$0xff] }
 0x1cb   : > { %v1411_v42 = vadd.f32 %v1410_v17, %v1322_v57  ;;  %v1500_v17 = vadd.f32 %v8060_v53, %v7565_v47  ;;  %v1971_v57 = vpack.c.bf16 %v1408_v6, %v8039_v59 }
 0x1cc   : > { %v1423_v26 = vadd.f32 %v1422_v61, %v1334_v25  ;;  %v1973_v25 = vpack.c.bf16 %v1418_v43, %v1416_v8  ;;  %v1594_v29 = vadd.f32 %v1593_v46, %v1505_v19 }
 0x1cd   : > { %v1589_v53 = vadd.f32 %v8062_v11, %v1500_v17 }
 0x1ce   : > { %v1974_v56 = vpack.c.bf16 %v1423_v26, %v1421_v15  ;;  %v1599_v26 = vadd.f32 %v1598_v20, %v1510_v31  ;;  %v1972_v31 = vpack.c.bf16 %v1413_v54, %v1411_v42  ;;  %v1989_v63 = vpack.c.bf16 %v1596_v1, %v1594_v29  ;;  %v10530_v42 = vld [vmem:[#allocation29_spill] sm:$0xff] }
 0x1d0   : > { %3266 = vmatpush.bf16.msra.mxu3 %v1974_v56  ;;  %v10522_v56 = vld [vmem:[#allocation25_spill] sm:$0xff] }
 0x1d1   : > { %v1511_v60 = vpop.f32.mrf.mxu2  ;;  %v1612_v27 = vpop.f32.mrf.mxu0 }
 0x1d2   : > { %v1512_v18 = vadd.f32 %v1511_v60, %v7565_v47  ;;  %v1600_v32 = vpop.f32.mrf.mxu3  ;;  %v1613_v61 = vadd.f32 %v1612_v27, %v8082_v7  ;;  %v1701_v15 = vpop.f32.mrf.mxu1  ;;  %v1502_v60 = vadd.f32 %v1501_v2, %v7565_v47  ;;  %v1497_v2 = vadd.f32 %v8052_v9, %v7565_v47 }
 0x1d4   : > { %v1601_v41 = vadd.f32 %v1600_v32, %v1512_v18  ;;  %v8091_v22 = vadd.f32 %v1701_v15, %v1613_v61  ;;  %3267 = vmatpush.bf16.msra.mxu3 %v1973_v25  ;;  %v1591_v40 = vadd.f32 %v8064_v52, %v1502_v60  ;;  %v1586_v47 = vadd.f32 %v8054_v51, %v1497_v2  ;;  %v10525_v61 = vld [vmem:[#allocation27_spill] sm:$0xff] }
 0x1d5   : > { %1651 = vmatmul.bf16.gmra.mxu0 %v10522_v56  ;;  %1740 = vmatmul.bf16.gmra.mxu1 %v10523_v33 }
 0x1d6   : > { %v1990_v48 = vpack.c.bf16 %v1601_v41, %v1599_v26  ;;  %1829 = vmatmul.bf16.gmra.mxu2 %v10522_v56  ;;  %v1988_v9 = vpack.c.bf16 %v1591_v40, %v1589_v53  ;;  %v1987_v59 = vpack.c.bf16 %v1586_v47, %v8050_v30 }
 0x1d7   : > { %1918 = vmatmul.bf16.gmra.mxu3 %v10523_v33 }
 0x1d8   : > { %2608 = vmatpush.bf16.msra.mxu1 %v1990_v48  ;;  %3268 = vmatpush.bf16.msra.mxu3 %v1972_v31 }
 0x1d9   : > { %v1790_v20 = vpop.f32.mrf.mxu2  ;;  %v1614_v14 = vpop.f32.mrf.mxu0 }
 0x1da   : > { %v1791_v43 = vadd.f32 %v1790_v20, %v8097_v38  ;;  %v1879_v28 = vpop.f32.mrf.mxu3  ;;  %v1615_v8 = vadd.f32 %v1614_v14, %v8082_v7  ;;  %v1703_v3 = vpop.f32.mrf.mxu1 }
 0x1dc   : > { %v8110_v48 = vadd.f32 %v1879_v28, %v1791_v43  ;;  %2609 = vmatpush.bf16.msra.mxu1 %v1989_v63  ;;  %v8112_v46 = vadd.f32 %v1703_v3, %v1615_v8  ;;  %3269 = vmatpush.bf16.msra.mxu3 %v1971_v57  ;;  %v10532_v57 = vld [vmem:[#allocation31_spill] sm:$0xff]  ;;  %v10533_v3 = vld [vmem:[#allocation32_spill] sm:$0xff] }
 0x1de   : > { %10524 = vst [vmem:[#allocation15_spill] sm:$0xff] %v8110_v48 }
 0x1e0   : > { %2610 = vmatpush.bf16.msra.mxu1 %v1988_v9  ;;  %3270 = vmatpush.bf16.msra.mxu3 %v1970_v21 }
 0x1e1   : > { %v1792_v18 = vpop.f32.mrf.mxu2 }
 0x1e2   : > { %v1793_v11 = vadd.f32 %v1792_v18, %v8097_v38  ;;  %v1881_v32 = vpop.f32.mrf.mxu3  ;;  %v1617_v27 = vpop.f32.mrf.mxu0 }
 0x1e3   : > { %v1618_v0 = vadd.f32 %v1617_v27, %v8082_v7  ;;  %v1706_v54 = vpop.f32.mrf.mxu1 }
 0x1e4   : > { %v8123_v51 = vadd.f32 %v1881_v32, %v1793_v11  ;;  %2611 = vmatpush.bf16.msra.mxu1 %v1987_v59  ;;  %3271 = vmatpush.bf16.msra.mxu3 %v1969_v5 }
 0x1e5   : > { %v8125_v25 = vadd.f32 %v1706_v54, %v1618_v0  ;;  %1656 = vmatmul.bf16.gmra.mxu0 %v10525_v61  ;;  %1745 = vmatmul.bf16.gmra.mxu1 %v10526_v37 }
 0x1e6   : > { %1834 = vmatmul.bf16.gmra.mxu2 %v10525_v61 }
 0x1e7   : > { %1923 = vmatmul.bf16.gmra.mxu3 %v10526_v37 }
 0x1e8   : > { %2612 = vmatpush.bf16.msra.mxu1 %v1986_v36  ;;  %3272 = vmatpush.bf16.msra.mxu3 %v1968_v35 }
 0x1e9   : > { %v1795_v21 = vpop.f32.mrf.mxu2 }
 0x1ea   : > { %v1796_v12 = vadd.f32 %v1795_v21, %v8097_v38  ;;  %v1884_v34 = vpop.f32.mrf.mxu3  ;;  %v1619_v5 = vpop.f32.mrf.mxu0 }
 0x1eb   : > { %v1620_v30 = vadd.f32 %v1619_v5, %v8082_v7  ;;  %v1708_v15 = vpop.f32.mrf.mxu1 }
 0x1ec   : > { %v8144_v19 = vadd.f32 %v1884_v34, %v1796_v12  ;;  %2613 = vmatpush.bf16.msra.mxu1 %v1985_v58  ;;  %3273 = vmatpush.bf16.msra.mxu3 %v10527_v13 }
 0x1ed   : > { %v8149_v23 = vadd.f32 %v1708_v15, %v1620_v30  ;;  %v10534_v15 = vld [vmem:[#allocation33_spill] sm:$0xff] }
 0x1f0   : > { %2614 = vmatpush.bf16.msra.mxu1 %v10528_v55  ;;  %v10535_v55 = vld [vmem:[#allocation34_spill] sm:$0xff] }
 0x1f1   : > { %v1797_v35 = vpop.f32.mrf.mxu2 }
 0x1f2   : > { %v1798_v36 = vadd.f32 %v1797_v35, %v8097_v38  ;;  %v1886_v26 = vpop.f32.mrf.mxu3  ;;  %v1622_v41 = vpop.f32.mrf.mxu0 }
 0x1f3   : > { %v1623_v4 = vadd.f32 %v1622_v41, %v8082_v7  ;;  %v1711_v50 = vpop.f32.mrf.mxu1 }
 0x1f4   : > { %v8161_v58 = vadd.f32 %v1886_v26, %v1798_v36  ;;  %2615 = vmatpush.bf16.msra.mxu1 %v10529_v39 }
 0x1f5   : > { %v8166_v44 = vadd.f32 %v1711_v50, %v1623_v4  ;;  %1661 = vmatmul.bf16.gmra.mxu0 %v10530_v42  ;;  %1750 = vmatmul.bf16.gmra.mxu1 %v10531_v49 }
 0x1f6   : > { %1839 = vmatmul.bf16.gmra.mxu2 %v10530_v42 }
 0x1f7   : > { %1928 = vmatmul.bf16.gmra.mxu3 %v10531_v49 }
 0x1f9   : > { %v1800_v56 = vpop.f32.mrf.mxu2 }
 0x1fa   : > { %v1801_v60 = vadd.f32 %v1800_v56, %v8097_v38  ;;  %v1889_v1 = vpop.f32.mrf.mxu3  ;;  %v1624_v33 = vpop.f32.mrf.mxu0 }
 0x1fb   : > { %v1625_v24 = vadd.f32 %v1624_v33, %v8082_v7  ;;  %v1713_v62 = vpop.f32.mrf.mxu1 }
 0x1fc   : > { %v8176_v6 = vadd.f32 %v1889_v1, %v1801_v60  ;;  %v10536_v60 = vld [vmem:[#allocation35_spill] sm:$0xff]  ;;  %v10537_v1 = vld [vmem:[#allocation36_spill] sm:$0xff] }
 0x1fd   : > { %v8178_v31 = vadd.f32 %v1713_v62, %v1625_v24 }
 0x201   : > { %v1802_v29 = vpop.f32.mrf.mxu2 }
 0x202   : > { %v1803_v20 = vadd.f32 %v1802_v29, %v8097_v38  ;;  %v1891_v2 = vpop.f32.mrf.mxu3  ;;  %v1627_v40 = vpop.f32.mrf.mxu0 }
 0x203   : > { %v1628_v63 = vadd.f32 %v1627_v40, %v8082_v7  ;;  %v1716_v43 = vpop.f32.mrf.mxu1 }
 0x204   : > { %v8184_v28 = vadd.f32 %v1891_v2, %v1803_v20 }
 0x205   : > { %v8186_v14 = vadd.f32 %v1716_v43, %v1628_v63  ;;  %1666 = vmatmul.bf16.gmra.mxu0 %v10532_v57  ;;  %1755 = vmatmul.bf16.gmra.mxu1 %v10533_v3  ;;  %v10538_v43 = vld [vmem:[#allocation37_spill] sm:$0xff] }
 0x206   : > { %1844 = vmatmul.bf16.gmra.mxu2 %v10532_v57  ;;  %v10539_v57 = vld [vmem:[#allocation38_spill] sm:$0xff] }
 0x207   : > { %1933 = vmatmul.bf16.gmra.mxu3 %v10533_v3 }
 0x209   : > { %v1805_v53 = vpop.f32.mrf.mxu2 }
 0x20a   : > { %v1806_v47 = vadd.f32 %v1805_v53, %v8097_v38  ;;  %v1894_v9 = vpop.f32.mrf.mxu3  ;;  %v1629_v18 = vpop.f32.mrf.mxu0 }
 0x20b   : > { %v1630_v59 = vadd.f32 %v1629_v18, %v8082_v7  ;;  %v1718_v11 = vpop.f32.mrf.mxu1 }
 0x20c   : > { %v8196_v32 = vadd.f32 %v1894_v9, %v1806_v47 }
 0x20d   : > { %v8198_v27 = vadd.f32 %v1718_v11, %v1630_v59 }
 0x211   : > { %v1807_v54 = vpop.f32.mrf.mxu2 }
 0x212   : > { %v1808_v61 = vadd.f32 %v1807_v54, %v8097_v38  ;;  %v1896_v37 = vpop.f32.mrf.mxu3  ;;  %v1632_v21 = vpop.f32.mrf.mxu0 }
 0x213   : > { %v1633_v12 = vadd.f32 %v1632_v21, %v8082_v7  ;;  %v1721_v34 = vpop.f32.mrf.mxu1 }
 0x214   : > { %v8204_v5 = vadd.f32 %v1896_v37, %v1808_v61  ;;  %v10540_v61 = vld [vmem:[#allocation39_spill] sm:$0xff]  ;;  %v10541_v37 = vld [vmem:[#allocation40_spill] sm:$0xff] }
 0x215   : > { %v8206_v30 = vadd.f32 %v1721_v34, %v1633_v12  ;;  %1671 = vmatmul.bf16.gmra.mxu0 %v10534_v15  ;;  %1760 = vmatmul.bf16.gmra.mxu1 %v10535_v55 }
 0x216   : > { %1849 = vmatmul.bf16.gmra.mxu2 %v10534_v15 }
 0x217   : > { %1938 = vmatmul.bf16.gmra.mxu3 %v10535_v55 }
 0x219   : > { %v1810_v35 = vpop.f32.mrf.mxu2 }
 0x21a   : > { %v1811_v36 = vadd.f32 %v1810_v35, %v8097_v38  ;;  %v1899_v26 = vpop.f32.mrf.mxu3  ;;  %v1634_v41 = vpop.f32.mrf.mxu0 }
 0x21b   : > { %v8215_v4 = vpop.f32.mrf.mxu1 }
 0x21c   : > { %v8217_v50 = vadd.f32 %v1899_v26, %v1811_v36 }
 0x221   : > { %v8219_v39 = vpop.f32.mrf.mxu2 }
 0x222   : > { %v8221_v42 = vpop.f32.mrf.mxu3  ;;  %v1637_v49 = vpop.f32.mrf.mxu0 }
 0x223   : > { %v8223_v56 = vpop.f32.mrf.mxu1 }
 0x225   : > { %1676 = vmatmul.bf16.gmra.mxu0 %v10536_v60  ;;  %1765 = vmatmul.bf16.gmra.mxu1 %v10537_v1 }
 0x226   : > { %1854 = vmatmul.bf16.gmra.mxu2 %v10536_v60 }
 0x227   : > { %1943 = vmatmul.bf16.gmra.mxu3 %v10537_v1 }
 0x229   : > { %v8229_v33 = vpop.f32.mrf.mxu2 }
 0x22a   : > { %v8231_v24 = vpop.f32.mrf.mxu3  ;;  %v1639_v62 = vpop.f32.mrf.mxu0 }
 0x22b   : > { %v1728_v29 = vpop.f32.mrf.mxu1 }
 0x231   : > { %v8233_v20 = vpop.f32.mrf.mxu2 }
 0x232   : > { %v8235_v2 = vpop.f32.mrf.mxu3  ;;  %v1642_v40 = vpop.f32.mrf.mxu0 }
 0x233   : > { %v1731_v63 = vpop.f32.mrf.mxu1  ;;  %v1643_v26 = vadd.f32 %v1642_v40, %v8082_v7  ;;  %v6602_v40 = vld [vmem:[%s10408_s4 + $0x4] sm:$0xf0] }
 0x235   : > { %1681 = vmatmul.bf16.gmra.mxu0 %v10538_v43  ;;  %1770 = vmatmul.bf16.gmra.mxu1 %v10539_v57 }
 0x236   : > { %1859 = vmatmul.bf16.gmra.mxu2 %v10538_v43  ;;  %v5700_v43 = vld [vmem:[%s10408_s4] sm:$0xf] }
 0x237   : > { %1948 = vmatmul.bf16.gmra.mxu3 %v10539_v57  ;;  %v5444_v57 = vld [vmem:[%s10409_s5] sm:$0xf]  ;;  %v5701_v8 = vor.u32 %v6602_v40, %v5700_v43  ;;  %v5454_v40 = vld [vmem:[%s10409_s5 + $0x18] sm:$0xf0] }
 0x239   : > { %v1820_v3 = vpop.f32.mrf.mxu2 }
 0x23a   : > { %v8241_v53 = vpop.f32.mrf.mxu3  ;;  %v1644_v47 = vpop.f32.mrf.mxu0 }
 0x23b   : > { %v1733_v9 = vpop.f32.mrf.mxu1  ;;  %v1645_v55 = vadd.f32 %v1644_v47, %v8082_v7  ;;  %v1640_v47 = vadd.f32 %v1639_v62, %v8082_v7  ;;  %v6601_v62 = vld [vmem:[%s10408_s4 + $0x4] sm:$0xf] }
 0x23d   : > { %v1729_v13 = vadd.f32 %v1728_v29, %v1640_v47 }
 0x241   : > { %v1822_v18 = vpop.f32.mrf.mxu2 }
 0x242   : > { %v1911_v59 = vpop.f32.mrf.mxu3  ;;  %v1647_v11 = vpop.f32.mrf.mxu0  ;;  %v1823_v45 = vadd.f32 %v1822_v18, %v8097_v38  ;;  %v1818_v18 = vadd.f32 %v8233_v20, %v8097_v38 }
 0x243   : > { %v1736_v54 = vpop.f32.mrf.mxu1  ;;  %v1648_v21 = vadd.f32 %v1647_v11, %v8082_v7  ;;  %v6666_v11 = vld [vmem:[%s10409_s5 + $0x4] sm:$0xf0] }
 0x244   : > { %v1912_v43 = vadd.f32 %v1911_v59, %v1823_v45  ;;  %v1907_v45 = vadd.f32 %v8235_v2, %v1818_v18 }
 0x245   : > { %1686 = vmatmul.bf16.gmra.mxu0 %v10540_v61  ;;  %1775 = vmatmul.bf16.gmra.mxu1 %v10541_v37  ;;  %v1737_v60 = vadd.f32 %v1736_v54, %v1648_v21  ;;  %v6665_v54 = vld [vmem:[%s10409_s5 + $0x4] sm:$0xf]  ;;  %v5446_v21 = vld [vmem:[%s10409_s5 + $0x8] sm:$0xf0] }
 0x246   : > { %1864 = vmatmul.bf16.gmra.mxu2 %v10540_v61  ;;  %v1734_v61 = vadd.f32 %v1733_v9, %v1645_v55  ;;  %v5702_v9 = vld [vmem:[%s10408_s4 + $0x8] sm:$0xf0]  ;;  %v1635_v55 = vadd.f32 %v1634_v41, %v8082_v7  ;;  %v5449_v10 = vor.u32 %v6665_v54, %v5446_v21  ;;  %v6603_v54 = vld [vmem:[%s10408_s4 + $0x14] sm:$0xf]  ;;  %v5710_v21 = vld [vmem:[%s10408_s4 + $0x18] sm:$0xf0] }
 0x247   : > { %1953 = vmatmul.bf16.gmra.mxu3 %v10541_v37  ;;  %v5705_v41 = vor.u32 %v6601_v62, %v5702_v9  ;;  %v10542_v62 = vpack.c.bf16 %v8198_v27, %v8186_v14  ;;  %v10543_v14 = vpack.c.bf16 %v8178_v31, %v8166_v44 }
 0x249   : > { %v1825_v12 = vpop.f32.mrf.mxu2 }
 0x24a   : > { %v1914_v34 = vpop.f32.mrf.mxu3  ;;  %v1649_v15 = vpop.f32.mrf.mxu0 }
 0x24b   : > { %v1650_v35 = vadd.f32 %v1649_v15, %v8082_v7  ;;  %v1738_v36 = vpop.f32.mrf.mxu1  ;;  %v1826_v15 = vadd.f32 %v1825_v12, %v8097_v38 }
 0x24d   : > { %v1739_v1 = vadd.f32 %v1738_v36, %v1650_v35  ;;  %v1638_v35 = vadd.f32 %v1637_v49, %v8082_v7  ;;  %v1732_v36 = vadd.f32 %v1731_v63, %v1643_v26  ;;  %v1821_v49 = vadd.f32 %v1820_v3, %v8097_v38 }
 0x24e   : > { %v1915_v63 = vadd.f32 %v1914_v34, %v1826_v15  ;;  %v5708_v34 = vld [vmem:[%s10408_s4 + $0x10] sm:$0xf] }
 0x24f   : > { %v3506_v37 = vpack.c.bf16 %v1739_v1, %v1737_v60  ;;  %v5445_v1 = vor.u32 %v6666_v11, %v5444_v57  ;;  %v3505_v17 = vpack.c.bf16 %v1734_v61, %v1732_v36  ;;  %v1727_v57 = vadd.f32 %v8223_v56, %v1638_v35 }
 0x250   : > { %v1910_v56 = vadd.f32 %v8241_v53, %v1821_v49 }
 0x251   : > { %v1827_v60 = vpop.f32.mrf.mxu2  ;;  %4637 = vmatpush.bf16.msrb.mxu2 %v3506_v37  ;;  %v3504_v47 = vpack.c.bf16 %v1729_v13, %v1727_v57  ;;  %v6667_v37 = vld [vmem:[%s10409_s5 + $0x14] sm:$0xf] }
 0x252   : > { %v1828_v12 = vadd.f32 %v1827_v60, %v8097_v38  ;;  %v1916_v16 = vpop.f32.mrf.mxu3  ;;  %v1652_v52 = vpop.f32.mrf.mxu0 }
 0x253   : > { %v1653_v0 = vadd.f32 %v1652_v52, %v8082_v7  ;;  %v1741_v48 = vpop.f32.mrf.mxu1  ;;  %v1724_v52 = vadd.f32 %v8215_v4, %v1635_v55 }
 0x254   : > { %v1917_v26 = vadd.f32 %v1916_v16, %v1828_v12  ;;  %v1816_v16 = vadd.f32 %v8229_v33, %v8097_v38  ;;  %v5457_v12 = vor.u32 %v6667_v37, %v5454_v40 }
 0x255   : > { %v8284_v11 = vadd.f32 %v1741_v48, %v1653_v0  ;;  %4638 = vmatpush.bf16.msrb.mxu2 %v3505_v17  ;;  %2447 = vmatmul.bf16.vlgmr.msra.gmra.mxu0 %v5445_v1  ;;  %v1813_v17 = vadd.f32 %v8219_v39, %v8097_v38  ;;  %v3521_v0 = vpack.c.bf16 %v1912_v43, %v1910_v56 }
 0x256   : > { %v3522_v29 = vpack.c.bf16 %v1917_v26, %v1915_v63  ;;  %3105 = vmatmul.bf16.vlgmr.msra.gmra.mxu2 %v5701_v8  ;;  %2616 = vmatmul.bf16.vlgmr.msra.gmra.mxu1 %v5449_v10  ;;  %v3503_v13 = vpack.c.bf16 %v1724_v52, %v8206_v30  ;;  %v1905_v3 = vadd.f32 %v8231_v24, %v1816_v16  ;;  %v5452_v30 = vld [vmem:[%s10409_s5 + $0x10] sm:$0xf]  ;;  %v6668_v24 = vld [vmem:[%s10409_s5 + $0x14] sm:$0xf0] }
 0x257   : > { %3274 = vmatmul.bf16.vlgmr.msra.gmra.mxu3 %v5705_v41  ;;  %v1902_v39 = vadd.f32 %v8221_v42, %v1813_v17  ;;  %v6604_v42 = vld [vmem:[%s10408_s4 + $0x14] sm:$0xf0]  ;;  %v5453_v9 = vor.u32 %v6668_v24, %v5452_v30  ;;  %v5713_v63 = vor.u32 %v6603_v54, %v5710_v21  ;;  %v10545_v43 = vpack.c.bf16 %v8149_v23, %v8125_v25  ;;  %v5716_v25 = vld [vmem:[%s10408_s4 + $0x20] sm:$0xf] }
 0x258   : > { %3979 = vmatpush.bf16.msrb.mxu0 %v3522_v29  ;;  %v3520_v2 = vpack.c.bf16 %v1907_v45, %v1905_v3  ;;  %v5709_v1 = vor.u32 %v6604_v42, %v5708_v34  ;;  %v10546_v56 = vpack.c.bf16 %v8184_v28, %v8176_v6  ;;  %v5460_v23 = vld [vmem:[%s10409_s5 + $0x20] sm:$0xf]  ;;  %v5462_v28 = vld [vmem:[%s10409_s5 + $0x28] sm:$0xf0]  ;;  %v10548_v17 = vpack.c.bf16 %v8161_v58, %v8144_v19  ;;  %v6605_v45 = vld [vmem:[%s10408_s4 + $0x24] sm:$0xf] }
 0x259   : > { %v1830_v48 = vpop.f32.mrf.mxu2  ;;  %4639 = vmatpush.bf16.msrb.mxu2 %v3504_v47  ;;  %v3519_v55 = vpack.c.bf16 %v1902_v39, %v8217_v50  ;;  %v10544_v50 = vpack.c.bf16 %v8204_v5, %v8196_v32  ;;  %v10547_v5 = vpack.c.bf16 %v8112_v46, %v8091_v22  ;;  %v6606_v22 = vld [vmem:[%s10408_s4 + $0x24] sm:$0xf0]  ;;  %v6669_v46 = vld [vmem:[%s10409_s5 + $0x24] sm:$0xf] }
 0x25a   : > { %v1831_v10 = vadd.f32 %v1830_v48, %v8097_v38  ;;  %v1919_v8 = vpop.f32.mrf.mxu3  ;;  %v1654_v4 = vpop.f32.mrf.mxu0  ;;  %v6670_v48 = vld [vmem:[%s10409_s5 + $0x24] sm:$0xf0]  ;;  %v5465_v3 = vor.u32 %v6669_v46, %v5462_v28  ;;  %v10549_v34 = vld [vmem:[#allocation15_spill] sm:$0xff] }
 0x25b   : > { %v1655_v20 = vadd.f32 %v1654_v4, %v8082_v7  ;;  %v1743_v33 = vpop.f32.mrf.mxu1  ;;  %v10550_v30 = vpack.c.bf16 %v8123_v51, %v10549_v34 }
 0x25c   : > { %v8299_v53 = vadd.f32 %v1919_v8, %v1831_v10  ;;  %3980 = vmatpush.bf16.msrb.mxu0 %v3521_v0  ;;  %v5718_v0 = vld [vmem:[%s10408_s4 + $0x28] sm:$0xf0]  ;;  %v5461_v8 = vor.u32 %v6670_v48, %v5460_v23 }
 0x25d   : > { %v8301_v59 = vadd.f32 %v1743_v33, %v1655_v20  ;;  %4640 = vmatpush.bf16.msrb.mxu2 %v3503_v13  ;;  %v5717_v33 = vor.u32 %v6606_v22, %v5716_v25  ;;  %v5721_v58 = vor.u32 %v6605_v45, %v5718_v0 }
 0x260   : > { %3981 = vmatpush.bf16.msrb.mxu0 %v3520_v2 }
 0x261   : > { %v1832_v15 = vpop.f32.mrf.mxu2  ;;  %4641 = vmatpush.bf16.msrb.mxu2 %v10542_v62 }
 0x262   : > { %v1833_v35 = vadd.f32 %v1832_v15, %v8097_v38  ;;  %v1921_v36 = vpop.f32.mrf.mxu3  ;;  %v1657_v60 = vpop.f32.mrf.mxu0 }
 0x263   : > { %v1658_v41 = vadd.f32 %v1657_v60, %v8082_v7  ;;  %v1746_v49 = vpop.f32.mrf.mxu1 }
 0x264   : > { %v8336_v26 = vadd.f32 %v1921_v36, %v1833_v35  ;;  %3982 = vmatpush.bf16.msrb.mxu0 %v3519_v55  ;;  %v5724_v55 = vld [vmem:[%s10408_s4 + $0x30] sm:$0xf]  ;;  %v6672_v36 = vld [vmem:[%s10409_s5 + $0x34] sm:$0xf0] }
 0x265   : > { %v8338_v57 = vadd.f32 %v1746_v49, %v1658_v41  ;;  %4642 = vmatpush.bf16.msrb.mxu2 %v10543_v14  ;;  %2452 = vmatmul.bf16.gmra.mxu0 %v5453_v9  ;;  %v5468_v35 = vld [vmem:[%s10409_s5 + $0x30] sm:$0xf]  ;;  %v5470_v41 = vld [vmem:[%s10409_s5 + $0x38] sm:$0xf0]  ;;  %v6607_v49 = vld [vmem:[%s10408_s4 + $0x34] sm:$0xf] }
 0x266   : > { %3110 = vmatmul.bf16.gmra.mxu2 %v5709_v1  ;;  %2621 = vmatmul.bf16.gmra.mxu1 %v5457_v12  ;;  %v6608_v1 = vld [vmem:[%s10408_s4 + $0x34] sm:$0xf0]  ;;  %v6671_v12 = vld [vmem:[%s10409_s5 + $0x34] sm:$0xf] }
 0x267   : > { %3279 = vmatmul.bf16.gmra.mxu3 %v5713_v63  ;;  %v5726_v63 = vld [vmem:[%s10408_s4 + $0x38] sm:$0xf0] }
 0x268   : > { %3983 = vmatpush.bf16.msrb.mxu0 %v10544_v50  ;;  %v5469_v50 = vor.u32 %v6672_v36, %v5468_v35 }
 0x269   : > { %v1835_v18 = vpop.f32.mrf.mxu2  ;;  %4643 = vmatpush.bf16.msrb.mxu2 %v10545_v43 }
 0x26a   : > { %v1836_v29 = vadd.f32 %v1835_v18, %v8097_v38  ;;  %v1924_v44 = vpop.f32.mrf.mxu3  ;;  %v1659_v31 = vpop.f32.mrf.mxu0 }
 0x26b   : > { %v1660_v52 = vadd.f32 %v1659_v31, %v8082_v7  ;;  %v1748_v47 = vpop.f32.mrf.mxu1  ;;  %v5473_v31 = vor.u32 %v6671_v12, %v5470_v41 }
 0x26c   : > { %v8353_v16 = vadd.f32 %v1924_v44, %v1836_v29  ;;  %3984 = vmatpush.bf16.msrb.mxu0 %v10546_v56  ;;  %v5725_v44 = vor.u32 %v6608_v1, %v5724_v55  ;;  %v5729_v56 = vor.u32 %v6607_v49, %v5726_v63 }
 0x26d   : > { %v8358_v32 = vadd.f32 %v1748_v47, %v1660_v52  ;;  %4644 = vmatpush.bf16.msrb.mxu2 %v10547_v5 }
 0x270   : > { %3985 = vmatpush.bf16.msrb.mxu0 %v10548_v17 }
 0x271   : > { %v1837_v10 = vpop.f32.mrf.mxu2 }
 0x272   : > { %v1838_v4 = vadd.f32 %v1837_v10, %v8097_v38  ;;  %v1926_v13 = vpop.f32.mrf.mxu3  ;;  %v1662_v20 = vpop.f32.mrf.mxu0 }
 0x273   : > { %v1663_v39 = vadd.f32 %v1662_v20, %v8082_v7  ;;  %v1751_v19 = vpop.f32.mrf.mxu1 }
 0x274   : > { %v8394_v2 = vadd.f32 %v1926_v13, %v1838_v4  ;;  %3986 = vmatpush.bf16.msrb.mxu0 %v10550_v30  ;;  %v5476_v4 = vld [vmem:[%s10409_s5 + $0x40] sm:$0xf]  ;;  %v6674_v13 = vld [vmem:[%s10409_s5 + $0x44] sm:$0xf0] }
 0x275   : > { %v8399_v24 = vadd.f32 %v1751_v19, %v1663_v39  ;;  %2457 = vmatmul.bf16.gmra.mxu0 %v5461_v8  ;;  %v5732_v8 = vld [vmem:[%s10408_s4 + $0x40] sm:$0xf]  ;;  %v5478_v39 = vld [vmem:[%s10409_s5 + $0x48] sm:$0xf0]  ;;  %v6609_v19 = vld [vmem:[%s10408_s4 + $0x44] sm:$0xf]  ;;  %v5477_v30 = vor.u32 %v6674_v13, %v5476_v4 }
 0x276   : > { %3115 = vmatmul.bf16.gmra.mxu2 %v5717_v33  ;;  %2626 = vmatmul.bf16.gmra.mxu1 %v5465_v3  ;;  %v6610_v33 = vld [vmem:[%s10408_s4 + $0x44] sm:$0xf0]  ;;  %v6673_v3 = vld [vmem:[%s10409_s5 + $0x44] sm:$0xf] }
 0x277   : > { %3284 = vmatmul.bf16.gmra.mxu3 %v5721_v58  ;;  %v5734_v58 = vld [vmem:[%s10408_s4 + $0x48] sm:$0xf0] }
 0x278   : > { %v5737_v35 = vor.u32 %v6609_v19, %v5734_v58  ;;  %v5748_v58 = vld [vmem:[%s10408_s4 + $0x60] sm:$0xf] }
 0x279   : > { %v1840_v37 = vpop.f32.mrf.mxu2 }
 0x27a   : > { %v1841_v40 = vadd.f32 %v1840_v37, %v8097_v38  ;;  %v1929_v54 = vpop.f32.mrf.mxu3  ;;  %v1664_v21 = vpop.f32.mrf.mxu0 }
 0x27b   : > { %v1665_v15 = vadd.f32 %v1664_v21, %v8082_v7  ;;  %v1753_v62 = vpop.f32.mrf.mxu1  ;;  %v5733_v21 = vor.u32 %v6610_v33, %v5732_v8 }
 0x27c   : > { %v8405_v9 = vadd.f32 %v1929_v54, %v1841_v40 }
 0x27d   : > { %v8407_v51 = vadd.f32 %v1753_v62, %v1665_v15  ;;  %v5481_v15 = vor.u32 %v6673_v3, %v5478_v39 }
 0x281   : > { %v1842_v14 = vpop.f32.mrf.mxu2 }
 0x282   : > { %v1843_v18 = vadd.f32 %v1842_v14, %v8097_v38  ;;  %v1931_v43 = vpop.f32.mrf.mxu3  ;;  %v1667_v29 = vpop.f32.mrf.mxu0 }
 0x283   : > { %v1668_v52 = vadd.f32 %v1667_v29, %v8082_v7  ;;  %v1756_v47 = vpop.f32.mrf.mxu1  ;;  %v5484_v29 = vld [vmem:[%s10409_s5 + $0x50] sm:$0xf] }
 0x284   : > { %v8437_v5 = vadd.f32 %v1931_v43, %v1843_v18  ;;  %v5740_v43 = vld [vmem:[%s10408_s4 + $0x50] sm:$0xf] }
 0x285   : > { %v8439_v25 = vadd.f32 %v1756_v47, %v1668_v52  ;;  %2462 = vmatmul.bf16.gmra.mxu0 %v5469_v50  ;;  %v6675_v52 = vld [vmem:[%s10409_s5 + $0x54] sm:$0xf]  ;;  %v5486_v47 = vld [vmem:[%s10409_s5 + $0x58] sm:$0xf0] }
 0x286   : > { %3120 = vmatmul.bf16.gmra.mxu2 %v5725_v44  ;;  %2631 = vmatmul.bf16.gmra.mxu1 %v5473_v31  ;;  %v6676_v44 = vld [vmem:[%s10409_s5 + $0x54] sm:$0xf0]  ;;  %v5489_v8 = vor.u32 %v6675_v52, %v5486_v47 }
 0x287   : > { %3289 = vmatmul.bf16.gmra.mxu3 %v5729_v56  ;;  %v6612_v31 = vld [vmem:[%s10408_s4 + $0x54] sm:$0xf0]  ;;  %v6611_v56 = vld [vmem:[%s10408_s4 + $0x54] sm:$0xf] }
 0x289   : > { %v1845_v48 = vpop.f32.mrf.mxu2 }
 0x28a   : > { %v1846_v22 = vadd.f32 %v1845_v48, %v8097_v38  ;;  %v1934_v46 = vpop.f32.mrf.mxu3  ;;  %v1669_v28 = vpop.f32.mrf.mxu0  ;;  %v5742_v48 = vld [vmem:[%s10408_s4 + $0x58] sm:$0xf0] }
 0x28b   : > { %v1670_v17 = vadd.f32 %v1669_v28, %v8082_v7  ;;  %v1758_v45 = vpop.f32.mrf.mxu1  ;;  %v5745_v13 = vor.u32 %v6611_v56, %v5742_v48  ;;  %v5756_v56 = vld [vmem:[%s10408_s4 + $0x70] sm:$0xf] }
 0x28c   : > { %v8445_v0 = vadd.f32 %v1934_v46, %v1846_v22  ;;  %v5485_v46 = vor.u32 %v6676_v44, %v5484_v29  ;;  %v5500_v48 = vld [vmem:[%s10409_s5 + $0x70] sm:$0xf] }
 0x28d   : > { %v8447_v10 = vadd.f32 %v1758_v45, %v1670_v17  ;;  %v5741_v45 = vor.u32 %v6612_v31, %v5740_v43 }
 0x291   : > { %v1847_v34 = vpop.f32.mrf.mxu2 }
 0x292   : > { %v1848_v37 = vadd.f32 %v1847_v34, %v8097_v38  ;;  %v1936_v40 = vpop.f32.mrf.mxu3  ;;  %v1672_v54 = vpop.f32.mrf.mxu0  ;;  %v5492_v34 = vld [vmem:[%s10409_s5 + $0x60] sm:$0xf] }
 0x293   : > { %v1673_v62 = vadd.f32 %v1672_v54, %v8082_v7  ;;  %v1761_v55 = vpop.f32.mrf.mxu1  ;;  %v5494_v54 = vld [vmem:[%s10409_s5 + $0x68] sm:$0xf0] }
 0x294   : > { %v8477_v36 = vadd.f32 %v1936_v40, %v1848_v37  ;;  %v6614_v37 = vld [vmem:[%s10408_s4 + $0x64] sm:$0xf0]  ;;  %v6677_v40 = vld [vmem:[%s10409_s5 + $0x64] sm:$0xf] }
 0x295   : > { %v8479_v1 = vadd.f32 %v1761_v55, %v1673_v62  ;;  %2467 = vmatmul.bf16.gmra.mxu0 %v5477_v30  ;;  %v6678_v30 = vld [vmem:[%s10409_s5 + $0x64] sm:$0xf0] }
 0x296   : > { %3125 = vmatmul.bf16.gmra.mxu2 %v5733_v21  ;;  %2636 = vmatmul.bf16.gmra.mxu1 %v5481_v15  ;;  %v6613_v21 = vld [vmem:[%s10408_s4 + $0x64] sm:$0xf]  ;;  %v5750_v15 = vld [vmem:[%s10408_s4 + $0x68] sm:$0xf0]  ;;  %v5493_v55 = vor.u32 %v6678_v30, %v5492_v34  ;;  %v5758_v34 = vld [vmem:[%s10408_s4 + $0x78] sm:$0xf0] }
 0x297   : > { %3294 = vmatmul.bf16.gmra.mxu3 %v5737_v35  ;;  %v5753_v29 = vor.u32 %v6613_v21, %v5750_v15 }
 0x299   : > { %v1850_v41 = vpop.f32.mrf.mxu2 }
 0x29a   : > { %v1851_v49 = vadd.f32 %v1850_v41, %v8097_v38  ;;  %v1939_v63 = vpop.f32.mrf.mxu3  ;;  %v8484_v14 = vpop.f32.mrf.mxu0 }
 0x29b   : > { %v8486_v50 = vpop.f32.mrf.mxu1  ;;  %v1675_v6 = vadd.f32 %v8484_v14, %v8082_v7 }
 0x29c   : > { %v8488_v18 = vadd.f32 %v1939_v63, %v1851_v49  ;;  %v5749_v49 = vor.u32 %v6614_v37, %v5748_v58  ;;  %v5497_v63 = vor.u32 %v6677_v40, %v5494_v54  ;;  %v6615_v58 = vld [vmem:[%s10408_s4 + $0x74] sm:$0xf] }
 0x29d   : > { %v1764_v14 = vadd.f32 %v8486_v50, %v1675_v6 }
 0x2a1   : > { %v8514_v22 = vpop.f32.mrf.mxu2 }
 0x2a2   : > { %v8516_v28 = vpop.f32.mrf.mxu3  ;;  %v8518_v17 = vpop.f32.mrf.mxu0 }
 0x2a3   : > { %v8520_v4 = vpop.f32.mrf.mxu1 }
 0x2a5   : > { %2472 = vmatmul.bf16.gmra.mxu0 %v5485_v46  ;;  %v6680_v46 = vld [vmem:[%s10409_s5 + $0x74] sm:$0xf0] }
 0x2a6   : > { %3130 = vmatmul.bf16.gmra.mxu2 %v5741_v45  ;;  %2641 = vmatmul.bf16.gmra.mxu1 %v5489_v8  ;;  %v6616_v45 = vld [vmem:[%s10408_s4 + $0x74] sm:$0xf0]  ;;  %v6679_v8 = vld [vmem:[%s10409_s5 + $0x74] sm:$0xf]  ;;  %v5501_v37 = vor.u32 %v6680_v46, %v5500_v48 }
 0x2a7   : > { %3299 = vmatmul.bf16.gmra.mxu3 %v5745_v13  ;;  %v5502_v13 = vld [vmem:[%s10409_s5 + $0x78] sm:$0xf0]  ;;  %v5757_v21 = vor.u32 %v6616_v45, %v5756_v56 }
 0x2a8   : > { %v5505_v15 = vor.u32 %v6679_v8, %v5502_v13  ;;  %v5764_v8 = vld [vmem:[%s10408_s4 + $0x80] sm:$0xf] }
 0x2a9   : > { %v8522_v33 = vpop.f32.mrf.mxu2  ;;  %v5508_v13 = vld [vmem:[%s10409_s5 + $0x80] sm:$0xf] }
 0x2aa   : > { %v8524_v3 = vpop.f32.mrf.mxu3  ;;  %v1679_v39 = vpop.f32.mrf.mxu0 }
 0x2ab   : > { %v8526_v19 = vpop.f32.mrf.mxu1 }
 0x2b1   : > { %v8552_v62 = vpop.f32.mrf.mxu2 }
 0x2b2   : > { %v8554_v35 = vpop.f32.mrf.mxu3  ;;  %v1682_v41 = vpop.f32.mrf.mxu0 }
 0x2b3   : > { %v1771_v43 = vpop.f32.mrf.mxu1  ;;  %v1683_v46 = vadd.f32 %v1682_v41, %v8082_v7  ;;  %v6681_v41 = vld [vmem:[%s10409_s5 + $0x84] sm:$0xf] }
 0x2b5   : > { %2477 = vmatmul.bf16.gmra.mxu0 %v5493_v55 }
 0x2b6   : > { %3135 = vmatmul.bf16.gmra.mxu2 %v5749_v49  ;;  %2646 = vmatmul.bf16.gmra.mxu1 %v5497_v63  ;;  %v5761_v49 = vor.u32 %v6615_v58, %v5758_v34  ;;  %v6682_v58 = vld [vmem:[%s10409_s5 + $0x84] sm:$0xf0] }
 0x2b7   : > { %3304 = vmatmul.bf16.gmra.mxu3 %v5753_v29 }
 0x2b9   : > { %v1860_v44 = vpop.f32.mrf.mxu2 }
 0x2ba   : > { %v8556_v31 = vpop.f32.mrf.mxu3  ;;  %v1684_v52 = vpop.f32.mrf.mxu0 }
 0x2bb   : > { %v1773_v47 = vpop.f32.mrf.mxu1  ;;  %v1685_v61 = vadd.f32 %v1684_v52, %v8082_v7  ;;  %v1680_v52 = vadd.f32 %v1679_v39, %v8082_v7  ;;  %v6617_v39 = vld [vmem:[%s10408_s4 + $0x84] sm:$0xf] }
 0x2bd   : > { %v1769_v12 = vadd.f32 %v8526_v19, %v1680_v52 }
 0x2c1   : > { %v1862_v30 = vpop.f32.mrf.mxu2 }
 0x2c2   : > { %v1951_v40 = vpop.f32.mrf.mxu3  ;;  %v1687_v54 = vpop.f32.mrf.mxu0 }
 0x2c3   : > { %v1776_v55 = vpop.f32.mrf.mxu1  ;;  %v1688_v63 = vadd.f32 %v1687_v54, %v8082_v7 }
 0x2c5   : > { %2482 = vmatmul.bf16.gmra.mxu0 %v5501_v37  ;;  %v1777_v56 = vadd.f32 %v1776_v55, %v1688_v63  ;;  %v5510_v37 = vld [vmem:[%s10409_s5 + $0x88] sm:$0xf0]  ;;  %v5509_v55 = vor.u32 %v6682_v58, %v5508_v13 }
 0x2c6   : > { %3140 = vmatmul.bf16.gmra.mxu2 %v5757_v21  ;;  %2651 = vmatmul.bf16.gmra.mxu1 %v5505_v15  ;;  %v1772_v21 = vadd.f32 %v1771_v43, %v1683_v46  ;;  %v1861_v43 = vadd.f32 %v1860_v44, %v8097_v38 }
 0x2c7   : > { %3309 = vmatmul.bf16.gmra.mxu3 %v5761_v49  ;;  %v1863_v49 = vadd.f32 %v1862_v30, %v8097_v38 }
 0x2c8   : > { %v1950_v44 = vadd.f32 %v8556_v31, %v1861_v43 }
 0x2c9   : > { %v1865_v29 = vpop.f32.mrf.mxu2  ;;  %v1952_v58 = vadd.f32 %v1951_v40, %v1863_v49 }
 0x2ca   : > { %v1954_v27 = vpop.f32.mrf.mxu3  ;;  %v1689_v42 = vpop.f32.mrf.mxu0  ;;  %v1866_v54 = vadd.f32 %v1865_v29, %v8097_v38 }
 0x2cb   : > { %v1690_v23 = vadd.f32 %v1689_v42, %v8082_v7  ;;  %v1778_v48 = vpop.f32.mrf.mxu1  ;;  %v1774_v42 = vadd.f32 %v1773_v47, %v1685_v61  ;;  %v5766_v61 = vld [vmem:[%s10408_s4 + $0x88] sm:$0xf0]  ;;  %v1678_v47 = vadd.f32 %v8518_v17, %v8082_v7 }
 0x2cc   : > { %v5769_v17 = vor.u32 %v6617_v39, %v5766_v61  ;;  %v1955_v46 = vadd.f32 %v1954_v27, %v1866_v54  ;;  %v1856_v27 = vadd.f32 %v8522_v33, %v8097_v38  ;;  %v5774_v54 = vld [vmem:[%s10408_s4 + $0x98] sm:$0xf0]  ;;  %v10551_v39 = vpack.c.bf16 %v8447_v10, %v8439_v25 }
 0x2cd   : > { %v1779_v45 = vadd.f32 %v1778_v48, %v1690_v23  ;;  %v6618_v23 = vld [vmem:[%s10408_s4 + $0x84] sm:$0xf0]  ;;  %v3513_v60 = vpack.c.bf16 %v1774_v42, %v1772_v21  ;;  %v1767_v30 = vadd.f32 %v8520_v4, %v1678_v47  ;;  %v5772_v42 = vld [vmem:[%s10408_s4 + $0x90] sm:$0xf]  ;;  %v10553_v10 = vpack.c.bf16 %v8477_v36, %v8445_v0  ;;  %v5780_v0 = vld [vmem:[%s10408_s4 + $0xa0] sm:$0xf] }
 0x2ce   : > { %v5765_v48 = vor.u32 %v6618_v23, %v5764_v8  ;;  %v1858_v8 = vadd.f32 %v8552_v62, %v8097_v38  ;;  %v1945_v33 = vadd.f32 %v8524_v3, %v1856_v27  ;;  %v6684_v3 = vld [vmem:[%s10409_s5 + $0x94] sm:$0xf0]  ;;  %v5518_v23 = vld [vmem:[%s10409_s5 + $0x98] sm:$0xf0] }
 0x2cf   : > { %v3514_v34 = vpack.c.bf16 %v1779_v45, %v1777_v56  ;;  %v5513_v45 = vor.u32 %v6681_v41, %v5510_v37  ;;  %v3512_v19 = vpack.c.bf16 %v1769_v12, %v1767_v30  ;;  %v3511_v12 = vpack.c.bf16 %v1764_v14, %v8479_v1  ;;  %v5516_v1 = vld [vmem:[%s10409_s5 + $0x90] sm:$0xf]  ;;  %v6619_v37 = vld [vmem:[%s10408_s4 + $0x94] sm:$0xf] }
 0x2d0   : > { %v1947_v62 = vadd.f32 %v8554_v35, %v1858_v8  ;;  %v6620_v35 = vld [vmem:[%s10408_s4 + $0x94] sm:$0xf0]  ;;  %v5517_v47 = vor.u32 %v6684_v3, %v5516_v1  ;;  %v10555_v30 = vpack.c.bf16 %v8437_v5, %v8405_v9  ;;  %v6622_v9 = vld [vmem:[%s10408_s4 + $0xa4] sm:$0xf0]  ;;  %v10557_v5 = vpack.c.bf16 %v8394_v2, %v8353_v16  ;;  %v6687_v1 = vld [vmem:[%s10409_s5 + $0xb4] sm:$0xf] }
 0x2d1   : > { %v1867_v15 = vpop.f32.mrf.mxu2  ;;  %4806 = vmatpush.bf16.msrb.mxu3 %v3514_v34  ;;  %v5773_v49 = vor.u32 %v6620_v35, %v5772_v42  ;;  %v10558_v2 = vpack.c.bf16 %v8336_v26, %v8299_v53  ;;  %v5532_v53 = vld [vmem:[%s10409_s5 + $0xb0] sm:$0xf]  ;;  %v6688_v26 = vld [vmem:[%s10409_s5 + $0xb4] sm:$0xf0]  ;;  %v5534_v3 = vld [vmem:[%s10409_s5 + $0xb8] sm:$0xf0] }
 0x2d2   : > { %v1868_v63 = vadd.f32 %v1867_v15, %v8097_v38  ;;  %v1956_v29 = vpop.f32.mrf.mxu3  ;;  %v2448_v56 = vpop.f32.mrf.mxu0 }
 0x2d3   : > { %v2617_v20 = vpop.f32.mrf.mxu1 }
 0x2d4   : > { %v1957_v13 = vadd.f32 %v1956_v29, %v1868_v63  ;;  %v2618_v7 = vadd.f32 %v2617_v20, %v2448_v56  ;;  %v3529_v20 = vpack.c.bf16 %v1952_v58, %v1950_v44  ;;  %v5777_v56 = vor.u32 %v6619_v37, %v5774_v54 }
 0x2d5   : > { %4807 = vmatpush.bf16.msrb.mxu3 %v3513_v60  ;;  %2487 = vmatmul.bf16.gmra.mxu0 %v5509_v55  ;;  %v1853_v60 = vadd.f32 %v8514_v22, %v8097_v38  ;;  %v3528_v22 = vpack.c.bf16 %v1947_v62, %v1945_v33  ;;  %v10556_v58 = vpack.c.bf16 %v8301_v59, %v8284_v11  ;;  %v6685_v11 = vld [vmem:[%s10409_s5 + $0xa4] sm:$0xf]  ;;  %v5526_v59 = vld [vmem:[%s10409_s5 + $0xa8] sm:$0xf0] }
 0x2d6   : > { %v3530_v34 = vpack.c.bf16 %v1957_v13, %v1955_v46  ;;  %3145 = vmatmul.bf16.gmra.mxu2 %v5765_v48  ;;  %2656 = vmatmul.bf16.gmra.mxu1 %v5513_v45  ;;  %v5529_v62 = vor.u32 %v6685_v11, %v5526_v59  ;;  %v5533_v37 = vor.u32 %v6688_v26, %v5532_v53 }
 0x2d7   : > { %3314 = vmatmul.bf16.gmra.mxu3 %v5769_v17  ;;  %v1942_v38 = vadd.f32 %v8516_v28, %v1853_v60  ;;  %v6683_v28 = vld [vmem:[%s10409_s5 + $0x94] sm:$0xf]  ;;  %v10552_v17 = vpack.c.bf16 %v8407_v51, %v8399_v24 }
 0x2d8   : > { %4148 = vmatpush.bf16.msrb.mxu1 %v3530_v34  ;;  %v5521_v29 = vor.u32 %v6683_v28, %v5518_v23  ;;  %v6621_v34 = vld [vmem:[%s10408_s4 + $0xa4] sm:$0xf]  ;;  %v6623_v28 = vld [vmem:[%s10408_s4 + $0xb4] sm:$0xf]  ;;  %v5790_v23 = vld [vmem:[%s10408_s4 + $0xb8] sm:$0xf0] }
 0x2d9   : > { %4808 = vmatpush.bf16.msrb.mxu3 %v3512_v19  ;;  %v3106_v4 = vpop.f32.mrf.mxu2  ;;  %v3527_v21 = vpack.c.bf16 %v1942_v38, %v8488_v18  ;;  %v10554_v18 = vpack.c.bf16 %v8358_v32, %v8338_v57  ;;  %v5524_v57 = vld [vmem:[%s10409_s5 + $0xa0] sm:$0xf]  ;;  %v6686_v32 = vld [vmem:[%s10409_s5 + $0xa4] sm:$0xf0]  ;;  %v5788_v38 = vld [vmem:[%s10408_s4 + $0xb0] sm:$0xf] }
 0x2da   : > { %v3107_v40 = vadd.f32 %v3106_v4, %v2618_v7  ;;  %v3275_v52 = vpop.f32.mrf.mxu3  ;;  %v2450_v6 = vpop.f32.mrf.mxu0  ;;  %v5782_v7 = vld [vmem:[%s10408_s4 + $0xa8] sm:$0xf0]  ;;  %v5525_v19 = vor.u32 %v6686_v32, %v5524_v57  ;;  %v5781_v4 = vor.u32 %v6622_v9, %v5780_v0 }
 0x2db   : > { %v2619_v50 = vpop.f32.mrf.mxu1  ;;  %v5785_v16 = vor.u32 %v6621_v34, %v5782_v7 }
 0x2dc   : > { %4149 = vmatpush.bf16.msrb.mxu1 %v3529_v20  ;;  %v3276_v31 = vadd.f32 %v3275_v52, %v3107_v40  ;;  %v2620_v41 = vadd.f32 %v2619_v50, %v2450_v6 }
 0x2dd   : > { %4809 = vmatpush.bf16.msrb.mxu3 %v3511_v12 }
 0x2de   : > { %3435 = vst [vmem:[%s8637_s0 + $0x8] sm:$0xff] %v3276_v31 }
 0x2e0   : > { %4150 = vmatpush.bf16.msrb.mxu1 %v3528_v22  ;;  %v6624_v22 = vld [vmem:[%s10408_s4 + $0xb4] sm:$0xf0] }
 0x2e1   : > { %4810 = vmatpush.bf16.msrb.mxu3 %v10551_v39  ;;  %v3108_v61 = vpop.f32.mrf.mxu2 }
 0x2e2   : > { %v3109_v15 = vadd.f32 %v3108_v61, %v2620_v41  ;;  %v3277_v55 = vpop.f32.mrf.mxu3  ;;  %v2453_v63 = vpop.f32.mrf.mxu0  ;;  %v5789_v61 = vor.u32 %v6624_v22, %v5788_v38 }
 0x2e3   : > { %v2622_v48 = vpop.f32.mrf.mxu1 }
 0x2e4   : > { %4151 = vmatpush.bf16.msrb.mxu1 %v3527_v21  ;;  %v3278_v45 = vadd.f32 %v3277_v55, %v3109_v15  ;;  %v2623_v25 = vadd.f32 %v2622_v48, %v2453_v63  ;;  %v5537_v21 = vor.u32 %v6687_v1, %v5534_v3  ;;  %v5793_v55 = vor.u32 %v6623_v28, %v5790_v23 }
 0x2e5   : > { %4811 = vmatpush.bf16.msrb.mxu3 %v10552_v17  ;;  %2492 = vmatmul.bf16.gmra.mxu0 %v5517_v47 }
 0x2e6   : > { %3436 = vst [vmem:[%s8637_s0 + $0x18] sm:$0xff] %v3278_v45  ;;  %3150 = vmatmul.bf16.gmra.mxu2 %v5773_v49  ;;  %2661 = vmatmul.bf16.gmra.mxu1 %v5521_v29 }
 0x2e7   : > { %3319 = vmatmul.bf16.gmra.mxu3 %v5777_v56 }
 0x2e8   : > { %4152 = vmatpush.bf16.msrb.mxu1 %v10553_v10  ;;  %v5796_v10 = vld [vmem:[%s10408_s4 + $0xc0] sm:$0xf] }
 0x2e9   : > { %4812 = vmatpush.bf16.msrb.mxu3 %v10554_v18  ;;  %v3111_v43 = vpop.f32.mrf.mxu2  ;;  %v5540_v18 = vld [vmem:[%s10409_s5 + $0xc0] sm:$0xf] }
 0x2ea   : > { %v3112_v46 = vadd.f32 %v3111_v43, %v2623_v25  ;;  %v3280_v13 = vpop.f32.mrf.mxu3  ;;  %v2455_v24 = vpop.f32.mrf.mxu0  ;;  %v6690_v43 = vld [vmem:[%s10409_s5 + $0xc4] sm:$0xf0] }
 0x2eb   : > { %v2624_v51 = vpop.f32.mrf.mxu1  ;;  %v5541_v0 = vor.u32 %v6690_v43, %v5540_v18 }
 0x2ec   : > { %4153 = vmatpush.bf16.msrb.mxu1 %v10555_v30  ;;  %v3281_v8 = vadd.f32 %v3280_v13, %v3112_v46  ;;  %v2625_v36 = vadd.f32 %v2624_v51, %v2455_v24  ;;  %v6626_v46 = vld [vmem:[%s10408_s4 + $0xc4] sm:$0xf0]  ;;  %v6689_v13 = vld [vmem:[%s10409_s5 + $0xc4] sm:$0xf]  ;;  %v5542_v24 = vld [vmem:[%s10409_s5 + $0xc8] sm:$0xf0] }
 0x2ed   : > { %4813 = vmatpush.bf16.msrb.mxu3 %v10556_v58  ;;  %v6625_v30 = vld [vmem:[%s10408_s4 + $0xc4] sm:$0xf]  ;;  %v5797_v9 = vor.u32 %v6626_v46, %v5796_v10  ;;  %v5545_v59 = vor.u32 %v6689_v13, %v5542_v24 }
 0x2ee   : > { %3437 = vst [vmem:[%s8637_s0 + $0x28] sm:$0xff] %v3281_v8  ;;  %v5798_v8 = vld [vmem:[%s10408_s4 + $0xc8] sm:$0xf0] }
 0x2f0   : > { %4154 = vmatpush.bf16.msrb.mxu1 %v10557_v5 }
 0x2f1   : > { %v3113_v14 = vpop.f32.mrf.mxu2 }
 0x2f2   : > { %v3114_v27 = vadd.f32 %v3113_v14, %v2625_v36  ;;  %v3282_v44 = vpop.f32.mrf.mxu3  ;;  %v2458_v60 = vpop.f32.mrf.mxu0  ;;  %v5801_v36 = vor.u32 %v6625_v30, %v5798_v8 }
 0x2f3   : > { %v2627_v20 = vpop.f32.mrf.mxu1 }
 0x2f4   : > { %4155 = vmatpush.bf16.msrb.mxu1 %v10558_v2  ;;  %v3283_v40 = vadd.f32 %v3282_v44, %v3114_v27  ;;  %v2628_v52 = vadd.f32 %v2627_v20, %v2458_v60  ;;  %v5548_v20 = vld [vmem:[%s10409_s5 + $0xd0] sm:$0xf]  ;;  %v6628_v2 = vld [vmem:[%s10408_s4 + $0xd4] sm:$0xf0] }
 0x2f5   : > { %2497 = vmatmul.bf16.gmra.mxu0 %v5525_v19 }
 0x2f6   : > { %3438 = vst [vmem:[%s8637_s0 + $0x38] sm:$0xff] %v3283_v40  ;;  %3155 = vmatmul.bf16.gmra.mxu2 %v5781_v4  ;;  %2666 = vmatmul.bf16.gmra.mxu1 %v5529_v62  ;;  %v5804_v62 = vld [vmem:[%s10408_s4 + $0xd0] sm:$0xf]  ;;  %v6691_v40 = vld [vmem:[%s10409_s5 + $0xd4] sm:$0xf] }
 0x2f7   : > { %3324 = vmatmul.bf16.gmra.mxu3 %v5785_v16  ;;  %v6692_v16 = vld [vmem:[%s10409_s5 + $0xd4] sm:$0xf0]  ;;  %v5805_v53 = vor.u32 %v6628_v2, %v5804_v62 }
 0x2f9   : > { %v3116_v6 = vpop.f32.mrf.mxu2 }
 0x2fa   : > { %v3117_v12 = vadd.f32 %v3116_v6, %v2628_v52  ;;  %v3285_v50 = vpop.f32.mrf.mxu3  ;;  %v2460_v33 = vpop.f32.mrf.mxu0  ;;  %v5550_v52 = vld [vmem:[%s10409_s5 + $0xd8] sm:$0xf0] }
 0x2fb   : > { %v2629_v31 = vpop.f32.mrf.mxu1  ;;  %v5553_v22 = vor.u32 %v6691_v40, %v5550_v52 }
 0x2fc   : > { %v3286_v42 = vadd.f32 %v3285_v50, %v3117_v12  ;;  %v2630_v35 = vadd.f32 %v2629_v31, %v2460_v33  ;;  %v6627_v12 = vld [vmem:[%s10408_s4 + $0xd4] sm:$0xf]  ;;  %v5806_v50 = vld [vmem:[%s10408_s4 + $0xd8] sm:$0xf0]  ;;  %v5549_v31 = vor.u32 %v6692_v16, %v5548_v20 }
 0x2fd   : > { %v5809_v3 = vor.u32 %v6627_v12, %v5806_v50 }
 0x2fe   : > { %3439 = vst [vmem:[%s8637_s0 + $0x88] sm:$0xff] %v3286_v42 }
 0x301   : > { %v3118_v41 = vpop.f32.mrf.mxu2 }
 0x302   : > { %v3119_v54 = vadd.f32 %v3118_v41, %v2630_v35  ;;  %v3287_v39 = vpop.f32.mrf.mxu3  ;;  %v2463_v47 = vpop.f32.mrf.mxu0 }
 0x303   : > { %v2632_v15 = vpop.f32.mrf.mxu1 }
 0x304   : > { %v3288_v49 = vadd.f32 %v3287_v39, %v3119_v54  ;;  %v2633_v63 = vadd.f32 %v2632_v15, %v2463_v47  ;;  %v5812_v47 = vld [vmem:[%s10408_s4 + $0xe0] sm:$0xf]  ;;  %v6694_v15 = vld [vmem:[%s10409_s5 + $0xe4] sm:$0xf0] }
 0x305   : > { %2502 = vmatmul.bf16.gmra.mxu0 %v5533_v37 }
 0x306   : > { %3440 = vst [vmem:[%s8637_s0 + $0x98] sm:$0xff] %v3288_v49  ;;  %3160 = vmatmul.bf16.gmra.mxu2 %v5789_v61  ;;  %2671 = vmatmul.bf16.gmra.mxu1 %v5537_v21  ;;  %v5556_v21 = vld [vmem:[%s10409_s5 + $0xe0] sm:$0xf]  ;;  %v6693_v49 = vld [vmem:[%s10409_s5 + $0xe4] sm:$0xf] }
 0x307   : > { %3329 = vmatmul.bf16.gmra.mxu3 %v5793_v55  ;;  %v6630_v55 = vld [vmem:[%s10408_s4 + $0xe4] sm:$0xf0] }
 0x308   : > { %v5813_v18 = vor.u32 %v6630_v55, %v5812_v47 }
 0x309   : > { %v3121_v29 = vpop.f32.mrf.mxu2 }
 0x30a   : > { %v3122_v48 = vadd.f32 %v3121_v29, %v2633_v63  ;;  %v3290_v56 = vpop.f32.mrf.mxu3  ;;  %v2465_v45 = vpop.f32.mrf.mxu0  ;;  %v5558_v63 = vld [vmem:[%s10409_s5 + $0xe8] sm:$0xf0] }
 0x30b   : > { %v2634_v17 = vpop.f32.mrf.mxu1  ;;  %v5561_v46 = vor.u32 %v6693_v49, %v5558_v63 }
 0x30c   : > { %v3291_v25 = vadd.f32 %v3290_v56, %v3122_v48  ;;  %v2635_v51 = vadd.f32 %v2634_v17, %v2465_v45  ;;  %v6629_v48 = vld [vmem:[%s10408_s4 + $0xe4] sm:$0xf]  ;;  %v5814_v56 = vld [vmem:[%s10408_s4 + $0xe8] sm:$0xf0]  ;;  %v5557_v17 = vor.u32 %v6694_v15, %v5556_v21 }
 0x30d   : > { %v5817_v24 = vor.u32 %v6629_v48, %v5814_v56 }
 0x30e   : > { %3441 = vst [vmem:[%s8637_s0 + $0xa8] sm:$0xff] %v3291_v25 }
 0x311   : > { %v3123_v58 = vpop.f32.mrf.mxu2 }
 0x312   : > { %v3124_v57 = vadd.f32 %v3123_v58, %v2635_v51  ;;  %v3292_v32 = vpop.f32.mrf.mxu3  ;;  %v2468_v11 = vpop.f32.mrf.mxu0 }
 0x313   : > { %v2637_v5 = vpop.f32.mrf.mxu1 }
 0x314   : > { %v3293_v34 = vadd.f32 %v3292_v32, %v3124_v57  ;;  %v2638_v7 = vadd.f32 %v2637_v5, %v2468_v11  ;;  %v5820_v11 = vld [vmem:[%s10408_s4 + $0xf0] sm:$0xf]  ;;  %v6696_v5 = vld [vmem:[%s10409_s5 + $0xf4] sm:$0xf0] }
 0x315   : > { %2507 = vmatmul.bf16.gmra.mxu0 %v5541_v0 }
 0x316   : > { %3442 = vst [vmem:[%s8637_s0 + $0xb8] sm:$0xff] %v3293_v34  ;;  %3165 = vmatmul.bf16.gmra.mxu2 %v5797_v9  ;;  %2676 = vmatmul.bf16.gmra.mxu1 %v5545_v59  ;;  %v5564_v59 = vld [vmem:[%s10409_s5 + $0xf0] sm:$0xf]  ;;  %v6695_v34 = vld [vmem:[%s10409_s5 + $0xf4] sm:$0xf] }
 0x317   : > { %3334 = vmatmul.bf16.gmra.mxu3 %v5801_v36  ;;  %v6632_v36 = vld [vmem:[%s10408_s4 + $0xf4] sm:$0xf0] }
 0x318   : > { %v5821_v20 = vor.u32 %v6632_v36, %v5820_v11 }
 0x319   : > { %v3126_v14 = vpop.f32.mrf.mxu2 }
 0x31a   : > { %v3127_v19 = vadd.f32 %v3126_v14, %v2638_v7  ;;  %v3295_v27 = vpop.f32.mrf.mxu3  ;;  %v2470_v44 = vpop.f32.mrf.mxu0  ;;  %v5566_v7 = vld [vmem:[%s10409_s5 + $0xf8] sm:$0xf0] }
 0x31b   : > { %v2639_v4 = vpop.f32.mrf.mxu1  ;;  %v5569_v2 = vor.u32 %v6695_v34, %v5566_v7 }
 0x31c   : > { %v3296_v60 = vadd.f32 %v3295_v27, %v3127_v19  ;;  %v2640_v6 = vadd.f32 %v2639_v4, %v2470_v44  ;;  %v6631_v19 = vld [vmem:[%s10408_s4 + $0xf4] sm:$0xf]  ;;  %v5822_v27 = vld [vmem:[%s10408_s4 + $0xf8] sm:$0xf0]  ;;  %v5565_v4 = vor.u32 %v6696_v5, %v5564_v59 }
 0x31d   : > { %v5825_v52 = vor.u32 %v6631_v19, %v5822_v27 }
 0x31e   : > { %3443 = vst [vmem:[%s8637_s0 + $0x108] sm:$0xff] %v3296_v60 }
 0x321   : > { %v3128_v33 = vpop.f32.mrf.mxu2 }
 0x322   : > { %v3129_v42 = vadd.f32 %v3128_v33, %v2640_v6  ;;  %v3297_v38 = vpop.f32.mrf.mxu3  ;;  %v2473_v26 = vpop.f32.mrf.mxu0 }
 0x323   : > { %v2642_v1 = vpop.f32.mrf.mxu1 }
 0x324   : > { %v3298_v35 = vadd.f32 %v3297_v38, %v3129_v42  ;;  %v2643_v28 = vadd.f32 %v2642_v1, %v2473_v26  ;;  %v5828_v26 = vld [vmem:[%s10408_s4 + $0x100] sm:$0xf]  ;;  %v6698_v1 = vld [vmem:[%s10409_s5 + $0x104] sm:$0xf0] }
 0x325   : > { %2512 = vmatmul.bf16.gmra.mxu0 %v5549_v31 }
 0x326   : > { %3444 = vst [vmem:[%s8637_s0 + $0x118] sm:$0xff] %v3298_v35  ;;  %3170 = vmatmul.bf16.gmra.mxu2 %v5805_v53  ;;  %2681 = vmatmul.bf16.gmra.mxu1 %v5553_v22  ;;  %v5572_v22 = vld [vmem:[%s10409_s5 + $0x100] sm:$0xf]  ;;  %v6697_v35 = vld [vmem:[%s10409_s5 + $0x104] sm:$0xf] }
 0x327   : > { %3339 = vmatmul.bf16.gmra.mxu3 %v5809_v3  ;;  %v6634_v3 = vld [vmem:[%s10408_s4 + $0x104] sm:$0xf0] }
 0x328   : > { %v5829_v21 = vor.u32 %v6634_v3, %v5828_v26 }
 0x329   : > { %v3131_v23 = vpop.f32.mrf.mxu2 }
 0x32a   : > { %v3132_v41 = vadd.f32 %v3131_v23, %v2643_v28  ;;  %v3300_v37 = vpop.f32.mrf.mxu3  ;;  %v2475_v54 = vpop.f32.mrf.mxu0  ;;  %v5574_v28 = vld [vmem:[%s10409_s5 + $0x108] sm:$0xf0] }
 0x32b   : > { %v2644_v39 = vpop.f32.mrf.mxu1  ;;  %v5577_v55 = vor.u32 %v6697_v35, %v5574_v28 }
 0x32c   : > { %v3301_v61 = vadd.f32 %v3300_v37, %v3132_v41  ;;  %v2645_v29 = vadd.f32 %v2644_v39, %v2475_v54  ;;  %v6633_v41 = vld [vmem:[%s10408_s4 + $0x104] sm:$0xf]  ;;  %v5830_v37 = vld [vmem:[%s10408_s4 + $0x108] sm:$0xf0]  ;;  %v5573_v39 = vor.u32 %v6698_v1, %v5572_v22 }
 0x32d   : > { %v5833_v63 = vor.u32 %v6633_v41, %v5830_v37 }
 0x32e   : > { %3445 = vst [vmem:[%s8637_s0 + $0x128] sm:$0xff] %v3301_v61 }
 0x331   : > { %v3133_v45 = vpop.f32.mrf.mxu2 }
 0x332   : > { %v3134_v25 = vadd.f32 %v3133_v45, %v2645_v29  ;;  %v3302_v10 = vpop.f32.mrf.mxu3  ;;  %v2478_v43 = vpop.f32.mrf.mxu0 }
 0x333   : > { %v2647_v13 = vpop.f32.mrf.mxu1 }
 0x334   : > { %v3303_v51 = vadd.f32 %v3302_v10, %v3134_v25  ;;  %v2648_v30 = vadd.f32 %v2647_v13, %v2478_v43  ;;  %v5836_v43 = vld [vmem:[%s10408_s4 + $0x110] sm:$0xf]  ;;  %v6700_v13 = vld [vmem:[%s10409_s5 + $0x114] sm:$0xf0] }
 0x335   : > { %2517 = vmatmul.bf16.gmra.mxu0 %v5557_v17 }
 0x336   : > { %3446 = vst [vmem:[%s8637_s0 + $0x138] sm:$0xff] %v3303_v51  ;;  %3175 = vmatmul.bf16.gmra.mxu2 %v5813_v18  ;;  %2686 = vmatmul.bf16.gmra.mxu1 %v5561_v46  ;;  %v5580_v46 = vld [vmem:[%s10409_s5 + $0x110] sm:$0xf]  ;;  %v6699_v51 = vld [vmem:[%s10409_s5 + $0x114] sm:$0xf] }
 0x337   : > { %3344 = vmatmul.bf16.gmra.mxu3 %v5817_v24  ;;  %v6636_v24 = vld [vmem:[%s10408_s4 + $0x114] sm:$0xf0] }
 0x338   : > { %v5837_v59 = vor.u32 %v6636_v24, %v5836_v43 }
 0x339   : > { %v3136_v8 = vpop.f32.mrf.mxu2 }
 0x33a   : > { %v3137_v58 = vadd.f32 %v3136_v8, %v2648_v30  ;;  %v3305_v0 = vpop.f32.mrf.mxu3  ;;  %v2480_v57 = vpop.f32.mrf.mxu0  ;;  %v5582_v30 = vld [vmem:[%s10409_s5 + $0x118] sm:$0xf0] }
 0x33b   : > { %v2649_v32 = vpop.f32.mrf.mxu1  ;;  %v5585_v36 = vor.u32 %v6699_v51, %v5582_v30 }
 0x33c   : > { %v3306_v9 = vadd.f32 %v3305_v0, %v3137_v58  ;;  %v2650_v14 = vadd.f32 %v2649_v32, %v2480_v57  ;;  %v6635_v58 = vld [vmem:[%s10408_s4 + $0x114] sm:$0xf]  ;;  %v5838_v0 = vld [vmem:[%s10408_s4 + $0x118] sm:$0xf0]  ;;  %v5581_v32 = vor.u32 %v6700_v13, %v5580_v46 }
 0x33d   : > { %v5841_v7 = vor.u32 %v6635_v58, %v5838_v0 }
 0x33e   : > { %3447 = vst [vmem:[%s8637_s0 + $0x188] sm:$0xff] %v3306_v9 }
 0x341   : > { %v3138_v44 = vpop.f32.mrf.mxu2 }
 0x342   : > { %v3139_v60 = vadd.f32 %v3138_v44, %v2650_v14  ;;  %v3307_v62 = vpop.f32.mrf.mxu3  ;;  %v2483_v16 = vpop.f32.mrf.mxu0 }
 0x343   : > { %v2652_v40 = vpop.f32.mrf.mxu1 }
 0x344   : > { %v3308_v6 = vadd.f32 %v3307_v62, %v3139_v60  ;;  %v2653_v12 = vadd.f32 %v2652_v40, %v2483_v16  ;;  %v5844_v16 = vld [vmem:[%s10408_s4 + $0x120] sm:$0xf]  ;;  %v6702_v40 = vld [vmem:[%s10409_s5 + $0x124] sm:$0xf0] }
 0x345   : > { %2522 = vmatmul.bf16.gmra.mxu0 %v5565_v4 }
 0x346   : > { %3448 = vst [vmem:[%s8637_s0 + $0x198] sm:$0xff] %v3308_v6  ;;  %3180 = vmatmul.bf16.gmra.mxu2 %v5821_v20  ;;  %2691 = vmatmul.bf16.gmra.mxu1 %v5569_v2  ;;  %v5588_v2 = vld [vmem:[%s10409_s5 + $0x120] sm:$0xf]  ;;  %v6701_v6 = vld [vmem:[%s10409_s5 + $0x124] sm:$0xf] }
 0x347   : > { %3349 = vmatmul.bf16.gmra.mxu3 %v5825_v52  ;;  %v6638_v52 = vld [vmem:[%s10408_s4 + $0x124] sm:$0xf0] }
 0x348   : > { %v5845_v22 = vor.u32 %v6638_v52, %v5844_v16 }
 0x349   : > { %v3141_v50 = vpop.f32.mrf.mxu2 }
 0x34a   : > { %v3142_v33 = vadd.f32 %v3141_v50, %v2653_v12  ;;  %v3310_v31 = vpop.f32.mrf.mxu3  ;;  %v2485_v42 = vpop.f32.mrf.mxu0  ;;  %v5590_v12 = vld [vmem:[%s10409_s5 + $0x128] sm:$0xf0] }
 0x34b   : > { %v2654_v38 = vpop.f32.mrf.mxu1  ;;  %v5593_v3 = vor.u32 %v6701_v6, %v5590_v12 }
 0x34c   : > { %v3311_v53 = vadd.f32 %v3310_v31, %v3142_v33  ;;  %v2655_v23 = vadd.f32 %v2654_v38, %v2485_v42  ;;  %v6637_v33 = vld [vmem:[%s10408_s4 + $0x124] sm:$0xf]  ;;  %v5846_v31 = vld [vmem:[%s10408_s4 + $0x128] sm:$0xf0]  ;;  %v5589_v38 = vor.u32 %v6702_v40, %v5588_v2 }
 0x34d   : > { %v5849_v28 = vor.u32 %v6637_v33, %v5846_v31 }
 0x34e   : > { %3449 = vst [vmem:[%s8637_s0 + $0x1a8] sm:$0xff] %v3311_v53 }
 0x351   : > { %v3143_v54 = vpop.f32.mrf.mxu2 }
 0x352   : > { %v3144_v61 = vadd.f32 %v3143_v54, %v2655_v23  ;;  %v3312_v47 = vpop.f32.mrf.mxu3  ;;  %v2488_v15 = vpop.f32.mrf.mxu0 }
 0x353   : > { %v2657_v49 = vpop.f32.mrf.mxu1 }
 0x354   : > { %v3313_v29 = vadd.f32 %v3312_v47, %v3144_v61  ;;  %v2658_v48 = vadd.f32 %v2657_v49, %v2488_v15  ;;  %v5852_v15 = vld [vmem:[%s10408_s4 + $0x130] sm:$0xf]  ;;  %v6704_v49 = vld [vmem:[%s10409_s5 + $0x134] sm:$0xf0] }
 0x355   : > { %2527 = vmatmul.bf16.gmra.mxu0 %v5573_v39 }
 0x356   : > { %3450 = vst [vmem:[%s8637_s0 + $0x1b8] sm:$0xff] %v3313_v29  ;;  %3185 = vmatmul.bf16.gmra.mxu2 %v5829_v21  ;;  %2696 = vmatmul.bf16.gmra.mxu1 %v5577_v55  ;;  %v5596_v55 = vld [vmem:[%s10409_s5 + $0x130] sm:$0xf]  ;;  %v6703_v29 = vld [vmem:[%s10409_s5 + $0x134] sm:$0xf] }
 0x357   : > { %3354 = vmatmul.bf16.gmra.mxu3 %v5833_v63  ;;  %v6640_v63 = vld [vmem:[%s10408_s4 + $0x134] sm:$0xf0] }
 0x358   : > { %v5853_v46 = vor.u32 %v6640_v63, %v5852_v15 }
 0x359   : > { %v3146_v56 = vpop.f32.mrf.mxu2 }
 0x35a   : > { %v3147_v45 = vadd.f32 %v3146_v56, %v2658_v48  ;;  %v3315_v17 = vpop.f32.mrf.mxu3  ;;  %v2490_v25 = vpop.f32.mrf.mxu0  ;;  %v5598_v48 = vld [vmem:[%s10409_s5 + $0x138] sm:$0xf0] }
 0x35b   : > { %v2659_v10 = vpop.f32.mrf.mxu1  ;;  %v5601_v24 = vor.u32 %v6703_v29, %v5598_v48 }
 0x35c   : > { %v3316_v18 = vadd.f32 %v3315_v17, %v3147_v45  ;;  %v2660_v8 = vadd.f32 %v2659_v10, %v2490_v25  ;;  %v6639_v45 = vld [vmem:[%s10408_s4 + $0x134] sm:$0xf]  ;;  %v5854_v17 = vld [vmem:[%s10408_s4 + $0x138] sm:$0xf0]  ;;  %v5597_v10 = vor.u32 %v6704_v49, %v5596_v55 }
 0x35d   : > { %v5857_v30 = vor.u32 %v6639_v45, %v5854_v17 }
 0x35e   : > { %3451 = vst [vmem:[%s8637_s0 + $0x208] sm:$0xff] %v3316_v18 }
 0x361   : > { %v3148_v57 = vpop.f32.mrf.mxu2 }
 0x362   : > { %v3149_v9 = vadd.f32 %v3148_v57, %v2660_v8  ;;  %v3317_v11 = vpop.f32.mrf.mxu3  ;;  %v2493_v5 = vpop.f32.mrf.mxu0 }
 0x363   : > { %v2662_v34 = vpop.f32.mrf.mxu1 }
 0x364   : > { %v3318_v14 = vadd.f32 %v3317_v11, %v3149_v9  ;;  %v2663_v19 = vadd.f32 %v2662_v34, %v2493_v5  ;;  %v5860_v5 = vld [vmem:[%s10408_s4 + $0x140] sm:$0xf]  ;;  %v6706_v34 = vld [vmem:[%s10409_s5 + $0x144] sm:$0xf0] }
 0x365   : > { %2532 = vmatmul.bf16.gmra.mxu0 %v5581_v32 }
 0x366   : > { %3452 = vst [vmem:[%s8637_s0 + $0x218] sm:$0xff] %v3318_v14  ;;  %3190 = vmatmul.bf16.gmra.mxu2 %v5837_v59  ;;  %2701 = vmatmul.bf16.gmra.mxu1 %v5585_v36  ;;  %v5604_v36 = vld [vmem:[%s10409_s5 + $0x140] sm:$0xf]  ;;  %v6705_v14 = vld [vmem:[%s10409_s5 + $0x144] sm:$0xf] }
 0x367   : > { %3359 = vmatmul.bf16.gmra.mxu3 %v5841_v7  ;;  %v6642_v7 = vld [vmem:[%s10408_s4 + $0x144] sm:$0xf0] }
 0x368   : > { %v5861_v2 = vor.u32 %v6642_v7, %v5860_v5 }
 0x369   : > { %v3151_v27 = vpop.f32.mrf.mxu2 }
 0x36a   : > { %v3152_v44 = vadd.f32 %v3151_v27, %v2663_v19  ;;  %v3320_v4 = vpop.f32.mrf.mxu3  ;;  %v2495_v60 = vpop.f32.mrf.mxu0  ;;  %v5606_v19 = vld [vmem:[%s10409_s5 + $0x148] sm:$0xf0] }
 0x36b   : > { %v2664_v62 = vpop.f32.mrf.mxu1  ;;  %v5609_v52 = vor.u32 %v6705_v14, %v5606_v19 }
 0x36c   : > { %v3321_v20 = vadd.f32 %v3320_v4, %v3152_v44  ;;  %v2665_v50 = vadd.f32 %v2664_v62, %v2495_v60  ;;  %v6641_v44 = vld [vmem:[%s10408_s4 + $0x144] sm:$0xf]  ;;  %v5862_v4 = vld [vmem:[%s10408_s4 + $0x148] sm:$0xf0]  ;;  %v5605_v62 = vor.u32 %v6706_v34, %v5604_v36 }
 0x36d   : > { %v5865_v12 = vor.u32 %v6641_v44, %v5862_v4 }
 0x36e   : > { %3453 = vst [vmem:[%s8637_s0 + $0x228] sm:$0xff] %v3321_v20 }
 0x371   : > { %v3153_v42 = vpop.f32.mrf.mxu2 }
 0x372   : > { %v3154_v53 = vadd.f32 %v3153_v42, %v2665_v50  ;;  %v3322_v26 = vpop.f32.mrf.mxu3  ;;  %v2498_v1 = vpop.f32.mrf.mxu0 }
 0x373   : > { %v2667_v35 = vpop.f32.mrf.mxu1 }
 0x374   : > { %v3323_v23 = vadd.f32 %v3322_v26, %v3154_v53  ;;  %v2668_v41 = vadd.f32 %v2667_v35, %v2498_v1  ;;  %v5868_v1 = vld [vmem:[%s10408_s4 + $0x150] sm:$0xf]  ;;  %v6708_v35 = vld [vmem:[%s10409_s5 + $0x154] sm:$0xf0] }
 0x375   : > { %2537 = vmatmul.bf16.gmra.mxu0 %v5589_v38 }
 0x376   : > { %3454 = vst [vmem:[%s8637_s0 + $0x238] sm:$0xff] %v3323_v23  ;;  %3195 = vmatmul.bf16.gmra.mxu2 %v5845_v22  ;;  %2706 = vmatmul.bf16.gmra.mxu1 %v5593_v3  ;;  %v5612_v3 = vld [vmem:[%s10409_s5 + $0x150] sm:$0xf]  ;;  %v6707_v23 = vld [vmem:[%s10409_s5 + $0x154] sm:$0xf] }
 0x377   : > { %3364 = vmatmul.bf16.gmra.mxu3 %v5849_v28  ;;  %v6644_v28 = vld [vmem:[%s10408_s4 + $0x154] sm:$0xf0] }
 0x378   : > { %v5869_v55 = vor.u32 %v6644_v28, %v5868_v1 }
 0x379   : > { %v3156_v37 = vpop.f32.mrf.mxu2 }
 0x37a   : > { %v3157_v54 = vadd.f32 %v3156_v37, %v2668_v41  ;;  %v3325_v39 = vpop.f32.mrf.mxu3  ;;  %v2500_v61 = vpop.f32.mrf.mxu0  ;;  %v5614_v41 = vld [vmem:[%s10409_s5 + $0x158] sm:$0xf0] }
 0x37b   : > { %v2669_v47 = vpop.f32.mrf.mxu1  ;;  %v5617_v63 = vor.u32 %v6707_v23, %v5614_v41 }
 0x37c   : > { %v3326_v21 = vadd.f32 %v3325_v39, %v3157_v54  ;;  %v2670_v56 = vadd.f32 %v2669_v47, %v2500_v61  ;;  %v6643_v54 = vld [vmem:[%s10408_s4 + $0x154] sm:$0xf]  ;;  %v5870_v39 = vld [vmem:[%s10408_s4 + $0x158] sm:$0xf0]  ;;  %v5613_v47 = vor.u32 %v6708_v35, %v5612_v3 }
 0x37d   : > { %v5873_v48 = vor.u32 %v6643_v54, %v5870_v39 }
 0x37e   : > { %3455 = vst [vmem:[%s8637_s0 + $0x288] sm:$0xff] %v3326_v21 }
 0x381   : > { %v3158_v25 = vpop.f32.mrf.mxu2 }
 0x382   : > { %v3159_v18 = vadd.f32 %v3158_v25, %v2670_v56  ;;  %v3327_v43 = vpop.f32.mrf.mxu3  ;;  %v2503_v13 = vpop.f32.mrf.mxu0 }
 0x383   : > { %v2672_v51 = vpop.f32.mrf.mxu1 }
 0x384   : > { %v3328_v8 = vadd.f32 %v3327_v43, %v3159_v18  ;;  %v2673_v58 = vadd.f32 %v2672_v51, %v2503_v13  ;;  %v5876_v13 = vld [vmem:[%s10408_s4 + $0x160] sm:$0xf]  ;;  %v6710_v51 = vld [vmem:[%s10409_s5 + $0x164] sm:$0xf0] }
 0x385   : > { %2542 = vmatmul.bf16.gmra.mxu0 %v5597_v10 }
 0x386   : > { %3456 = vst [vmem:[%s8637_s0 + $0x298] sm:$0xff] %v3328_v8  ;;  %3200 = vmatmul.bf16.gmra.mxu2 %v5853_v46  ;;  %2711 = vmatmul.bf16.gmra.mxu1 %v5601_v24  ;;  %v5620_v24 = vld [vmem:[%s10409_s5 + $0x160] sm:$0xf]  ;;  %v6709_v8 = vld [vmem:[%s10409_s5 + $0x164] sm:$0xf] }
 0x387   : > { %3369 = vmatmul.bf16.gmra.mxu3 %v5857_v30  ;;  %v6646_v30 = vld [vmem:[%s10408_s4 + $0x164] sm:$0xf0] }
 0x388   : > { %v5877_v36 = vor.u32 %v6646_v30, %v5876_v13 }
 0x389   : > { %v3161_v0 = vpop.f32.mrf.mxu2 }
 0x38a   : > { %v3162_v57 = vadd.f32 %v3161_v0, %v2673_v58  ;;  %v3330_v32 = vpop.f32.mrf.mxu3  ;;  %v2505_v9 = vpop.f32.mrf.mxu0  ;;  %v5622_v58 = vld [vmem:[%s10409_s5 + $0x168] sm:$0xf0] }
 0x38b   : > { %v2674_v11 = vpop.f32.mrf.mxu1  ;;  %v5625_v7 = vor.u32 %v6709_v8, %v5622_v58 }
 0x38c   : > { %v3331_v59 = vadd.f32 %v3330_v32, %v3162_v57  ;;  %v2675_v27 = vadd.f32 %v2674_v11, %v2505_v9  ;;  %v6645_v57 = vld [vmem:[%s10408_s4 + $0x164] sm:$0xf]  ;;  %v5878_v32 = vld [vmem:[%s10408_s4 + $0x168] sm:$0xf0]  ;;  %v5621_v11 = vor.u32 %v6710_v51, %v5620_v24 }
 0x38d   : > { %v5881_v19 = vor.u32 %v6645_v57, %v5878_v32 }
 0x38e   : > { %3457 = vst [vmem:[%s8637_s0 + $0x2a8] sm:$0xff] %v3331_v59 }
 0x391   : > { %v3163_v60 = vpop.f32.mrf.mxu2 }
 0x392   : > { %v3164_v20 = vadd.f32 %v3163_v60, %v2675_v27  ;;  %v3332_v16 = vpop.f32.mrf.mxu3  ;;  %v2508_v40 = vpop.f32.mrf.mxu0 }
 0x393   : > { %v2677_v6 = vpop.f32.mrf.mxu1 }
 0x394   : > { %v3333_v50 = vadd.f32 %v3332_v16, %v3164_v20  ;;  %v2678_v33 = vadd.f32 %v2677_v6, %v2508_v40  ;;  %v5884_v40 = vld [vmem:[%s10408_s4 + $0x170] sm:$0xf]  ;;  %v6712_v6 = vld [vmem:[%s10409_s5 + $0x174] sm:$0xf0] }
 0x395   : > { %2547 = vmatmul.bf16.gmra.mxu0 %v5605_v62 }
 0x396   : > { %3458 = vst [vmem:[%s8637_s0 + $0x2b8] sm:$0xff] %v3333_v50  ;;  %3205 = vmatmul.bf16.gmra.mxu2 %v5861_v2  ;;  %2716 = vmatmul.bf16.gmra.mxu1 %v5609_v52  ;;  %v5628_v52 = vld [vmem:[%s10409_s5 + $0x170] sm:$0xf]  ;;  %v6711_v50 = vld [vmem:[%s10409_s5 + $0x174] sm:$0xf] }
 0x397   : > { %3374 = vmatmul.bf16.gmra.mxu3 %v5865_v12  ;;  %v6648_v12 = vld [vmem:[%s10408_s4 + $0x174] sm:$0xf0] }
 0x398   : > { %v5885_v3 = vor.u32 %v6648_v12, %v5884_v40 }
 0x399   : > { %v3166_v31 = vpop.f32.mrf.mxu2 }
 0x39a   : > { %v3167_v42 = vadd.f32 %v3166_v31, %v2678_v33  ;;  %v3335_v38 = vpop.f32.mrf.mxu3  ;;  %v2510_v53 = vpop.f32.mrf.mxu0  ;;  %v5630_v33 = vld [vmem:[%s10409_s5 + $0x178] sm:$0xf0] }
 0x39b   : > { %v2679_v26 = vpop.f32.mrf.mxu1  ;;  %v5633_v28 = vor.u32 %v6711_v50, %v5630_v33 }
 0x39c   : > { %v3336_v22 = vadd.f32 %v3335_v38, %v3167_v42  ;;  %v2680_v37 = vadd.f32 %v2679_v26, %v2510_v53  ;;  %v6647_v42 = vld [vmem:[%s10408_s4 + $0x174] sm:$0xf]  ;;  %v5886_v38 = vld [vmem:[%s10408_s4 + $0x178] sm:$0xf0]  ;;  %v5629_v26 = vor.u32 %v6712_v6, %v5628_v52 }
 0x39d   : > { %v5889_v41 = vor.u32 %v6647_v42, %v5886_v38 }
 0x39e   : > { %3459 = vst [vmem:[%s8637_s0 + $0x308] sm:$0xff] %v3336_v22 }
 0x3a1   : > { %v3168_v61 = vpop.f32.mrf.mxu2 }
 0x3a2   : > { %v3169_v21 = vadd.f32 %v3168_v61, %v2680_v37  ;;  %v3337_v15 = vpop.f32.mrf.mxu3  ;;  %v2513_v49 = vpop.f32.mrf.mxu0 }
 0x3a3   : > { %v2682_v29 = vpop.f32.mrf.mxu1 }
 0x3a4   : > { %v3338_v56 = vadd.f32 %v3337_v15, %v3169_v21  ;;  %v2683_v45 = vadd.f32 %v2682_v29, %v2513_v49  ;;  %v5892_v49 = vld [vmem:[%s10408_s4 + $0x180] sm:$0xf]  ;;  %v6714_v29 = vld [vmem:[%s10409_s5 + $0x184] sm:$0xf0] }
 0x3a5   : > { %2552 = vmatmul.bf16.gmra.mxu0 %v5613_v47 }
 0x3a6   : > { %3460 = vst [vmem:[%s8637_s0 + $0x318] sm:$0xff] %v3338_v56  ;;  %3210 = vmatmul.bf16.gmra.mxu2 %v5869_v55  ;;  %2721 = vmatmul.bf16.gmra.mxu1 %v5617_v63  ;;  %v5636_v63 = vld [vmem:[%s10409_s5 + $0x180] sm:$0xf]  ;;  %v6713_v56 = vld [vmem:[%s10409_s5 + $0x184] sm:$0xf] }
 0x3a7   : > { %3379 = vmatmul.bf16.gmra.mxu3 %v5873_v48  ;;  %v6650_v48 = vld [vmem:[%s10408_s4 + $0x184] sm:$0xf0] }
 0x3a8   : > { %v5893_v24 = vor.u32 %v6650_v48, %v5892_v49 }
 0x3a9   : > { %v3171_v17 = vpop.f32.mrf.mxu2 }
 0x3aa   : > { %v3172_v25 = vadd.f32 %v3171_v17, %v2683_v45  ;;  %v3340_v10 = vpop.f32.mrf.mxu3  ;;  %v2515_v18 = vpop.f32.mrf.mxu0  ;;  %v5638_v45 = vld [vmem:[%s10409_s5 + $0x188] sm:$0xf0] }
 0x3ab   : > { %v2684_v43 = vpop.f32.mrf.mxu1  ;;  %v5641_v30 = vor.u32 %v6713_v56, %v5638_v45 }
 0x3ac   : > { %v3341_v46 = vadd.f32 %v3340_v10, %v3172_v25  ;;  %v2685_v0 = vadd.f32 %v2684_v43, %v2515_v18  ;;  %v6649_v25 = vld [vmem:[%s10408_s4 + $0x184] sm:$0xf]  ;;  %v5894_v10 = vld [vmem:[%s10408_s4 + $0x188] sm:$0xf0]  ;;  %v5637_v43 = vor.u32 %v6714_v29, %v5636_v63 }
 0x3ad   : > { %v5897_v58 = vor.u32 %v6649_v25, %v5894_v10 }
 0x3ae   : > { %3461 = vst [vmem:[%s8637_s0 + $0x328] sm:$0xff] %v3341_v46 }
 0x3b1   : > { %v3173_v9 = vpop.f32.mrf.mxu2 }
 0x3b2   : > { %v3174_v59 = vadd.f32 %v3173_v9, %v2685_v0  ;;  %v3342_v5 = vpop.f32.mrf.mxu3  ;;  %v2518_v34 = vpop.f32.mrf.mxu0 }
 0x3b3   : > { %v2687_v14 = vpop.f32.mrf.mxu1 }
 0x3b4   : > { %v3343_v27 = vadd.f32 %v3342_v5, %v3174_v59  ;;  %v2688_v44 = vadd.f32 %v2687_v14, %v2518_v34  ;;  %v5900_v34 = vld [vmem:[%s10408_s4 + $0x190] sm:$0xf]  ;;  %v6716_v14 = vld [vmem:[%s10409_s5 + $0x194] sm:$0xf0] }
 0x3b5   : > { %2557 = vmatmul.bf16.gmra.mxu0 %v5621_v11 }
 0x3b6   : > { %3462 = vst [vmem:[%s8637_s0 + $0x338] sm:$0xff] %v3343_v27  ;;  %3215 = vmatmul.bf16.gmra.mxu2 %v5877_v36  ;;  %2726 = vmatmul.bf16.gmra.mxu1 %v5625_v7  ;;  %v5644_v7 = vld [vmem:[%s10409_s5 + $0x190] sm:$0xf]  ;;  %v6715_v27 = vld [vmem:[%s10409_s5 + $0x194] sm:$0xf] }
 0x3b7   : > { %3384 = vmatmul.bf16.gmra.mxu3 %v5881_v19  ;;  %v6652_v19 = vld [vmem:[%s10408_s4 + $0x194] sm:$0xf0] }
 0x3b8   : > { %v5901_v52 = vor.u32 %v6652_v19, %v5900_v34 }
 0x3b9   : > { %v3176_v4 = vpop.f32.mrf.mxu2 }
 0x3ba   : > { %v3177_v60 = vadd.f32 %v3176_v4, %v2688_v44  ;;  %v3345_v62 = vpop.f32.mrf.mxu3  ;;  %v2520_v20 = vpop.f32.mrf.mxu0  ;;  %v5646_v44 = vld [vmem:[%s10409_s5 + $0x198] sm:$0xf0] }
 0x3bb   : > { %v2689_v16 = vpop.f32.mrf.mxu1  ;;  %v5649_v12 = vor.u32 %v6715_v27, %v5646_v44 }
 0x3bc   : > { %v3346_v2 = vadd.f32 %v3345_v62, %v3177_v60  ;;  %v2690_v31 = vadd.f32 %v2689_v16, %v2520_v20  ;;  %v6651_v60 = vld [vmem:[%s10408_s4 + $0x194] sm:$0xf]  ;;  %v5902_v62 = vld [vmem:[%s10408_s4 + $0x198] sm:$0xf0]  ;;  %v5645_v16 = vor.u32 %v6716_v14, %v5644_v7 }
 0x3bd   : > { %v5905_v33 = vor.u32 %v6651_v60, %v5902_v62 }
 0x3be   : > { %3463 = vst [vmem:[%s8637_s0 + $0x388] sm:$0xff] %v3346_v2 }
 0x3c1   : > { %v3178_v53 = vpop.f32.mrf.mxu2 }
 0x3c2   : > { %v3179_v22 = vadd.f32 %v3178_v53, %v2690_v31  ;;  %v3347_v1 = vpop.f32.mrf.mxu3  ;;  %v2523_v35 = vpop.f32.mrf.mxu0 }
 0x3c3   : > { %v2692_v23 = vpop.f32.mrf.mxu1 }
 0x3c4   : > { %v3348_v37 = vadd.f32 %v3347_v1, %v3179_v22  ;;  %v2693_v54 = vadd.f32 %v2692_v23, %v2523_v35  ;;  %v5908_v35 = vld [vmem:[%s10408_s4 + $0x1a0] sm:$0xf]  ;;  %v6718_v23 = vld [vmem:[%s10409_s5 + $0x1a4] sm:$0xf0] }
 0x3c5   : > { %2562 = vmatmul.bf16.gmra.mxu0 %v5629_v26 }
 0x3c6   : > { %3464 = vst [vmem:[%s8637_s0 + $0x398] sm:$0xff] %v3348_v37  ;;  %3220 = vmatmul.bf16.gmra.mxu2 %v5885_v3  ;;  %2731 = vmatmul.bf16.gmra.mxu1 %v5633_v28  ;;  %v5652_v28 = vld [vmem:[%s10409_s5 + $0x1a0] sm:$0xf]  ;;  %v6717_v37 = vld [vmem:[%s10409_s5 + $0x1a4] sm:$0xf] }
 0x3c7   : > { %3389 = vmatmul.bf16.gmra.mxu3 %v5889_v41  ;;  %v6654_v41 = vld [vmem:[%s10408_s4 + $0x1a4] sm:$0xf0] }
 0x3c8   : > { %v5909_v63 = vor.u32 %v6654_v41, %v5908_v35 }
 0x3c9   : > { %v3181_v39 = vpop.f32.mrf.mxu2 }
 0x3ca   : > { %v3182_v61 = vadd.f32 %v3181_v39, %v2693_v54  ;;  %v3350_v47 = vpop.f32.mrf.mxu3  ;;  %v2525_v21 = vpop.f32.mrf.mxu0  ;;  %v5654_v54 = vld [vmem:[%s10409_s5 + $0x1a8] sm:$0xf0] }
 0x3cb   : > { %v2694_v15 = vpop.f32.mrf.mxu1  ;;  %v5657_v48 = vor.u32 %v6717_v37, %v5654_v54 }
 0x3cc   : > { %v3351_v55 = vadd.f32 %v3350_v47, %v3182_v61  ;;  %v2695_v17 = vadd.f32 %v2694_v15, %v2525_v21  ;;  %v6653_v61 = vld [vmem:[%s10408_s4 + $0x1a4] sm:$0xf]  ;;  %v5910_v47 = vld [vmem:[%s10408_s4 + $0x1a8] sm:$0xf0]  ;;  %v5653_v15 = vor.u32 %v6718_v23, %v5652_v28 }
 0x3cd   : > { %v5913_v45 = vor.u32 %v6653_v61, %v5910_v47 }
 0x3ce   : > { %3465 = vst [vmem:[%s8637_s0 + $0x3a8] sm:$0xff] %v3351_v55 }
 0x3d1   : > { %v3183_v18 = vpop.f32.mrf.mxu2 }
 0x3d2   : > { %v3184_v46 = vadd.f32 %v3183_v18, %v2695_v17  ;;  %v3352_v13 = vpop.f32.mrf.mxu3  ;;  %v2528_v51 = vpop.f32.mrf.mxu0 }
 0x3d3   : > { %v2697_v8 = vpop.f32.mrf.mxu1 }
 0x3d4   : > { %v3353_v0 = vadd.f32 %v3352_v13, %v3184_v46  ;;  %v2698_v57 = vadd.f32 %v2697_v8, %v2528_v51  ;;  %v5916_v51 = vld [vmem:[%s10408_s4 + $0x1b0] sm:$0xf]  ;;  %v6720_v8 = vld [vmem:[%s10409_s5 + $0x1b4] sm:$0xf0] }
 0x3d5   : > { %2567 = vmatmul.bf16.gmra.mxu0 %v5637_v43 }
 0x3d6   : > { %3466 = vst [vmem:[%s8637_s0 + $0x3b8] sm:$0xff] %v3353_v0  ;;  %3225 = vmatmul.bf16.gmra.mxu2 %v5893_v24  ;;  %2736 = vmatmul.bf16.gmra.mxu1 %v5641_v30  ;;  %v5660_v30 = vld [vmem:[%s10409_s5 + $0x1b0] sm:$0xf]  ;;  %v6719_v0 = vld [vmem:[%s10409_s5 + $0x1b4] sm:$0xf] }
 0x3d7   : > { %3394 = vmatmul.bf16.gmra.mxu3 %v5897_v58  ;;  %v6656_v58 = vld [vmem:[%s10408_s4 + $0x1b4] sm:$0xf0] }
 0x3d8   : > { %v5917_v7 = vor.u32 %v6656_v58, %v5916_v51 }
 0x3d9   : > { %v3186_v32 = vpop.f32.mrf.mxu2 }
 0x3da   : > { %v3187_v9 = vadd.f32 %v3186_v32, %v2698_v57  ;;  %v3355_v11 = vpop.f32.mrf.mxu3  ;;  %v2530_v59 = vpop.f32.mrf.mxu0  ;;  %v5662_v57 = vld [vmem:[%s10409_s5 + $0x1b8] sm:$0xf0] }
 0x3db   : > { %v2699_v5 = vpop.f32.mrf.mxu1  ;;  %v5665_v19 = vor.u32 %v6719_v0, %v5662_v57 }
 0x3dc   : > { %v3356_v36 = vadd.f32 %v3355_v11, %v3187_v9  ;;  %v2700_v4 = vadd.f32 %v2699_v5, %v2530_v59  ;;  %v6655_v9 = vld [vmem:[%s10408_s4 + $0x1b4] sm:$0xf]  ;;  %v5918_v11 = vld [vmem:[%s10408_s4 + $0x1b8] sm:$0xf0]  ;;  %v5661_v5 = vor.u32 %v6720_v8, %v5660_v30 }
 0x3dd   : > { %v5921_v44 = vor.u32 %v6655_v9, %v5918_v11 }
 0x3de   : > { %3467 = vst [vmem:[%s8637_s0 + $0x408] sm:$0xff] %v3356_v36 }
 0x3e1   : > { %v3188_v20 = vpop.f32.mrf.mxu2 }
 0x3e2   : > { %v3189_v2 = vadd.f32 %v3188_v20, %v2700_v4  ;;  %v3357_v40 = vpop.f32.mrf.mxu3  ;;  %v2533_v6 = vpop.f32.mrf.mxu0 }
 0x3e3   : > { %v2702_v50 = vpop.f32.mrf.mxu1 }
 0x3e4   : > { %v3358_v31 = vadd.f32 %v3357_v40, %v3189_v2  ;;  %v2703_v42 = vadd.f32 %v2702_v50, %v2533_v6  ;;  %v5924_v6 = vld [vmem:[%s10408_s4 + $0x1c0] sm:$0xf]  ;;  %v6722_v50 = vld [vmem:[%s10409_s5 + $0x1c4] sm:$0xf0] }
 0x3e5   : > { %2572 = vmatmul.bf16.gmra.mxu0 %v5645_v16 }
 0x3e6   : > { %3468 = vst [vmem:[%s8637_s0 + $0x418] sm:$0xff] %v3358_v31  ;;  %3230 = vmatmul.bf16.gmra.mxu2 %v5901_v52  ;;  %2741 = vmatmul.bf16.gmra.mxu1 %v5649_v12  ;;  %v5668_v12 = vld [vmem:[%s10409_s5 + $0x1c0] sm:$0xf]  ;;  %v6721_v31 = vld [vmem:[%s10409_s5 + $0x1c4] sm:$0xf] }
 0x3e7   : > { %3399 = vmatmul.bf16.gmra.mxu3 %v5905_v33  ;;  %v6658_v33 = vld [vmem:[%s10408_s4 + $0x1c4] sm:$0xf0] }
 0x3e8   : > { %v5925_v28 = vor.u32 %v6658_v33, %v5924_v6 }
 0x3e9   : > { %v3191_v38 = vpop.f32.mrf.mxu2 }
 0x3ea   : > { %v3192_v53 = vadd.f32 %v3191_v38, %v2703_v42  ;;  %v3360_v26 = vpop.f32.mrf.mxu3  ;;  %v2535_v22 = vpop.f32.mrf.mxu0  ;;  %v5670_v42 = vld [vmem:[%s10409_s5 + $0x1c8] sm:$0xf0] }
 0x3eb   : > { %v2704_v1 = vpop.f32.mrf.mxu1  ;;  %v5673_v41 = vor.u32 %v6721_v31, %v5670_v42 }
 0x3ec   : > { %v3361_v3 = vadd.f32 %v3360_v26, %v3192_v53  ;;  %v2705_v39 = vadd.f32 %v2704_v1, %v2535_v22  ;;  %v6657_v53 = vld [vmem:[%s10408_s4 + $0x1c4] sm:$0xf]  ;;  %v5926_v26 = vld [vmem:[%s10408_s4 + $0x1c8] sm:$0xf0]  ;;  %v5669_v1 = vor.u32 %v6722_v50, %v5668_v12 }
 0x3ed   : > { %v5929_v54 = vor.u32 %v6657_v53, %v5926_v26 }
 0x3ee   : > { %3469 = vst [vmem:[%s8637_s0 + $0x428] sm:$0xff] %v3361_v3 }
 0x3f1   : > { %v3193_v21 = vpop.f32.mrf.mxu2 }
 0x3f2   : > { %v3194_v55 = vadd.f32 %v3193_v21, %v2705_v39  ;;  %v3362_v49 = vpop.f32.mrf.mxu3  ;;  %v2538_v29 = vpop.f32.mrf.mxu0 }
 0x3f3   : > { %v2707_v56 = vpop.f32.mrf.mxu1 }
 0x3f4   : > { %v3363_v17 = vadd.f32 %v3362_v49, %v3194_v55  ;;  %v2708_v25 = vadd.f32 %v2707_v56, %v2538_v29  ;;  %v5932_v29 = vld [vmem:[%s10408_s4 + $0x1d0] sm:$0xf]  ;;  %v6724_v56 = vld [vmem:[%s10409_s5 + $0x1d4] sm:$0xf0] }
 0x3f5   : > { %2577 = vmatmul.bf16.gmra.mxu0 %v5653_v15 }
 0x3f6   : > { %3470 = vst [vmem:[%s8637_s0 + $0x438] sm:$0xff] %v3363_v17  ;;  %3235 = vmatmul.bf16.gmra.mxu2 %v5909_v63  ;;  %2746 = vmatmul.bf16.gmra.mxu1 %v5657_v48  ;;  %v5676_v48 = vld [vmem:[%s10409_s5 + $0x1d0] sm:$0xf]  ;;  %v6723_v17 = vld [vmem:[%s10409_s5 + $0x1d4] sm:$0xf] }
 0x3f7   : > { %3404 = vmatmul.bf16.gmra.mxu3 %v5913_v45  ;;  %v6660_v45 = vld [vmem:[%s10408_s4 + $0x1d4] sm:$0xf0] }
 0x3f8   : > { %v5933_v30 = vor.u32 %v6660_v45, %v5932_v29 }
 0x3f9   : > { %v3196_v10 = vpop.f32.mrf.mxu2 }
 0x3fa   : > { %v3197_v18 = vadd.f32 %v3196_v10, %v2708_v25  ;;  %v3365_v43 = vpop.f32.mrf.mxu3  ;;  %v2540_v46 = vpop.f32.mrf.mxu0  ;;  %v5678_v25 = vld [vmem:[%s10409_s5 + $0x1d8] sm:$0xf0] }
 0x3fb   : > { %v2709_v13 = vpop.f32.mrf.mxu1  ;;  %v5681_v58 = vor.u32 %v6723_v17, %v5678_v25 }
 0x3fc   : > { %v3366_v24 = vadd.f32 %v3365_v43, %v3197_v18  ;;  %v2710_v32 = vadd.f32 %v2709_v13, %v2540_v46  ;;  %v6659_v18 = vld [vmem:[%s10408_s4 + $0x1d4] sm:$0xf]  ;;  %v5934_v43 = vld [vmem:[%s10408_s4 + $0x1d8] sm:$0xf0]  ;;  %v5677_v13 = vor.u32 %v6724_v56, %v5676_v48 }
 0x3fd   : > { %v5937_v57 = vor.u32 %v6659_v18, %v5934_v43 }
 0x3fe   : > { %3471 = vst [vmem:[%s8637_s0 + $0x488] sm:$0xff] %v3366_v24 }
 0x401   : > { %v3198_v59 = vpop.f32.mrf.mxu2 }
 0x402   : > { %v3199_v36 = vadd.f32 %v3198_v59, %v2710_v32  ;;  %v3367_v34 = vpop.f32.mrf.mxu3  ;;  %v2543_v14 = vpop.f32.mrf.mxu0 }
 0x403   : > { %v2712_v27 = vpop.f32.mrf.mxu1 }
 0x404   : > { %v3368_v4 = vadd.f32 %v3367_v34, %v3199_v36  ;;  %v2713_v60 = vadd.f32 %v2712_v27, %v2543_v14  ;;  %v5940_v14 = vld [vmem:[%s10408_s4 + $0x1e0] sm:$0xf]  ;;  %v6726_v27 = vld [vmem:[%s10409_s5 + $0x1e4] sm:$0xf0] }
 0x405   : > { %2582 = vmatmul.bf16.gmra.mxu0 %v5661_v5 }
 0x406   : > { %3472 = vst [vmem:[%s8637_s0 + $0x498] sm:$0xff] %v3368_v4  ;;  %3240 = vmatmul.bf16.gmra.mxu2 %v5917_v7  ;;  %2751 = vmatmul.bf16.gmra.mxu1 %v5665_v19  ;;  %v5684_v19 = vld [vmem:[%s10409_s5 + $0x1e0] sm:$0xf]  ;;  %v6725_v4 = vld [vmem:[%s10409_s5 + $0x1e4] sm:$0xf] }
 0x407   : > { %3409 = vmatmul.bf16.gmra.mxu3 %v5921_v44  ;;  %v6662_v44 = vld [vmem:[%s10408_s4 + $0x1e4] sm:$0xf0] }
 0x408   : > { %v5941_v12 = vor.u32 %v6662_v44, %v5940_v14 }
 0x409   : > { %v3201_v62 = vpop.f32.mrf.mxu2 }
 0x40a   : > { %v3202_v20 = vadd.f32 %v3201_v62, %v2713_v60  ;;  %v3370_v16 = vpop.f32.mrf.mxu3  ;;  %v2545_v2 = vpop.f32.mrf.mxu0  ;;  %v5686_v60 = vld [vmem:[%s10409_s5 + $0x1e8] sm:$0xf0] }
 0x40b   : > { %v2714_v40 = vpop.f32.mrf.mxu1  ;;  %v5689_v33 = vor.u32 %v6725_v4, %v5686_v60 }
 0x40c   : > { %v3371_v52 = vadd.f32 %v3370_v16, %v3202_v20  ;;  %v2715_v38 = vadd.f32 %v2714_v40, %v2545_v2  ;;  %v6661_v20 = vld [vmem:[%s10408_s4 + $0x1e4] sm:$0xf]  ;;  %v5942_v16 = vld [vmem:[%s10408_s4 + $0x1e8] sm:$0xf0]  ;;  %v5685_v40 = vor.u32 %v6726_v27, %v5684_v19 }
 0x40d   : > { %v5945_v42 = vor.u32 %v6661_v20, %v5942_v16 }
 0x40e   : > { %3473 = vst [vmem:[%s8637_s0 + $0x4a8] sm:$0xff] %v3371_v52 }
 0x411   : > { %v3203_v22 = vpop.f32.mrf.mxu2 }
 0x412   : > { %v3204_v3 = vadd.f32 %v3203_v22, %v2715_v38  ;;  %v3372_v35 = vpop.f32.mrf.mxu3  ;;  %v2548_v23 = vpop.f32.mrf.mxu0 }
 0x413   : > { %v2717_v37 = vpop.f32.mrf.mxu1 }
 0x414   : > { %v3373_v39 = vadd.f32 %v3372_v35, %v3204_v3  ;;  %v2718_v61 = vadd.f32 %v2717_v37, %v2548_v23  ;;  %v5948_v23 = vld [vmem:[%s10408_s4 + $0x1f0] sm:$0xf]  ;;  %v6728_v37 = vld [vmem:[%s10409_s5 + $0x1f4] sm:$0xf0] }
 0x415   : > { %2587 = vmatmul.bf16.gmra.mxu0 %v5669_v1 }
 0x416   : > { %3474 = vst [vmem:[%s8637_s0 + $0x4b8] sm:$0xff] %v3373_v39  ;;  %3245 = vmatmul.bf16.gmra.mxu2 %v5925_v28  ;;  %2756 = vmatmul.bf16.gmra.mxu1 %v5673_v41  ;;  %v5692_v41 = vld [vmem:[%s10409_s5 + $0x1f0] sm:$0xf]  ;;  %v6727_v39 = vld [vmem:[%s10409_s5 + $0x1f4] sm:$0xf] }
 0x417   : > { %3414 = vmatmul.bf16.gmra.mxu3 %v5929_v54  ;;  %v6664_v54 = vld [vmem:[%s10408_s4 + $0x1f4] sm:$0xf0] }
 0x418   : > { %v5949_v48 = vor.u32 %v6664_v54, %v5948_v23 }
 0x419   : > { %v3206_v47 = vpop.f32.mrf.mxu2 }
 0x41a   : > { %v3207_v21 = vadd.f32 %v3206_v47, %v2718_v61  ;;  %v3375_v15 = vpop.f32.mrf.mxu3  ;;  %v2550_v55 = vpop.f32.mrf.mxu0  ;;  %v5694_v61 = vld [vmem:[%s10409_s5 + $0x1f8] sm:$0xf0] }
 0x41b   : > { %v2719_v49 = vpop.f32.mrf.mxu1  ;;  %v5697_v45 = vor.u32 %v6727_v39, %v5694_v61 }
 0x41c   : > { %v3376_v63 = vadd.f32 %v3375_v15, %v3207_v21  ;;  %v2720_v10 = vadd.f32 %v2719_v49, %v2550_v55  ;;  %v6663_v21 = vld [vmem:[%s10408_s4 + $0x1f4] sm:$0xf]  ;;  %v5950_v15 = vld [vmem:[%s10408_s4 + $0x1f8] sm:$0xf0]  ;;  %v5693_v49 = vor.u32 %v6728_v37, %v5692_v41 }
 0x41d   : > { %v5953_v25 = vor.u32 %v6663_v21, %v5950_v15 }
 0x41e   : > { %3475 = vst [vmem:[%s8637_s0 + $0x508] sm:$0xff] %v3376_v63 }
 0x421   : > { %v3208_v46 = vpop.f32.mrf.mxu2 }
 0x422   : > { %v3209_v24 = vadd.f32 %v3208_v46, %v2720_v10  ;;  %v3377_v51 = vpop.f32.mrf.mxu3  ;;  %v2553_v8 = vpop.f32.mrf.mxu0 }
 0x423   : > { %v2722_v0 = vpop.f32.mrf.mxu1 }
 0x424   : > { %v3378_v32 = vadd.f32 %v3377_v51, %v3209_v24  ;;  %v2723_v9 = vadd.f32 %v2722_v0, %v2553_v8  ;;  %v6212_v8 = vld [vmem:[%s10408_s4] sm:$0xf]  ;;  %v6794_v0 = vld [vmem:[%s10409_s5 + $0x4] sm:$0xf0] }
 0x425   : > { %2592 = vmatmul.bf16.gmra.mxu0 %v5677_v13 }
 0x426   : > { %3476 = vst [vmem:[%s8637_s0 + $0x518] sm:$0xff] %v3378_v32  ;;  %3250 = vmatmul.bf16.gmra.mxu2 %v5933_v30  ;;  %2761 = vmatmul.bf16.gmra.mxu1 %v5681_v58  ;;  %v5956_v58 = vld [vmem:[%s10409_s5] sm:$0xf]  ;;  %v6793_v32 = vld [vmem:[%s10409_s5 + $0x4] sm:$0xf] }
 0x427   : > { %3419 = vmatmul.bf16.gmra.mxu3 %v5937_v57  ;;  %v6730_v57 = vld [vmem:[%s10408_s4 + $0x4] sm:$0xf0] }
 0x428   : > { %v6213_v19 = vor.u32 %v6730_v57, %v6212_v8 }
 0x429   : > { %v3211_v11 = vpop.f32.mrf.mxu2 }
 0x42a   : > { %v3212_v59 = vadd.f32 %v3211_v11, %v2723_v9  ;;  %v3380_v5 = vpop.f32.mrf.mxu3  ;;  %v2555_v36 = vpop.f32.mrf.mxu0  ;;  %v5958_v9 = vld [vmem:[%s10409_s5 + $0x8] sm:$0xf0] }
 0x42b   : > { %v2724_v34 = vpop.f32.mrf.mxu1  ;;  %v5961_v44 = vor.u32 %v6793_v32, %v5958_v9 }
 0x42c   : > { %v3381_v7 = vadd.f32 %v3380_v5, %v3212_v59  ;;  %v2725_v62 = vadd.f32 %v2724_v34, %v2555_v36  ;;  %v6729_v59 = vld [vmem:[%s10408_s4 + $0x4] sm:$0xf]  ;;  %v6214_v5 = vld [vmem:[%s10408_s4 + $0x8] sm:$0xf0]  ;;  %v5957_v34 = vor.u32 %v6794_v0, %v5956_v58 }
 0x42d   : > { %v6217_v60 = vor.u32 %v6729_v59, %v6214_v5 }
 0x42e   : > { %3477 = vst [vmem:[%s8637_s0 + $0x528] sm:$0xff] %v3381_v7 }
 0x431   : > { %v3213_v2 = vpop.f32.mrf.mxu2 }
 0x432   : > { %v3214_v52 = vadd.f32 %v3213_v2, %v2725_v62  ;;  %v3382_v6 = vpop.f32.mrf.mxu3  ;;  %v2558_v50 = vpop.f32.mrf.mxu0 }
 0x433   : > { %v2727_v31 = vpop.f32.mrf.mxu1 }
 0x434   : > { %v3383_v38 = vadd.f32 %v3382_v6, %v3214_v52  ;;  %v2728_v53 = vadd.f32 %v2727_v31, %v2558_v50  ;;  %v6220_v50 = vld [vmem:[%s10408_s4 + $0x10] sm:$0xf]  ;;  %v6796_v31 = vld [vmem:[%s10409_s5 + $0x14] sm:$0xf0] }
 0x435   : > { %2597 = vmatmul.bf16.gmra.mxu0 %v5685_v40 }
 0x436   : > { %3478 = vst [vmem:[%s8637_s0 + $0x538] sm:$0xff] %v3383_v38  ;;  %3255 = vmatmul.bf16.gmra.mxu2 %v5941_v12  ;;  %2766 = vmatmul.bf16.gmra.mxu1 %v5689_v33  ;;  %v5964_v33 = vld [vmem:[%s10409_s5 + $0x10] sm:$0xf]  ;;  %v6795_v38 = vld [vmem:[%s10409_s5 + $0x14] sm:$0xf] }
 0x437   : > { %3424 = vmatmul.bf16.gmra.mxu3 %v5945_v42  ;;  %v6732_v42 = vld [vmem:[%s10408_s4 + $0x14] sm:$0xf0] }
 0x438   : > { %v6221_v41 = vor.u32 %v6732_v42, %v6220_v50 }
 0x439   : > { %v3216_v26 = vpop.f32.mrf.mxu2 }
 0x43a   : > { %v3217_v22 = vadd.f32 %v3216_v26, %v2728_v53  ;;  %v3385_v1 = vpop.f32.mrf.mxu3  ;;  %v2560_v3 = vpop.f32.mrf.mxu0  ;;  %v5966_v53 = vld [vmem:[%s10409_s5 + $0x18] sm:$0xf0] }
 0x43b   : > { %v2729_v35 = vpop.f32.mrf.mxu1  ;;  %v5969_v54 = vor.u32 %v6795_v38, %v5966_v53 }
 0x43c   : > { %v3386_v28 = vadd.f32 %v3385_v1, %v3217_v22  ;;  %v2730_v47 = vadd.f32 %v2729_v35, %v2560_v3  ;;  %v6731_v22 = vld [vmem:[%s10408_s4 + $0x14] sm:$0xf]  ;;  %v6222_v1 = vld [vmem:[%s10408_s4 + $0x18] sm:$0xf0]  ;;  %v5965_v35 = vor.u32 %v6796_v31, %v5964_v33 }
 0x43d   : > { %v6225_v61 = vor.u32 %v6731_v22, %v6222_v1 }
 0x43e   : > { %3479 = vst [vmem:[%s8637_s0 + $0x588] sm:$0xff] %v3386_v28 }
 0x441   : > { %v3218_v55 = vpop.f32.mrf.mxu2 }
 0x442   : > { %v3219_v63 = vadd.f32 %v3218_v55, %v2730_v47  ;;  %v3387_v29 = vpop.f32.mrf.mxu3  ;;  %v2563_v56 = vpop.f32.mrf.mxu0 }
 0x443   : > { %v2732_v17 = vpop.f32.mrf.mxu1 }
 0x444   : > { %v3388_v10 = vadd.f32 %v3387_v29, %v3219_v63  ;;  %v2733_v18 = vadd.f32 %v2732_v17, %v2563_v56  ;;  %v6228_v56 = vld [vmem:[%s10408_s4 + $0x20] sm:$0xf]  ;;  %v6798_v17 = vld [vmem:[%s10409_s5 + $0x24] sm:$0xf0] }
 0x445   : > { %2602 = vmatmul.bf16.gmra.mxu0 %v5693_v49 }
 0x446   : > { %3480 = vst [vmem:[%s8637_s0 + $0x598] sm:$0xff] %v3388_v10  ;;  %3260 = vmatmul.bf16.gmra.mxu2 %v5949_v48  ;;  %2771 = vmatmul.bf16.gmra.mxu1 %v5697_v45  ;;  %v5972_v45 = vld [vmem:[%s10409_s5 + $0x20] sm:$0xf]  ;;  %v6797_v10 = vld [vmem:[%s10409_s5 + $0x24] sm:$0xf] }
 0x447   : > { %3429 = vmatmul.bf16.gmra.mxu3 %v5953_v25  ;;  %v6734_v25 = vld [vmem:[%s10408_s4 + $0x24] sm:$0xf0] }
 0x448   : > { %v6229_v58 = vor.u32 %v6734_v25, %v6228_v56 }
 0x449   : > { %v3221_v43 = vpop.f32.mrf.mxu2 }
 0x44a   : > { %v3222_v46 = vadd.f32 %v3221_v43, %v2733_v18  ;;  %v3390_v13 = vpop.f32.mrf.mxu3  ;;  %v2565_v24 = vpop.f32.mrf.mxu0  ;;  %v5974_v18 = vld [vmem:[%s10409_s5 + $0x28] sm:$0xf0] }
 0x44b   : > { %v2734_v51 = vpop.f32.mrf.mxu1  ;;  %v5977_v57 = vor.u32 %v6797_v10, %v5974_v18 }
 0x44c   : > { %v3391_v30 = vadd.f32 %v3390_v13, %v3222_v46  ;;  %v2735_v11 = vadd.f32 %v2734_v51, %v2565_v24  ;;  %v6733_v46 = vld [vmem:[%s10408_s4 + $0x24] sm:$0xf]  ;;  %v6230_v13 = vld [vmem:[%s10408_s4 + $0x28] sm:$0xf0]  ;;  %v5973_v51 = vor.u32 %v6798_v17, %v5972_v45 }
 0x44d   : > { %v6233_v9 = vor.u32 %v6733_v46, %v6230_v13 }
 0x44e   : > { %3481 = vst [vmem:[%s8637_s0 + $0x5a8] sm:$0xff] %v3391_v30 }
 0x451   : > { %v3223_v36 = vpop.f32.mrf.mxu2 }
 0x452   : > { %v3224_v7 = vadd.f32 %v3223_v36, %v2735_v11  ;;  %v3392_v14 = vpop.f32.mrf.mxu3  ;;  %v2568_v27 = vpop.f32.mrf.mxu0 }
 0x453   : > { %v2737_v4 = vpop.f32.mrf.mxu1 }
 0x454   : > { %v3393_v62 = vadd.f32 %v3392_v14, %v3224_v7  ;;  %v2738_v20 = vadd.f32 %v2737_v4, %v2568_v27  ;;  %v6236_v27 = vld [vmem:[%s10408_s4 + $0x30] sm:$0xf]  ;;  %v6800_v4 = vld [vmem:[%s10409_s5 + $0x34] sm:$0xf0] }
 0x455   : > { %3987 = vmatmul.bf16.vlgmr.msrb.gmra.mxu0 %v5957_v34 }
 0x456   : > { %3482 = vst [vmem:[%s8637_s0 + $0x5b8] sm:$0xff] %v3393_v62  ;;  %4645 = vmatmul.bf16.vlgmr.msrb.gmra.mxu2 %v6213_v19  ;;  %4156 = vmatmul.bf16.vlgmr.msrb.gmra.mxu1 %v5961_v44  ;;  %v5980_v44 = vld [vmem:[%s10409_s5 + $0x30] sm:$0xf]  ;;  %v6799_v62 = vld [vmem:[%s10409_s5 + $0x34] sm:$0xf] }
 0x457   : > { %4814 = vmatmul.bf16.vlgmr.msrb.gmra.mxu3 %v6217_v60  ;;  %v6736_v60 = vld [vmem:[%s10408_s4 + $0x34] sm:$0xf0] }
 0x458   : > { %v6237_v33 = vor.u32 %v6736_v60, %v6236_v27 }
 0x459   : > { %v3226_v16 = vpop.f32.mrf.mxu2 }
 0x45a   : > { %v3227_v2 = vadd.f32 %v3226_v16, %v2738_v20  ;;  %v3395_v40 = vpop.f32.mrf.mxu3  ;;  %v2570_v52 = vpop.f32.mrf.mxu0  ;;  %v5982_v20 = vld [vmem:[%s10409_s5 + $0x38] sm:$0xf0] }
 0x45b   : > { %v2739_v6 = vpop.f32.mrf.mxu1  ;;  %v5985_v42 = vor.u32 %v6799_v62, %v5982_v20 }
 0x45c   : > { %v3396_v12 = vadd.f32 %v3395_v40, %v3227_v2  ;;  %v2740_v26 = vadd.f32 %v2739_v6, %v2570_v52  ;;  %v6735_v2 = vld [vmem:[%s10408_s4 + $0x34] sm:$0xf]  ;;  %v6238_v40 = vld [vmem:[%s10408_s4 + $0x38] sm:$0xf0]  ;;  %v5981_v6 = vor.u32 %v6800_v4, %v5980_v44 }
 0x45d   : > { %v6241_v53 = vor.u32 %v6735_v2, %v6238_v40 }
 0x45e   : > { %3483 = vst [vmem:[%s8637_s0 + $0x608] sm:$0xff] %v3396_v12 }
 0x461   : > { %v3228_v3 = vpop.f32.mrf.mxu2 }
 0x462   : > { %v3229_v28 = vadd.f32 %v3228_v3, %v2740_v26  ;;  %v3397_v23 = vpop.f32.mrf.mxu3  ;;  %v2573_v37 = vpop.f32.mrf.mxu0 }
 0x463   : > { %v2742_v39 = vpop.f32.mrf.mxu1 }
 0x464   : > { %v3398_v47 = vadd.f32 %v3397_v23, %v3229_v28  ;;  %v2743_v21 = vadd.f32 %v2742_v39, %v2573_v37  ;;  %v6244_v37 = vld [vmem:[%s10408_s4 + $0x40] sm:$0xf]  ;;  %v6802_v39 = vld [vmem:[%s10409_s5 + $0x44] sm:$0xf0] }
 0x465   : > { %3992 = vmatmul.bf16.gmra.mxu0 %v5965_v35 }
 0x466   : > { %3484 = vst [vmem:[%s8637_s0 + $0x618] sm:$0xff] %v3398_v47  ;;  %4650 = vmatmul.bf16.gmra.mxu2 %v6221_v41  ;;  %4161 = vmatmul.bf16.gmra.mxu1 %v5969_v54  ;;  %v5988_v54 = vld [vmem:[%s10409_s5 + $0x40] sm:$0xf]  ;;  %v6801_v47 = vld [vmem:[%s10409_s5 + $0x44] sm:$0xf] }
 0x467   : > { %4819 = vmatmul.bf16.gmra.mxu3 %v6225_v61  ;;  %v6738_v61 = vld [vmem:[%s10408_s4 + $0x44] sm:$0xf0] }
 0x468   : > { %v6245_v45 = vor.u32 %v6738_v61, %v6244_v37 }
 0x469   : > { %v3231_v15 = vpop.f32.mrf.mxu2 }
 0x46a   : > { %v3232_v55 = vadd.f32 %v3231_v15, %v2743_v21  ;;  %v3400_v49 = vpop.f32.mrf.mxu3  ;;  %v2575_v63 = vpop.f32.mrf.mxu0  ;;  %v5990_v21 = vld [vmem:[%s10409_s5 + $0x48] sm:$0xf0] }
 0x46b   : > { %v2744_v29 = vpop.f32.mrf.mxu1  ;;  %v5993_v25 = vor.u32 %v6801_v47, %v5990_v21 }
 0x46c   : > { %v3401_v48 = vadd.f32 %v3400_v49, %v3232_v55  ;;  %v2745_v43 = vadd.f32 %v2744_v29, %v2575_v63  ;;  %v6737_v55 = vld [vmem:[%s10408_s4 + $0x44] sm:$0xf]  ;;  %v6246_v49 = vld [vmem:[%s10408_s4 + $0x48] sm:$0xf0]  ;;  %v5989_v29 = vor.u32 %v6802_v39, %v5988_v54 }
 0x46d   : > { %v6249_v18 = vor.u32 %v6737_v55, %v6246_v49 }
 0x46e   : > { %3485 = vst [vmem:[%s8637_s0 + $0x628] sm:$0xff] %v3401_v48 }
 0x471   : > { %v3233_v24 = vpop.f32.mrf.mxu2 }
 0x472   : > { %v3234_v30 = vadd.f32 %v3233_v24, %v2745_v43  ;;  %v3402_v8 = vpop.f32.mrf.mxu3  ;;  %v2578_v0 = vpop.f32.mrf.mxu0 }
 0x473   : > { %v2747_v32 = vpop.f32.mrf.mxu1 }
 0x474   : > { %v3403_v11 = vadd.f32 %v3402_v8, %v3234_v30  ;;  %v2748_v59 = vadd.f32 %v2747_v32, %v2578_v0  ;;  %v6252_v0 = vld [vmem:[%s10408_s4 + $0x50] sm:$0xf]  ;;  %v6804_v32 = vld [vmem:[%s10409_s5 + $0x54] sm:$0xf0] }
 0x475   : > { %3997 = vmatmul.bf16.gmra.mxu0 %v5973_v51 }
 0x476   : > { %3486 = vst [vmem:[%s8637_s0 + $0x638] sm:$0xff] %v3403_v11  ;;  %4655 = vmatmul.bf16.gmra.mxu2 %v6229_v58  ;;  %4166 = vmatmul.bf16.gmra.mxu1 %v5977_v57  ;;  %v5996_v57 = vld [vmem:[%s10409_s5 + $0x50] sm:$0xf]  ;;  %v6803_v11 = vld [vmem:[%s10409_s5 + $0x54] sm:$0xf] }
 0x477   : > { %4824 = vmatmul.bf16.gmra.mxu3 %v6233_v9  ;;  %v6740_v9 = vld [vmem:[%s10408_s4 + $0x54] sm:$0xf0] }
 0x478   : > { %v6253_v44 = vor.u32 %v6740_v9, %v6252_v0 }
 0x479   : > { %v3236_v5 = vpop.f32.mrf.mxu2 }
 0x47a   : > { %v3237_v36 = vadd.f32 %v3236_v5, %v2748_v59  ;;  %v3405_v34 = vpop.f32.mrf.mxu3  ;;  %v2580_v7 = vpop.f32.mrf.mxu0  ;;  %v5998_v59 = vld [vmem:[%s10409_s5 + $0x58] sm:$0xf0] }
 0x47b   : > { %v2749_v14 = vpop.f32.mrf.mxu1  ;;  %v6001_v60 = vor.u32 %v6803_v11, %v5998_v59 }
 0x47c   : > { %v3406_v19 = vadd.f32 %v3405_v34, %v3237_v36  ;;  %v2750_v16 = vadd.f32 %v2749_v14, %v2580_v7  ;;  %v6739_v36 = vld [vmem:[%s10408_s4 + $0x54] sm:$0xf]  ;;  %v6254_v34 = vld [vmem:[%s10408_s4 + $0x58] sm:$0xf0]  ;;  %v5997_v14 = vor.u32 %v6804_v32, %v5996_v57 }
 0x47d   : > { %v6257_v20 = vor.u32 %v6739_v36, %v6254_v34 }
 0x47e   : > { %3487 = vst [vmem:[%s8637_s0 + $0x688] sm:$0xff] %v3406_v19 }
 0x481   : > { %v3238_v52 = vpop.f32.mrf.mxu2 }
 0x482   : > { %v3239_v12 = vadd.f32 %v3238_v52, %v2750_v16  ;;  %v3407_v50 = vpop.f32.mrf.mxu3  ;;  %v2583_v31 = vpop.f32.mrf.mxu0 }
 0x483   : > { %v2752_v38 = vpop.f32.mrf.mxu1 }
 0x484   : > { %v3408_v26 = vadd.f32 %v3407_v50, %v3239_v12  ;;  %v2753_v22 = vadd.f32 %v2752_v38, %v2583_v31  ;;  %v6260_v31 = vld [vmem:[%s10408_s4 + $0x60] sm:$0xf]  ;;  %v6806_v38 = vld [vmem:[%s10409_s5 + $0x64] sm:$0xf0] }
 0x485   : > { %4002 = vmatmul.bf16.gmra.mxu0 %v5981_v6 }
 0x486   : > { %3488 = vst [vmem:[%s8637_s0 + $0x698] sm:$0xff] %v3408_v26  ;;  %4660 = vmatmul.bf16.gmra.mxu2 %v6237_v33  ;;  %4171 = vmatmul.bf16.gmra.mxu1 %v5985_v42  ;;  %v6004_v42 = vld [vmem:[%s10409_s5 + $0x60] sm:$0xf]  ;;  %v6805_v26 = vld [vmem:[%s10409_s5 + $0x64] sm:$0xf] }
 0x487   : > { %4829 = vmatmul.bf16.gmra.mxu3 %v6241_v53  ;;  %v6742_v53 = vld [vmem:[%s10408_s4 + $0x64] sm:$0xf0] }
 0x488   : > { %v6261_v54 = vor.u32 %v6742_v53, %v6260_v31 }
 0x489   : > { %v3241_v1 = vpop.f32.mrf.mxu2 }
 0x48a   : > { %v3242_v3 = vadd.f32 %v3241_v1, %v2753_v22  ;;  %v3410_v35 = vpop.f32.mrf.mxu3  ;;  %v2585_v28 = vpop.f32.mrf.mxu0  ;;  %v6006_v22 = vld [vmem:[%s10409_s5 + $0x68] sm:$0xf0] }
 0x48b   : > { %v2754_v23 = vpop.f32.mrf.mxu1  ;;  %v6009_v61 = vor.u32 %v6805_v26, %v6006_v22 }
 0x48c   : > { %v3411_v41 = vadd.f32 %v3410_v35, %v3242_v3  ;;  %v2755_v15 = vadd.f32 %v2754_v23, %v2585_v28  ;;  %v6741_v3 = vld [vmem:[%s10408_s4 + $0x64] sm:$0xf]  ;;  %v6262_v35 = vld [vmem:[%s10408_s4 + $0x68] sm:$0xf0]  ;;  %v6005_v23 = vor.u32 %v6806_v38, %v6004_v42 }
 0x48d   : > { %v6265_v21 = vor.u32 %v6741_v3, %v6262_v35 }
 0x48e   : > { %3489 = vst [vmem:[%s8637_s0 + $0x6a8] sm:$0xff] %v3411_v41 }
 0x491   : > { %v3243_v63 = vpop.f32.mrf.mxu2 }
 0x492   : > { %v3244_v48 = vadd.f32 %v3243_v63, %v2755_v15  ;;  %v3412_v56 = vpop.f32.mrf.mxu3  ;;  %v2588_v17 = vpop.f32.mrf.mxu0 }
 0x493   : > { %v2757_v10 = vpop.f32.mrf.mxu1 }
 0x494   : > { %v3413_v43 = vadd.f32 %v3412_v56, %v3244_v48  ;;  %v2758_v46 = vadd.f32 %v2757_v10, %v2588_v17  ;;  %v6268_v17 = vld [vmem:[%s10408_s4 + $0x70] sm:$0xf]  ;;  %v6808_v10 = vld [vmem:[%s10409_s5 + $0x74] sm:$0xf0] }
 0x495   : > { %4007 = vmatmul.bf16.gmra.mxu0 %v5989_v29 }
 0x496   : > { %3490 = vst [vmem:[%s8637_s0 + $0x6b8] sm:$0xff] %v3413_v43  ;;  %4665 = vmatmul.bf16.gmra.mxu2 %v6245_v45  ;;  %4176 = vmatmul.bf16.gmra.mxu1 %v5993_v25  ;;  %v6012_v25 = vld [vmem:[%s10409_s5 + $0x70] sm:$0xf]  ;;  %v6807_v43 = vld [vmem:[%s10409_s5 + $0x74] sm:$0xf] }
 0x497   : > { %4834 = vmatmul.bf16.gmra.mxu3 %v6249_v18  ;;  %v6744_v18 = vld [vmem:[%s10408_s4 + $0x74] sm:$0xf0] }
 0x498   : > { %v6269_v57 = vor.u32 %v6744_v18, %v6268_v17 }
 0x499   : > { %v3246_v13 = vpop.f32.mrf.mxu2 }
 0x49a   : > { %v3247_v24 = vadd.f32 %v3246_v13, %v2758_v46  ;;  %v3415_v51 = vpop.f32.mrf.mxu3  ;;  %v2590_v30 = vpop.f32.mrf.mxu0  ;;  %v6014_v46 = vld [vmem:[%s10409_s5 + $0x78] sm:$0xf0] }
 0x49b   : > { %v2759_v8 = vpop.f32.mrf.mxu1  ;;  %v6017_v9 = vor.u32 %v6807_v43, %v6014_v46 }
 0x49c   : > { %v3416_v58 = vadd.f32 %v3415_v51, %v3247_v24  ;;  %v2760_v5 = vadd.f32 %v2759_v8, %v2590_v30  ;;  %v6743_v24 = vld [vmem:[%s10408_s4 + $0x74] sm:$0xf]  ;;  %v6270_v51 = vld [vmem:[%s10408_s4 + $0x78] sm:$0xf0]  ;;  %v6013_v8 = vor.u32 %v6808_v10, %v6012_v25 }
 0x49d   : > { %v6273_v59 = vor.u32 %v6743_v24, %v6270_v51 }
 0x49e   : > { %3491 = vst [vmem:[%s8637_s0 + $0x708] sm:$0xff] %v3416_v58 }
 0x4a1   : > { %v3248_v7 = vpop.f32.mrf.mxu2 }
 0x4a2   : > { %v3249_v19 = vadd.f32 %v3248_v7, %v2760_v5  ;;  %v3417_v27 = vpop.f32.mrf.mxu3  ;;  %v2593_v4 = vpop.f32.mrf.mxu0 }
 0x4a3   : > { %v2762_v62 = vpop.f32.mrf.mxu1 }
 0x4a4   : > { %v3418_v16 = vadd.f32 %v3417_v27, %v3249_v19  ;;  %v2763_v2 = vadd.f32 %v2762_v62, %v2593_v4  ;;  %v6276_v4 = vld [vmem:[%s10408_s4 + $0x80] sm:$0xf]  ;;  %v6810_v62 = vld [vmem:[%s10409_s5 + $0x84] sm:$0xf0] }
 0x4a5   : > { %4012 = vmatmul.bf16.gmra.mxu0 %v5997_v14 }
 0x4a6   : > { %3492 = vst [vmem:[%s8637_s0 + $0x718] sm:$0xff] %v3418_v16  ;;  %4670 = vmatmul.bf16.gmra.mxu2 %v6253_v44  ;;  %4181 = vmatmul.bf16.gmra.mxu1 %v6001_v60  ;;  %v6020_v60 = vld [vmem:[%s10409_s5 + $0x80] sm:$0xf]  ;;  %v6809_v16 = vld [vmem:[%s10409_s5 + $0x84] sm:$0xf] }
 0x4a7   : > { %4839 = vmatmul.bf16.gmra.mxu3 %v6257_v20  ;;  %v6746_v20 = vld [vmem:[%s10408_s4 + $0x84] sm:$0xf0] }
 0x4a8   : > { %v6277_v42 = vor.u32 %v6746_v20, %v6276_v4 }
 0x4a9   : > { %v3251_v40 = vpop.f32.mrf.mxu2 }
 0x4aa   : > { %v3252_v52 = vadd.f32 %v3251_v40, %v2763_v2  ;;  %v3420_v6 = vpop.f32.mrf.mxu3  ;;  %v2595_v12 = vpop.f32.mrf.mxu0  ;;  %v6022_v2 = vld [vmem:[%s10409_s5 + $0x88] sm:$0xf0] }
 0x4ab   : > { %v2764_v50 = vpop.f32.mrf.mxu1  ;;  %v6025_v53 = vor.u32 %v6809_v16, %v6022_v2 }
 0x4ac   : > { %v3421_v33 = vadd.f32 %v3420_v6, %v3252_v52  ;;  %v2765_v1 = vadd.f32 %v2764_v50, %v2595_v12  ;;  %v6745_v52 = vld [vmem:[%s10408_s4 + $0x84] sm:$0xf]  ;;  %v6278_v6 = vld [vmem:[%s10408_s4 + $0x88] sm:$0xf0]  ;;  %v6021_v50 = vor.u32 %v6810_v62, %v6020_v60 }
 0x4ad   : > { %v6281_v22 = vor.u32 %v6745_v52, %v6278_v6 }
 0x4ae   : > { %3493 = vst [vmem:[%s8637_s0 + $0x728] sm:$0xff] %v3421_v33 }
 0x4b1   : > { %v3253_v28 = vpop.f32.mrf.mxu2 }
 0x4b2   : > { %v3254_v41 = vadd.f32 %v3253_v28, %v2765_v1  ;;  %v3422_v37 = vpop.f32.mrf.mxu3  ;;  %v2598_v39 = vpop.f32.mrf.mxu0 }
 0x4b3   : > { %v2767_v47 = vpop.f32.mrf.mxu1 }
 0x4b4   : > { %v3423_v15 = vadd.f32 %v3422_v37, %v3254_v41  ;;  %v2768_v55 = vadd.f32 %v2767_v47, %v2598_v39  ;;  %v6284_v39 = vld [vmem:[%s10408_s4 + $0x90] sm:$0xf]  ;;  %v6812_v47 = vld [vmem:[%s10409_s5 + $0x94] sm:$0xf0] }
 0x4b5   : > { %4017 = vmatmul.bf16.gmra.mxu0 %v6005_v23 }
 0x4b6   : > { %3494 = vst [vmem:[%s8637_s0 + $0x738] sm:$0xff] %v3423_v15  ;;  %4675 = vmatmul.bf16.gmra.mxu2 %v6261_v54  ;;  %4186 = vmatmul.bf16.gmra.mxu1 %v6009_v61  ;;  %v6028_v61 = vld [vmem:[%s10409_s5 + $0x90] sm:$0xf]  ;;  %v6811_v15 = vld [vmem:[%s10409_s5 + $0x94] sm:$0xf] }
 0x4b7   : > { %4844 = vmatmul.bf16.gmra.mxu3 %v6265_v21  ;;  %v6748_v21 = vld [vmem:[%s10408_s4 + $0x94] sm:$0xf0] }
 0x4b8   : > { %v6285_v25 = vor.u32 %v6748_v21, %v6284_v39 }
 0x4b9   : > { %v3256_v49 = vpop.f32.mrf.mxu2 }
 0x4ba   : > { %v3257_v63 = vadd.f32 %v3256_v49, %v2768_v55  ;;  %v3425_v29 = vpop.f32.mrf.mxu3  ;;  %v2600_v48 = vpop.f32.mrf.mxu0  ;;  %v6030_v55 = vld [vmem:[%s10409_s5 + $0x98] sm:$0xf0] }
 0x4bb   : > { %v2769_v56 = vpop.f32.mrf.mxu1  ;;  %v6033_v18 = vor.u32 %v6811_v15, %v6030_v55 }
 0x4bc   : > { %v3426_v45 = vadd.f32 %v3425_v29, %v3257_v63  ;;  %v2770_v13 = vadd.f32 %v2769_v56, %v2600_v48  ;;  %v6747_v63 = vld [vmem:[%s10408_s4 + $0x94] sm:$0xf]  ;;  %v6286_v29 = vld [vmem:[%s10408_s4 + $0x98] sm:$0xf0]  ;;  %v6029_v56 = vor.u32 %v6812_v47, %v6028_v61 }
 0x4bd   : > { %v6289_v46 = vor.u32 %v6747_v63, %v6286_v29 }
 0x4be   : > { %3495 = vst [vmem:[%s8637_s0 + $0x788] sm:$0xff] %v3426_v45 }
 0x4c1   : > { %v3258_v30 = vpop.f32.mrf.mxu2 }
 0x4c2   : > { %v3259_v58 = vadd.f32 %v3258_v30, %v2770_v13  ;;  %v3427_v0 = vpop.f32.mrf.mxu3  ;;  %v2603_v32 = vpop.f32.mrf.mxu0 }
 0x4c3   : > { %v2772_v11 = vpop.f32.mrf.mxu1 }
 0x4c4   : > { %v3428_v5 = vadd.f32 %v3427_v0, %v3259_v58  ;;  %v2773_v36 = vadd.f32 %v2772_v11, %v2603_v32  ;;  %v6292_v32 = vld [vmem:[%s10408_s4 + $0xa0] sm:$0xf]  ;;  %v6814_v11 = vld [vmem:[%s10409_s5 + $0xa4] sm:$0xf0] }
 0x4c5   : > { %4022 = vmatmul.bf16.gmra.mxu0 %v6013_v8 }
 0x4c6   : > { %3496 = vst [vmem:[%s8637_s0 + $0x798] sm:$0xff] %v3428_v5  ;;  %4680 = vmatmul.bf16.gmra.mxu2 %v6269_v57  ;;  %4191 = vmatmul.bf16.gmra.mxu1 %v6017_v9  ;;  %v6036_v9 = vld [vmem:[%s10409_s5 + $0xa0] sm:$0xf]  ;;  %v6813_v5 = vld [vmem:[%s10409_s5 + $0xa4] sm:$0xf] }
 0x4c7   : > { %4849 = vmatmul.bf16.gmra.mxu3 %v6273_v59  ;;  %v6750_v59 = vld [vmem:[%s10408_s4 + $0xa4] sm:$0xf0] }
 0x4c8   : > { %v6293_v60 = vor.u32 %v6750_v59, %v6292_v32 }
 0x4c9   : > { %v3261_v34 = vpop.f32.mrf.mxu2 }
 0x4ca   : > { %v3262_v7 = vadd.f32 %v3261_v34, %v2773_v36  ;;  %v3430_v14 = vpop.f32.mrf.mxu3  ;;  %v2605_v19 = vpop.f32.mrf.mxu0  ;;  %v6038_v36 = vld [vmem:[%s10409_s5 + $0xa8] sm:$0xf0] }
 0x4cb   : > { %v2774_v27 = vpop.f32.mrf.mxu1  ;;  %v6041_v20 = vor.u32 %v6813_v5, %v6038_v36 }
 0x4cc   : > { %v3431_v44 = vadd.f32 %v3430_v14, %v3262_v7  ;;  %v2775_v40 = vadd.f32 %v2774_v27, %v2605_v19  ;;  %v6749_v7 = vld [vmem:[%s10408_s4 + $0xa4] sm:$0xf]  ;;  %v6294_v14 = vld [vmem:[%s10408_s4 + $0xa8] sm:$0xf0]  ;;  %v6037_v27 = vor.u32 %v6814_v11, %v6036_v9 }
 0x4cd   : > { %v6297_v2 = vor.u32 %v6749_v7, %v6294_v14 }
 0x4ce   : > { %3497 = vst [vmem:[%s8637_s0 + $0x7a8] sm:$0xff] %v3431_v44 }
 0x4d1   : > { %v3263_v12 = vpop.f32.mrf.mxu2 }
 0x4d2   : > { %v3264_v33 = vadd.f32 %v3263_v12, %v2775_v40  ;;  %v3432_v31 = vpop.f32.mrf.mxu3  ;;  %v3988_v38 = vpop.f32.mrf.mxu0 }
 0x4d3   : > { %v4157_v26 = vpop.f32.mrf.mxu1 }
 0x4d4   : > { %v3433_v1 = vadd.f32 %v3432_v31, %v3264_v33  ;;  %v4158_v3 = vadd.f32 %v4157_v26, %v3988_v38  ;;  %v6300_v38 = vld [vmem:[%s10408_s4 + $0xb0] sm:$0xf]  ;;  %v6816_v26 = vld [vmem:[%s10409_s5 + $0xb4] sm:$0xf0] }
 0x4d5   : > { %4027 = vmatmul.bf16.gmra.mxu0 %v6021_v50 }
 0x4d6   : > { %3498 = vst [vmem:[%s8637_s0 + $0x7b8] sm:$0xff] %v3433_v1  ;;  %4685 = vmatmul.bf16.gmra.mxu2 %v6277_v42  ;;  %4196 = vmatmul.bf16.gmra.mxu1 %v6025_v53  ;;  %v6044_v53 = vld [vmem:[%s10409_s5 + $0xb0] sm:$0xf]  ;;  %v6815_v1 = vld [vmem:[%s10409_s5 + $0xb4] sm:$0xf] }
 0x4d7   : > { %4854 = vmatmul.bf16.gmra.mxu3 %v6281_v22  ;;  %v6752_v22 = vld [vmem:[%s10408_s4 + $0xb4] sm:$0xf0] }
 0x4d8   : > { %v6301_v61 = vor.u32 %v6752_v22, %v6300_v38 }
 0x4d9   : > { %v4646_v35 = vpop.f32.mrf.mxu2 }
 0x4da   : > { %v4647_v28 = vadd.f32 %v4646_v35, %v4158_v3  ;;  %v4815_v23 = vpop.f32.mrf.mxu3  ;;  %v3990_v41 = vpop.f32.mrf.mxu0  ;;  %v6046_v3 = vld [vmem:[%s10409_s5 + $0xb8] sm:$0xf0] }
 0x4db   : > { %v4159_v37 = vpop.f32.mrf.mxu1  ;;  %v6049_v21 = vor.u32 %v6815_v1, %v6046_v3 }
 0x4dc   : > { %v4816_v54 = vadd.f32 %v4815_v23, %v4647_v28  ;;  %v4160_v49 = vadd.f32 %v4159_v37, %v3990_v41  ;;  %v6751_v28 = vld [vmem:[%s10408_s4 + $0xb4] sm:$0xf]  ;;  %v6302_v23 = vld [vmem:[%s10408_s4 + $0xb8] sm:$0xf0]  ;;  %v6045_v37 = vor.u32 %v6816_v26, %v6044_v53 }
 0x4dd   : > { %v6305_v55 = vor.u32 %v6751_v28, %v6302_v23 }
 0x4de   : > { %6466 = vst [vmem:[%s8637_s0 + $0x48] sm:$0xff] %v4816_v54 }
 0x4e1   : > { %v4648_v48 = vpop.f32.mrf.mxu2 }
 0x4e2   : > { %v4649_v45 = vadd.f32 %v4648_v48, %v4160_v49  ;;  %v4817_v17 = vpop.f32.mrf.mxu3  ;;  %v3993_v10 = vpop.f32.mrf.mxu0 }
 0x4e3   : > { %v4162_v43 = vpop.f32.mrf.mxu1 }
 0x4e4   : > { %v4818_v13 = vadd.f32 %v4817_v17, %v4649_v45  ;;  %v4163_v24 = vadd.f32 %v4162_v43, %v3993_v10  ;;  %v6308_v10 = vld [vmem:[%s10408_s4 + $0xc0] sm:$0xf]  ;;  %v6818_v43 = vld [vmem:[%s10409_s5 + $0xc4] sm:$0xf0] }
 0x4e5   : > { %4032 = vmatmul.bf16.gmra.mxu0 %v6029_v56 }
 0x4e6   : > { %6467 = vst [vmem:[%s8637_s0 + $0x58] sm:$0xff] %v4818_v13  ;;  %4690 = vmatmul.bf16.gmra.mxu2 %v6285_v25  ;;  %4201 = vmatmul.bf16.gmra.mxu1 %v6033_v18  ;;  %v6052_v18 = vld [vmem:[%s10409_s5 + $0xc0] sm:$0xf]  ;;  %v6817_v13 = vld [vmem:[%s10409_s5 + $0xc4] sm:$0xf] }
 0x4e7   : > { %4859 = vmatmul.bf16.gmra.mxu3 %v6289_v46  ;;  %v6754_v46 = vld [vmem:[%s10408_s4 + $0xc4] sm:$0xf0] }
 0x4e8   : > { %v6309_v9 = vor.u32 %v6754_v46, %v6308_v10 }
 0x4e9   : > { %v4651_v51 = vpop.f32.mrf.mxu2 }
 0x4ea   : > { %v4652_v30 = vadd.f32 %v4651_v51, %v4163_v24  ;;  %v4820_v8 = vpop.f32.mrf.mxu3  ;;  %v3995_v58 = vpop.f32.mrf.mxu0  ;;  %v6054_v24 = vld [vmem:[%s10409_s5 + $0xc8] sm:$0xf0] }
 0x4eb   : > { %v4164_v0 = vpop.f32.mrf.mxu1  ;;  %v6057_v59 = vor.u32 %v6817_v13, %v6054_v24 }
 0x4ec   : > { %v4821_v57 = vadd.f32 %v4820_v8, %v4652_v30  ;;  %v4165_v34 = vadd.f32 %v4164_v0, %v3995_v58  ;;  %v6753_v30 = vld [vmem:[%s10408_s4 + $0xc4] sm:$0xf]  ;;  %v6310_v8 = vld [vmem:[%s10408_s4 + $0xc8] sm:$0xf0]  ;;  %v6053_v0 = vor.u32 %v6818_v43, %v6052_v18 }
 0x4ed   : > { %v6313_v36 = vor.u32 %v6753_v30, %v6310_v8 }
 0x4ee   : > { %6468 = vst [vmem:[%s8637_s0 + $0x68] sm:$0xff] %v4821_v57 }
 0x4f1   : > { %v4653_v19 = vpop.f32.mrf.mxu2 }
 0x4f2   : > { %v4654_v44 = vadd.f32 %v4653_v19, %v4165_v34  ;;  %v4822_v4 = vpop.f32.mrf.mxu3  ;;  %v3998_v62 = vpop.f32.mrf.mxu0 }
 0x4f3   : > { %v4167_v16 = vpop.f32.mrf.mxu1 }
 0x4f4   : > { %v4823_v40 = vadd.f32 %v4822_v4, %v4654_v44  ;;  %v4168_v52 = vadd.f32 %v4167_v16, %v3998_v62  ;;  %v6316_v62 = vld [vmem:[%s10408_s4 + $0xd0] sm:$0xf]  ;;  %v6820_v16 = vld [vmem:[%s10409_s5 + $0xd4] sm:$0xf0] }
 0x4f5   : > { %4037 = vmatmul.bf16.gmra.mxu0 %v6037_v27 }
 0x4f6   : > { %6469 = vst [vmem:[%s8637_s0 + $0x78] sm:$0xff] %v4823_v40  ;;  %4695 = vmatmul.bf16.gmra.mxu2 %v6293_v60  ;;  %4206 = vmatmul.bf16.gmra.mxu1 %v6041_v20  ;;  %v6060_v20 = vld [vmem:[%s10409_s5 + $0xd0] sm:$0xf]  ;;  %v6819_v40 = vld [vmem:[%s10409_s5 + $0xd4] sm:$0xf] }
 0x4f7   : > { %4864 = vmatmul.bf16.gmra.mxu3 %v6297_v2  ;;  %v6756_v2 = vld [vmem:[%s10408_s4 + $0xd4] sm:$0xf0] }
 0x4f8   : > { %v6317_v53 = vor.u32 %v6756_v2, %v6316_v62 }
 0x4f9   : > { %v4656_v6 = vpop.f32.mrf.mxu2 }
 0x4fa   : > { %v4657_v12 = vadd.f32 %v4656_v6, %v4168_v52  ;;  %v4825_v50 = vpop.f32.mrf.mxu3  ;;  %v4000_v33 = vpop.f32.mrf.mxu0  ;;  %v6062_v52 = vld [vmem:[%s10409_s5 + $0xd8] sm:$0xf0] }
 0x4fb   : > { %v4169_v31 = vpop.f32.mrf.mxu1  ;;  %v6065_v22 = vor.u32 %v6819_v40, %v6062_v52 }
 0x4fc   : > { %v4826_v42 = vadd.f32 %v4825_v50, %v4657_v12  ;;  %v4170_v35 = vadd.f32 %v4169_v31, %v4000_v33  ;;  %v6755_v12 = vld [vmem:[%s10408_s4 + $0xd4] sm:$0xf]  ;;  %v6318_v50 = vld [vmem:[%s10408_s4 + $0xd8] sm:$0xf0]  ;;  %v6061_v31 = vor.u32 %v6820_v16, %v6060_v20 }
 0x4fd   : > { %v6321_v3 = vor.u32 %v6755_v12, %v6318_v50 }
 0x4fe   : > { %6470 = vst [vmem:[%s8637_s0 + $0xc8] sm:$0xff] %v4826_v42 }
 0x501   : > { %v4658_v41 = vpop.f32.mrf.mxu2 }
 0x502   : > { %v4659_v54 = vadd.f32 %v4658_v41, %v4170_v35  ;;  %v4827_v39 = vpop.f32.mrf.mxu3  ;;  %v4003_v47 = vpop.f32.mrf.mxu0 }
 0x503   : > { %v4172_v15 = vpop.f32.mrf.mxu1 }
 0x504   : > { %v4828_v49 = vadd.f32 %v4827_v39, %v4659_v54  ;;  %v4173_v63 = vadd.f32 %v4172_v15, %v4003_v47  ;;  %v6324_v47 = vld [vmem:[%s10408_s4 + $0xe0] sm:$0xf]  ;;  %v6822_v15 = vld [vmem:[%s10409_s5 + $0xe4] sm:$0xf0] }
 0x505   : > { %4042 = vmatmul.bf16.gmra.mxu0 %v6045_v37 }
 0x506   : > { %6471 = vst [vmem:[%s8637_s0 + $0xd8] sm:$0xff] %v4828_v49  ;;  %4700 = vmatmul.bf16.gmra.mxu2 %v6301_v61  ;;  %4211 = vmatmul.bf16.gmra.mxu1 %v6049_v21  ;;  %v6068_v21 = vld [vmem:[%s10409_s5 + $0xe0] sm:$0xf]  ;;  %v6821_v49 = vld [vmem:[%s10409_s5 + $0xe4] sm:$0xf] }
 0x507   : > { %4869 = vmatmul.bf16.gmra.mxu3 %v6305_v55  ;;  %v6758_v55 = vld [vmem:[%s10408_s4 + $0xe4] sm:$0xf0] }
 0x508   : > { %v6325_v18 = vor.u32 %v6758_v55, %v6324_v47 }
 0x509   : > { %v4661_v29 = vpop.f32.mrf.mxu2 }
 0x50a   : > { %v4662_v48 = vadd.f32 %v4661_v29, %v4173_v63  ;;  %v4830_v56 = vpop.f32.mrf.mxu3  ;;  %v4005_v45 = vpop.f32.mrf.mxu0  ;;  %v6070_v63 = vld [vmem:[%s10409_s5 + $0xe8] sm:$0xf0] }
 0x50b   : > { %v4174_v17 = vpop.f32.mrf.mxu1  ;;  %v6073_v46 = vor.u32 %v6821_v49, %v6070_v63 }
 0x50c   : > { %v4831_v25 = vadd.f32 %v4830_v56, %v4662_v48  ;;  %v4175_v51 = vadd.f32 %v4174_v17, %v4005_v45  ;;  %v6757_v48 = vld [vmem:[%s10408_s4 + $0xe4] sm:$0xf]  ;;  %v6326_v56 = vld [vmem:[%s10408_s4 + $0xe8] sm:$0xf0]  ;;  %v6069_v17 = vor.u32 %v6822_v15, %v6068_v21 }
 0x50d   : > { %v6329_v24 = vor.u32 %v6757_v48, %v6326_v56 }
 0x50e   : > { %6472 = vst [vmem:[%s8637_s0 + $0xe8] sm:$0xff] %v4831_v25 }
 0x511   : > { %v4663_v58 = vpop.f32.mrf.mxu2 }
 0x512   : > { %v4664_v57 = vadd.f32 %v4663_v58, %v4175_v51  ;;  %v4832_v32 = vpop.f32.mrf.mxu3  ;;  %v4008_v11 = vpop.f32.mrf.mxu0 }
 0x513   : > { %v4177_v5 = vpop.f32.mrf.mxu1 }
 0x514   : > { %v4833_v34 = vadd.f32 %v4832_v32, %v4664_v57  ;;  %v4178_v7 = vadd.f32 %v4177_v5, %v4008_v11  ;;  %v6332_v11 = vld [vmem:[%s10408_s4 + $0xf0] sm:$0xf]  ;;  %v6824_v5 = vld [vmem:[%s10409_s5 + $0xf4] sm:$0xf0] }
 0x515   : > { %4047 = vmatmul.bf16.gmra.mxu0 %v6053_v0 }
 0x516   : > { %6473 = vst [vmem:[%s8637_s0 + $0xf8] sm:$0xff] %v4833_v34  ;;  %4705 = vmatmul.bf16.gmra.mxu2 %v6309_v9  ;;  %4216 = vmatmul.bf16.gmra.mxu1 %v6057_v59  ;;  %v6076_v59 = vld [vmem:[%s10409_s5 + $0xf0] sm:$0xf]  ;;  %v6823_v34 = vld [vmem:[%s10409_s5 + $0xf4] sm:$0xf] }
 0x517   : > { %4874 = vmatmul.bf16.gmra.mxu3 %v6313_v36  ;;  %v6760_v36 = vld [vmem:[%s10408_s4 + $0xf4] sm:$0xf0] }
 0x518   : > { %v6333_v20 = vor.u32 %v6760_v36, %v6332_v11 }
 0x519   : > { %v4666_v14 = vpop.f32.mrf.mxu2 }
 0x51a   : > { %v4667_v19 = vadd.f32 %v4666_v14, %v4178_v7  ;;  %v4835_v27 = vpop.f32.mrf.mxu3  ;;  %v4010_v44 = vpop.f32.mrf.mxu0  ;;  %v6078_v7 = vld [vmem:[%s10409_s5 + $0xf8] sm:$0xf0] }
 0x51b   : > { %v4179_v4 = vpop.f32.mrf.mxu1  ;;  %v6081_v2 = vor.u32 %v6823_v34, %v6078_v7 }
 0x51c   : > { %v4836_v60 = vadd.f32 %v4835_v27, %v4667_v19  ;;  %v4180_v6 = vadd.f32 %v4179_v4, %v4010_v44  ;;  %v6759_v19 = vld [vmem:[%s10408_s4 + $0xf4] sm:$0xf]  ;;  %v6334_v27 = vld [vmem:[%s10408_s4 + $0xf8] sm:$0xf0]  ;;  %v6077_v4 = vor.u32 %v6824_v5, %v6076_v59 }
 0x51d   : > { %v6337_v52 = vor.u32 %v6759_v19, %v6334_v27 }
 0x51e   : > { %6474 = vst [vmem:[%s8637_s0 + $0x148] sm:$0xff] %v4836_v60 }
 0x521   : > { %v4668_v33 = vpop.f32.mrf.mxu2 }
 0x522   : > { %v4669_v42 = vadd.f32 %v4668_v33, %v4180_v6  ;;  %v4837_v38 = vpop.f32.mrf.mxu3  ;;  %v4013_v26 = vpop.f32.mrf.mxu0 }
 0x523   : > { %v4182_v1 = vpop.f32.mrf.mxu1 }
 0x524   : > { %v4838_v35 = vadd.f32 %v4837_v38, %v4669_v42  ;;  %v4183_v28 = vadd.f32 %v4182_v1, %v4013_v26  ;;  %v6340_v26 = vld [vmem:[%s10408_s4 + $0x100] sm:$0xf]  ;;  %v6826_v1 = vld [vmem:[%s10409_s5 + $0x104] sm:$0xf0] }
 0x525   : > { %4052 = vmatmul.bf16.gmra.mxu0 %v6061_v31 }
 0x526   : > { %6475 = vst [vmem:[%s8637_s0 + $0x158] sm:$0xff] %v4838_v35  ;;  %4710 = vmatmul.bf16.gmra.mxu2 %v6317_v53  ;;  %4221 = vmatmul.bf16.gmra.mxu1 %v6065_v22  ;;  %v6084_v22 = vld [vmem:[%s10409_s5 + $0x100] sm:$0xf]  ;;  %v6825_v35 = vld [vmem:[%s10409_s5 + $0x104] sm:$0xf] }
 0x527   : > { %4879 = vmatmul.bf16.gmra.mxu3 %v6321_v3  ;;  %v6762_v3 = vld [vmem:[%s10408_s4 + $0x104] sm:$0xf0] }
 0x528   : > { %v6341_v21 = vor.u32 %v6762_v3, %v6340_v26 }
 0x529   : > { %v4671_v23 = vpop.f32.mrf.mxu2 }
 0x52a   : > { %v4672_v41 = vadd.f32 %v4671_v23, %v4183_v28  ;;  %v4840_v37 = vpop.f32.mrf.mxu3  ;;  %v4015_v54 = vpop.f32.mrf.mxu0  ;;  %v6086_v28 = vld [vmem:[%s10409_s5 + $0x108] sm:$0xf0] }
 0x52b   : > { %v4184_v39 = vpop.f32.mrf.mxu1  ;;  %v6089_v55 = vor.u32 %v6825_v35, %v6086_v28 }
 0x52c   : > { %v4841_v61 = vadd.f32 %v4840_v37, %v4672_v41  ;;  %v4185_v29 = vadd.f32 %v4184_v39, %v4015_v54  ;;  %v6761_v41 = vld [vmem:[%s10408_s4 + $0x104] sm:$0xf]  ;;  %v6342_v37 = vld [vmem:[%s10408_s4 + $0x108] sm:$0xf0]  ;;  %v6085_v39 = vor.u32 %v6826_v1, %v6084_v22 }
 0x52d   : > { %v6345_v63 = vor.u32 %v6761_v41, %v6342_v37 }
 0x52e   : > { %6476 = vst [vmem:[%s8637_s0 + $0x168] sm:$0xff] %v4841_v61 }
 0x531   : > { %v4673_v45 = vpop.f32.mrf.mxu2 }
 0x532   : > { %v4674_v25 = vadd.f32 %v4673_v45, %v4185_v29  ;;  %v4842_v10 = vpop.f32.mrf.mxu3  ;;  %v4018_v43 = vpop.f32.mrf.mxu0 }
 0x533   : > { %v4187_v13 = vpop.f32.mrf.mxu1 }
 0x534   : > { %v4843_v51 = vadd.f32 %v4842_v10, %v4674_v25  ;;  %v4188_v30 = vadd.f32 %v4187_v13, %v4018_v43  ;;  %v6348_v43 = vld [vmem:[%s10408_s4 + $0x110] sm:$0xf]  ;;  %v6828_v13 = vld [vmem:[%s10409_s5 + $0x114] sm:$0xf0] }
 0x535   : > { %4057 = vmatmul.bf16.gmra.mxu0 %v6069_v17 }
 0x536   : > { %6477 = vst [vmem:[%s8637_s0 + $0x178] sm:$0xff] %v4843_v51  ;;  %4715 = vmatmul.bf16.gmra.mxu2 %v6325_v18  ;;  %4226 = vmatmul.bf16.gmra.mxu1 %v6073_v46  ;;  %v6092_v46 = vld [vmem:[%s10409_s5 + $0x110] sm:$0xf]  ;;  %v6827_v51 = vld [vmem:[%s10409_s5 + $0x114] sm:$0xf] }
 0x537   : > { %4884 = vmatmul.bf16.gmra.mxu3 %v6329_v24  ;;  %v6764_v24 = vld [vmem:[%s10408_s4 + $0x114] sm:$0xf0] }
 0x538   : > { %v6349_v59 = vor.u32 %v6764_v24, %v6348_v43 }
 0x539   : > { %v4676_v8 = vpop.f32.mrf.mxu2 }
 0x53a   : > { %v4677_v58 = vadd.f32 %v4676_v8, %v4188_v30  ;;  %v4845_v0 = vpop.f32.mrf.mxu3  ;;  %v4020_v57 = vpop.f32.mrf.mxu0  ;;  %v6094_v30 = vld [vmem:[%s10409_s5 + $0x118] sm:$0xf0] }
 0x53b   : > { %v4189_v32 = vpop.f32.mrf.mxu1  ;;  %v6097_v36 = vor.u32 %v6827_v51, %v6094_v30 }
 0x53c   : > { %v4846_v9 = vadd.f32 %v4845_v0, %v4677_v58  ;;  %v4190_v14 = vadd.f32 %v4189_v32, %v4020_v57  ;;  %v6763_v58 = vld [vmem:[%s10408_s4 + $0x114] sm:$0xf]  ;;  %v6350_v0 = vld [vmem:[%s10408_s4 + $0x118] sm:$0xf0]  ;;  %v6093_v32 = vor.u32 %v6828_v13, %v6092_v46 }
 0x53d   : > { %v6353_v7 = vor.u32 %v6763_v58, %v6350_v0 }
 0x53e   : > { %6478 = vst [vmem:[%s8637_s0 + $0x1c8] sm:$0xff] %v4846_v9 }
 0x541   : > { %v4678_v44 = vpop.f32.mrf.mxu2 }
 0x542   : > { %v4679_v60 = vadd.f32 %v4678_v44, %v4190_v14  ;;  %v4847_v62 = vpop.f32.mrf.mxu3  ;;  %v4023_v16 = vpop.f32.mrf.mxu0 }
 0x543   : > { %v4192_v40 = vpop.f32.mrf.mxu1 }
 0x544   : > { %v4848_v6 = vadd.f32 %v4847_v62, %v4679_v60  ;;  %v4193_v12 = vadd.f32 %v4192_v40, %v4023_v16  ;;  %v6356_v16 = vld [vmem:[%s10408_s4 + $0x120] sm:$0xf]  ;;  %v6830_v40 = vld [vmem:[%s10409_s5 + $0x124] sm:$0xf0] }
 0x545   : > { %4062 = vmatmul.bf16.gmra.mxu0 %v6077_v4 }
 0x546   : > { %6479 = vst [vmem:[%s8637_s0 + $0x1d8] sm:$0xff] %v4848_v6  ;;  %4720 = vmatmul.bf16.gmra.mxu2 %v6333_v20  ;;  %4231 = vmatmul.bf16.gmra.mxu1 %v6081_v2  ;;  %v6100_v2 = vld [vmem:[%s10409_s5 + $0x120] sm:$0xf]  ;;  %v6829_v6 = vld [vmem:[%s10409_s5 + $0x124] sm:$0xf] }
 0x547   : > { %4889 = vmatmul.bf16.gmra.mxu3 %v6337_v52  ;;  %v6766_v52 = vld [vmem:[%s10408_s4 + $0x124] sm:$0xf0] }
 0x548   : > { %v6357_v22 = vor.u32 %v6766_v52, %v6356_v16 }
 0x549   : > { %v4681_v50 = vpop.f32.mrf.mxu2 }
 0x54a   : > { %v4682_v33 = vadd.f32 %v4681_v50, %v4193_v12  ;;  %v4850_v31 = vpop.f32.mrf.mxu3  ;;  %v4025_v42 = vpop.f32.mrf.mxu0  ;;  %v6102_v12 = vld [vmem:[%s10409_s5 + $0x128] sm:$0xf0] }
 0x54b   : > { %v4194_v38 = vpop.f32.mrf.mxu1  ;;  %v6105_v3 = vor.u32 %v6829_v6, %v6102_v12 }
 0x54c   : > { %v4851_v53 = vadd.f32 %v4850_v31, %v4682_v33  ;;  %v4195_v23 = vadd.f32 %v4194_v38, %v4025_v42  ;;  %v6765_v33 = vld [vmem:[%s10408_s4 + $0x124] sm:$0xf]  ;;  %v6358_v31 = vld [vmem:[%s10408_s4 + $0x128] sm:$0xf0]  ;;  %v6101_v38 = vor.u32 %v6830_v40, %v6100_v2 }
 0x54d   : > { %v6361_v28 = vor.u32 %v6765_v33, %v6358_v31 }
 0x54e   : > { %6480 = vst [vmem:[%s8637_s0 + $0x1e8] sm:$0xff] %v4851_v53 }
 0x551   : > { %v4683_v54 = vpop.f32.mrf.mxu2 }
 0x552   : > { %v4684_v61 = vadd.f32 %v4683_v54, %v4195_v23  ;;  %v4852_v47 = vpop.f32.mrf.mxu3  ;;  %v4028_v15 = vpop.f32.mrf.mxu0 }
 0x553   : > { %v4197_v49 = vpop.f32.mrf.mxu1 }
 0x554   : > { %v4853_v29 = vadd.f32 %v4852_v47, %v4684_v61  ;;  %v4198_v48 = vadd.f32 %v4197_v49, %v4028_v15  ;;  %v6364_v15 = vld [vmem:[%s10408_s4 + $0x130] sm:$0xf]  ;;  %v6832_v49 = vld [vmem:[%s10409_s5 + $0x134] sm:$0xf0] }
 0x555   : > { %4067 = vmatmul.bf16.gmra.mxu0 %v6085_v39 }
 0x556   : > { %6481 = vst [vmem:[%s8637_s0 + $0x1f8] sm:$0xff] %v4853_v29  ;;  %4725 = vmatmul.bf16.gmra.mxu2 %v6341_v21  ;;  %4236 = vmatmul.bf16.gmra.mxu1 %v6089_v55  ;;  %v6108_v55 = vld [vmem:[%s10409_s5 + $0x130] sm:$0xf]  ;;  %v6831_v29 = vld [vmem:[%s10409_s5 + $0x134] sm:$0xf] }
 0x557   : > { %4894 = vmatmul.bf16.gmra.mxu3 %v6345_v63  ;;  %v6768_v63 = vld [vmem:[%s10408_s4 + $0x134] sm:$0xf0] }
 0x558   : > { %v6365_v46 = vor.u32 %v6768_v63, %v6364_v15 }
 0x559   : > { %v4686_v56 = vpop.f32.mrf.mxu2 }
 0x55a   : > { %v4687_v45 = vadd.f32 %v4686_v56, %v4198_v48  ;;  %v4855_v17 = vpop.f32.mrf.mxu3  ;;  %v4030_v25 = vpop.f32.mrf.mxu0  ;;  %v6110_v48 = vld [vmem:[%s10409_s5 + $0x138] sm:$0xf0] }
 0x55b   : > { %v4199_v10 = vpop.f32.mrf.mxu1  ;;  %v6113_v24 = vor.u32 %v6831_v29, %v6110_v48 }
 0x55c   : > { %v4856_v18 = vadd.f32 %v4855_v17, %v4687_v45  ;;  %v4200_v8 = vadd.f32 %v4199_v10, %v4030_v25  ;;  %v6767_v45 = vld [vmem:[%s10408_s4 + $0x134] sm:$0xf]  ;;  %v6366_v17 = vld [vmem:[%s10408_s4 + $0x138] sm:$0xf0]  ;;  %v6109_v10 = vor.u32 %v6832_v49, %v6108_v55 }
 0x55d   : > { %v6369_v30 = vor.u32 %v6767_v45, %v6366_v17 }
 0x55e   : > { %6482 = vst [vmem:[%s8637_s0 + $0x248] sm:$0xff] %v4856_v18 }
 0x561   : > { %v4688_v57 = vpop.f32.mrf.mxu2 }
 0x562   : > { %v4689_v9 = vadd.f32 %v4688_v57, %v4200_v8  ;;  %v4857_v11 = vpop.f32.mrf.mxu3  ;;  %v4033_v5 = vpop.f32.mrf.mxu0 }
 0x563   : > { %v4202_v34 = vpop.f32.mrf.mxu1 }
 0x564   : > { %v4858_v14 = vadd.f32 %v4857_v11, %v4689_v9  ;;  %v4203_v19 = vadd.f32 %v4202_v34, %v4033_v5  ;;  %v6372_v5 = vld [vmem:[%s10408_s4 + $0x140] sm:$0xf]  ;;  %v6834_v34 = vld [vmem:[%s10409_s5 + $0x144] sm:$0xf0] }
 0x565   : > { %4072 = vmatmul.bf16.gmra.mxu0 %v6093_v32 }
 0x566   : > { %6483 = vst [vmem:[%s8637_s0 + $0x258] sm:$0xff] %v4858_v14  ;;  %4730 = vmatmul.bf16.gmra.mxu2 %v6349_v59  ;;  %4241 = vmatmul.bf16.gmra.mxu1 %v6097_v36  ;;  %v6116_v36 = vld [vmem:[%s10409_s5 + $0x140] sm:$0xf]  ;;  %v6833_v14 = vld [vmem:[%s10409_s5 + $0x144] sm:$0xf] }
 0x567   : > { %4899 = vmatmul.bf16.gmra.mxu3 %v6353_v7  ;;  %v6770_v7 = vld [vmem:[%s10408_s4 + $0x144] sm:$0xf0] }
 0x568   : > { %v6373_v2 = vor.u32 %v6770_v7, %v6372_v5 }
 0x569   : > { %v4691_v27 = vpop.f32.mrf.mxu2 }
 0x56a   : > { %v4692_v44 = vadd.f32 %v4691_v27, %v4203_v19  ;;  %v4860_v4 = vpop.f32.mrf.mxu3  ;;  %v4035_v60 = vpop.f32.mrf.mxu0  ;;  %v6118_v19 = vld [vmem:[%s10409_s5 + $0x148] sm:$0xf0] }
 0x56b   : > { %v4204_v62 = vpop.f32.mrf.mxu1  ;;  %v6121_v52 = vor.u32 %v6833_v14, %v6118_v19 }
 0x56c   : > { %v4861_v20 = vadd.f32 %v4860_v4, %v4692_v44  ;;  %v4205_v50 = vadd.f32 %v4204_v62, %v4035_v60  ;;  %v6769_v44 = vld [vmem:[%s10408_s4 + $0x144] sm:$0xf]  ;;  %v6374_v4 = vld [vmem:[%s10408_s4 + $0x148] sm:$0xf0]  ;;  %v6117_v62 = vor.u32 %v6834_v34, %v6116_v36 }
 0x56d   : > { %v6377_v12 = vor.u32 %v6769_v44, %v6374_v4 }
 0x56e   : > { %6484 = vst [vmem:[%s8637_s0 + $0x268] sm:$0xff] %v4861_v20 }
 0x571   : > { %v4693_v42 = vpop.f32.mrf.mxu2 }
 0x572   : > { %v4694_v53 = vadd.f32 %v4693_v42, %v4205_v50  ;;  %v4862_v26 = vpop.f32.mrf.mxu3  ;;  %v4038_v1 = vpop.f32.mrf.mxu0 }
 0x573   : > { %v4207_v35 = vpop.f32.mrf.mxu1 }
 0x574   : > { %v4863_v23 = vadd.f32 %v4862_v26, %v4694_v53  ;;  %v4208_v41 = vadd.f32 %v4207_v35, %v4038_v1  ;;  %v6380_v1 = vld [vmem:[%s10408_s4 + $0x150] sm:$0xf]  ;;  %v6836_v35 = vld [vmem:[%s10409_s5 + $0x154] sm:$0xf0] }
 0x575   : > { %4077 = vmatmul.bf16.gmra.mxu0 %v6101_v38 }
 0x576   : > { %6485 = vst [vmem:[%s8637_s0 + $0x278] sm:$0xff] %v4863_v23  ;;  %4735 = vmatmul.bf16.gmra.mxu2 %v6357_v22  ;;  %4246 = vmatmul.bf16.gmra.mxu1 %v6105_v3  ;;  %v6124_v3 = vld [vmem:[%s10409_s5 + $0x150] sm:$0xf]  ;;  %v6835_v23 = vld [vmem:[%s10409_s5 + $0x154] sm:$0xf] }
 0x577   : > { %4904 = vmatmul.bf16.gmra.mxu3 %v6361_v28  ;;  %v6772_v28 = vld [vmem:[%s10408_s4 + $0x154] sm:$0xf0] }
 0x578   : > { %v6381_v55 = vor.u32 %v6772_v28, %v6380_v1 }
 0x579   : > { %v4696_v37 = vpop.f32.mrf.mxu2 }
 0x57a   : > { %v4697_v54 = vadd.f32 %v4696_v37, %v4208_v41  ;;  %v4865_v39 = vpop.f32.mrf.mxu3  ;;  %v4040_v61 = vpop.f32.mrf.mxu0  ;;  %v6126_v41 = vld [vmem:[%s10409_s5 + $0x158] sm:$0xf0] }
 0x57b   : > { %v4209_v47 = vpop.f32.mrf.mxu1  ;;  %v6129_v63 = vor.u32 %v6835_v23, %v6126_v41 }
 0x57c   : > { %v4866_v21 = vadd.f32 %v4865_v39, %v4697_v54  ;;  %v4210_v56 = vadd.f32 %v4209_v47, %v4040_v61  ;;  %v6771_v54 = vld [vmem:[%s10408_s4 + $0x154] sm:$0xf]  ;;  %v6382_v39 = vld [vmem:[%s10408_s4 + $0x158] sm:$0xf0]  ;;  %v6125_v47 = vor.u32 %v6836_v35, %v6124_v3 }
 0x57d   : > { %v6385_v48 = vor.u32 %v6771_v54, %v6382_v39 }
 0x57e   : > { %6486 = vst [vmem:[%s8637_s0 + $0x2c8] sm:$0xff] %v4866_v21 }
 0x581   : > { %v4698_v25 = vpop.f32.mrf.mxu2 }
 0x582   : > { %v4699_v18 = vadd.f32 %v4698_v25, %v4210_v56  ;;  %v4867_v43 = vpop.f32.mrf.mxu3  ;;  %v4043_v13 = vpop.f32.mrf.mxu0 }
 0x583   : > { %v4212_v51 = vpop.f32.mrf.mxu1 }
 0x584   : > { %v4868_v8 = vadd.f32 %v4867_v43, %v4699_v18  ;;  %v4213_v58 = vadd.f32 %v4212_v51, %v4043_v13  ;;  %v6388_v13 = vld [vmem:[%s10408_s4 + $0x160] sm:$0xf]  ;;  %v6838_v51 = vld [vmem:[%s10409_s5 + $0x164] sm:$0xf0] }
 0x585   : > { %4082 = vmatmul.bf16.gmra.mxu0 %v6109_v10 }
 0x586   : > { %6487 = vst [vmem:[%s8637_s0 + $0x2d8] sm:$0xff] %v4868_v8  ;;  %4740 = vmatmul.bf16.gmra.mxu2 %v6365_v46  ;;  %4251 = vmatmul.bf16.gmra.mxu1 %v6113_v24  ;;  %v6132_v24 = vld [vmem:[%s10409_s5 + $0x160] sm:$0xf]  ;;  %v6837_v8 = vld [vmem:[%s10409_s5 + $0x164] sm:$0xf] }
 0x587   : > { %4909 = vmatmul.bf16.gmra.mxu3 %v6369_v30  ;;  %v6774_v30 = vld [vmem:[%s10408_s4 + $0x164] sm:$0xf0] }
 0x588   : > { %v6389_v36 = vor.u32 %v6774_v30, %v6388_v13 }
 0x589   : > { %v4701_v0 = vpop.f32.mrf.mxu2 }
 0x58a   : > { %v4702_v57 = vadd.f32 %v4701_v0, %v4213_v58  ;;  %v4870_v32 = vpop.f32.mrf.mxu3  ;;  %v4045_v9 = vpop.f32.mrf.mxu0  ;;  %v6134_v58 = vld [vmem:[%s10409_s5 + $0x168] sm:$0xf0] }
 0x58b   : > { %v4214_v11 = vpop.f32.mrf.mxu1  ;;  %v6137_v7 = vor.u32 %v6837_v8, %v6134_v58 }
 0x58c   : > { %v4871_v59 = vadd.f32 %v4870_v32, %v4702_v57  ;;  %v4215_v27 = vadd.f32 %v4214_v11, %v4045_v9  ;;  %v6773_v57 = vld [vmem:[%s10408_s4 + $0x164] sm:$0xf]  ;;  %v6390_v32 = vld [vmem:[%s10408_s4 + $0x168] sm:$0xf0]  ;;  %v6133_v11 = vor.u32 %v6838_v51, %v6132_v24 }
 0x58d   : > { %v6393_v19 = vor.u32 %v6773_v57, %v6390_v32 }
 0x58e   : > { %6488 = vst [vmem:[%s8637_s0 + $0x2e8] sm:$0xff] %v4871_v59 }
 0x591   : > { %v4703_v60 = vpop.f32.mrf.mxu2 }
 0x592   : > { %v4704_v20 = vadd.f32 %v4703_v60, %v4215_v27  ;;  %v4872_v16 = vpop.f32.mrf.mxu3  ;;  %v4048_v40 = vpop.f32.mrf.mxu0 }
 0x593   : > { %v4217_v6 = vpop.f32.mrf.mxu1 }
 0x594   : > { %v4873_v50 = vadd.f32 %v4872_v16, %v4704_v20  ;;  %v4218_v33 = vadd.f32 %v4217_v6, %v4048_v40  ;;  %v6396_v40 = vld [vmem:[%s10408_s4 + $0x170] sm:$0xf]  ;;  %v6840_v6 = vld [vmem:[%s10409_s5 + $0x174] sm:$0xf0] }
 0x595   : > { %4087 = vmatmul.bf16.gmra.mxu0 %v6117_v62 }
 0x596   : > { %6489 = vst [vmem:[%s8637_s0 + $0x2f8] sm:$0xff] %v4873_v50  ;;  %4745 = vmatmul.bf16.gmra.mxu2 %v6373_v2  ;;  %4256 = vmatmul.bf16.gmra.mxu1 %v6121_v52  ;;  %v6140_v52 = vld [vmem:[%s10409_s5 + $0x170] sm:$0xf]  ;;  %v6839_v50 = vld [vmem:[%s10409_s5 + $0x174] sm:$0xf] }
 0x597   : > { %4914 = vmatmul.bf16.gmra.mxu3 %v6377_v12  ;;  %v6776_v12 = vld [vmem:[%s10408_s4 + $0x174] sm:$0xf0] }
 0x598   : > { %v6397_v3 = vor.u32 %v6776_v12, %v6396_v40 }
 0x599   : > { %v4706_v31 = vpop.f32.mrf.mxu2 }
 0x59a   : > { %v4707_v42 = vadd.f32 %v4706_v31, %v4218_v33  ;;  %v4875_v38 = vpop.f32.mrf.mxu3  ;;  %v4050_v53 = vpop.f32.mrf.mxu0  ;;  %v6142_v33 = vld [vmem:[%s10409_s5 + $0x178] sm:$0xf0] }
 0x59b   : > { %v4219_v26 = vpop.f32.mrf.mxu1  ;;  %v6145_v28 = vor.u32 %v6839_v50, %v6142_v33 }
 0x59c   : > { %v4876_v22 = vadd.f32 %v4875_v38, %v4707_v42  ;;  %v4220_v37 = vadd.f32 %v4219_v26, %v4050_v53  ;;  %v6775_v42 = vld [vmem:[%s10408_s4 + $0x174] sm:$0xf]  ;;  %v6398_v38 = vld [vmem:[%s10408_s4 + $0x178] sm:$0xf0]  ;;  %v6141_v26 = vor.u32 %v6840_v6, %v6140_v52 }
 0x59d   : > { %v6401_v41 = vor.u32 %v6775_v42, %v6398_v38 }
 0x59e   : > { %6490 = vst [vmem:[%s8637_s0 + $0x348] sm:$0xff] %v4876_v22 }
 0x5a1   : > { %v4708_v61 = vpop.f32.mrf.mxu2 }
 0x5a2   : > { %v4709_v21 = vadd.f32 %v4708_v61, %v4220_v37  ;;  %v4877_v15 = vpop.f32.mrf.mxu3  ;;  %v4053_v49 = vpop.f32.mrf.mxu0 }
 0x5a3   : > { %v4222_v29 = vpop.f32.mrf.mxu1 }
 0x5a4   : > { %v4878_v56 = vadd.f32 %v4877_v15, %v4709_v21  ;;  %v4223_v45 = vadd.f32 %v4222_v29, %v4053_v49  ;;  %v6404_v49 = vld [vmem:[%s10408_s4 + $0x180] sm:$0xf]  ;;  %v6842_v29 = vld [vmem:[%s10409_s5 + $0x184] sm:$0xf0] }
 0x5a5   : > { %4092 = vmatmul.bf16.gmra.mxu0 %v6125_v47 }
 0x5a6   : > { %6491 = vst [vmem:[%s8637_s0 + $0x358] sm:$0xff] %v4878_v56  ;;  %4750 = vmatmul.bf16.gmra.mxu2 %v6381_v55  ;;  %4261 = vmatmul.bf16.gmra.mxu1 %v6129_v63  ;;  %v6148_v63 = vld [vmem:[%s10409_s5 + $0x180] sm:$0xf]  ;;  %v6841_v56 = vld [vmem:[%s10409_s5 + $0x184] sm:$0xf] }
 0x5a7   : > { %4919 = vmatmul.bf16.gmra.mxu3 %v6385_v48  ;;  %v6778_v48 = vld [vmem:[%s10408_s4 + $0x184] sm:$0xf0] }
 0x5a8   : > { %v6405_v24 = vor.u32 %v6778_v48, %v6404_v49 }
 0x5a9   : > { %v4711_v17 = vpop.f32.mrf.mxu2 }
 0x5aa   : > { %v4712_v25 = vadd.f32 %v4711_v17, %v4223_v45  ;;  %v4880_v10 = vpop.f32.mrf.mxu3  ;;  %v4055_v18 = vpop.f32.mrf.mxu0  ;;  %v6150_v45 = vld [vmem:[%s10409_s5 + $0x188] sm:$0xf0] }
 0x5ab   : > { %v4224_v43 = vpop.f32.mrf.mxu1  ;;  %v6153_v30 = vor.u32 %v6841_v56, %v6150_v45 }
 0x5ac   : > { %v4881_v46 = vadd.f32 %v4880_v10, %v4712_v25  ;;  %v4225_v0 = vadd.f32 %v4224_v43, %v4055_v18  ;;  %v6777_v25 = vld [vmem:[%s10408_s4 + $0x184] sm:$0xf]  ;;  %v6406_v10 = vld [vmem:[%s10408_s4 + $0x188] sm:$0xf0]  ;;  %v6149_v43 = vor.u32 %v6842_v29, %v6148_v63 }
 0x5ad   : > { %v6409_v58 = vor.u32 %v6777_v25, %v6406_v10 }
 0x5ae   : > { %6492 = vst [vmem:[%s8637_s0 + $0x368] sm:$0xff] %v4881_v46 }
 0x5b1   : > { %v4713_v9 = vpop.f32.mrf.mxu2 }
 0x5b2   : > { %v4714_v59 = vadd.f32 %v4713_v9, %v4225_v0  ;;  %v4882_v5 = vpop.f32.mrf.mxu3  ;;  %v4058_v34 = vpop.f32.mrf.mxu0 }
 0x5b3   : > { %v4227_v14 = vpop.f32.mrf.mxu1 }
 0x5b4   : > { %v4883_v27 = vadd.f32 %v4882_v5, %v4714_v59  ;;  %v4228_v44 = vadd.f32 %v4227_v14, %v4058_v34  ;;  %v6412_v34 = vld [vmem:[%s10408_s4 + $0x190] sm:$0xf]  ;;  %v6844_v14 = vld [vmem:[%s10409_s5 + $0x194] sm:$0xf0] }
 0x5b5   : > { %4097 = vmatmul.bf16.gmra.mxu0 %v6133_v11 }
 0x5b6   : > { %6493 = vst [vmem:[%s8637_s0 + $0x378] sm:$0xff] %v4883_v27  ;;  %4755 = vmatmul.bf16.gmra.mxu2 %v6389_v36  ;;  %4266 = vmatmul.bf16.gmra.mxu1 %v6137_v7  ;;  %v6156_v7 = vld [vmem:[%s10409_s5 + $0x190] sm:$0xf]  ;;  %v6843_v27 = vld [vmem:[%s10409_s5 + $0x194] sm:$0xf] }
 0x5b7   : > { %4924 = vmatmul.bf16.gmra.mxu3 %v6393_v19  ;;  %v6780_v19 = vld [vmem:[%s10408_s4 + $0x194] sm:$0xf0] }
 0x5b8   : > { %v6413_v52 = vor.u32 %v6780_v19, %v6412_v34 }
 0x5b9   : > { %v4716_v4 = vpop.f32.mrf.mxu2 }
 0x5ba   : > { %v4717_v60 = vadd.f32 %v4716_v4, %v4228_v44  ;;  %v4885_v62 = vpop.f32.mrf.mxu3  ;;  %v4060_v20 = vpop.f32.mrf.mxu0  ;;  %v6158_v44 = vld [vmem:[%s10409_s5 + $0x198] sm:$0xf0] }
 0x5bb   : > { %v4229_v16 = vpop.f32.mrf.mxu1  ;;  %v6161_v12 = vor.u32 %v6843_v27, %v6158_v44 }
 0x5bc   : > { %v4886_v2 = vadd.f32 %v4885_v62, %v4717_v60  ;;  %v4230_v31 = vadd.f32 %v4229_v16, %v4060_v20  ;;  %v6779_v60 = vld [vmem:[%s10408_s4 + $0x194] sm:$0xf]  ;;  %v6414_v62 = vld [vmem:[%s10408_s4 + $0x198] sm:$0xf0]  ;;  %v6157_v16 = vor.u32 %v6844_v14, %v6156_v7 }
 0x5bd   : > { %v6417_v33 = vor.u32 %v6779_v60, %v6414_v62 }
 0x5be   : > { %6494 = vst [vmem:[%s8637_s0 + $0x3c8] sm:$0xff] %v4886_v2 }
 0x5c1   : > { %v4718_v53 = vpop.f32.mrf.mxu2 }
 0x5c2   : > { %v4719_v22 = vadd.f32 %v4718_v53, %v4230_v31  ;;  %v4887_v1 = vpop.f32.mrf.mxu3  ;;  %v4063_v35 = vpop.f32.mrf.mxu0 }
 0x5c3   : > { %v4232_v23 = vpop.f32.mrf.mxu1 }
 0x5c4   : > { %v4888_v37 = vadd.f32 %v4887_v1, %v4719_v22  ;;  %v4233_v54 = vadd.f32 %v4232_v23, %v4063_v35  ;;  %v6420_v35 = vld [vmem:[%s10408_s4 + $0x1a0] sm:$0xf]  ;;  %v6846_v23 = vld [vmem:[%s10409_s5 + $0x1a4] sm:$0xf0] }
 0x5c5   : > { %4102 = vmatmul.bf16.gmra.mxu0 %v6141_v26 }
 0x5c6   : > { %6495 = vst [vmem:[%s8637_s0 + $0x3d8] sm:$0xff] %v4888_v37  ;;  %4760 = vmatmul.bf16.gmra.mxu2 %v6397_v3  ;;  %4271 = vmatmul.bf16.gmra.mxu1 %v6145_v28  ;;  %v6164_v28 = vld [vmem:[%s10409_s5 + $0x1a0] sm:$0xf]  ;;  %v6845_v37 = vld [vmem:[%s10409_s5 + $0x1a4] sm:$0xf] }
 0x5c7   : > { %4929 = vmatmul.bf16.gmra.mxu3 %v6401_v41  ;;  %v6782_v41 = vld [vmem:[%s10408_s4 + $0x1a4] sm:$0xf0] }
 0x5c8   : > { %v6421_v63 = vor.u32 %v6782_v41, %v6420_v35 }
 0x5c9   : > { %v4721_v39 = vpop.f32.mrf.mxu2 }
 0x5ca   : > { %v4722_v61 = vadd.f32 %v4721_v39, %v4233_v54  ;;  %v4890_v47 = vpop.f32.mrf.mxu3  ;;  %v4065_v21 = vpop.f32.mrf.mxu0  ;;  %v6166_v54 = vld [vmem:[%s10409_s5 + $0x1a8] sm:$0xf0] }
 0x5cb   : > { %v4234_v15 = vpop.f32.mrf.mxu1  ;;  %v6169_v48 = vor.u32 %v6845_v37, %v6166_v54 }
 0x5cc   : > { %v4891_v55 = vadd.f32 %v4890_v47, %v4722_v61  ;;  %v4235_v17 = vadd.f32 %v4234_v15, %v4065_v21  ;;  %v6781_v61 = vld [vmem:[%s10408_s4 + $0x1a4] sm:$0xf]  ;;  %v6422_v47 = vld [vmem:[%s10408_s4 + $0x1a8] sm:$0xf0]  ;;  %v6165_v15 = vor.u32 %v6846_v23, %v6164_v28 }
 0x5cd   : > { %v6425_v45 = vor.u32 %v6781_v61, %v6422_v47 }
 0x5ce   : > { %6496 = vst [vmem:[%s8637_s0 + $0x3e8] sm:$0xff] %v4891_v55 }
 0x5d1   : > { %v4723_v18 = vpop.f32.mrf.mxu2 }
 0x5d2   : > { %v4724_v46 = vadd.f32 %v4723_v18, %v4235_v17  ;;  %v4892_v13 = vpop.f32.mrf.mxu3  ;;  %v4068_v51 = vpop.f32.mrf.mxu0 }
 0x5d3   : > { %v4237_v8 = vpop.f32.mrf.mxu1 }
 0x5d4   : > { %v4893_v0 = vadd.f32 %v4892_v13, %v4724_v46  ;;  %v4238_v57 = vadd.f32 %v4237_v8, %v4068_v51  ;;  %v6428_v51 = vld [vmem:[%s10408_s4 + $0x1b0] sm:$0xf]  ;;  %v6848_v8 = vld [vmem:[%s10409_s5 + $0x1b4] sm:$0xf0] }
 0x5d5   : > { %4107 = vmatmul.bf16.gmra.mxu0 %v6149_v43 }
 0x5d6   : > { %6497 = vst [vmem:[%s8637_s0 + $0x3f8] sm:$0xff] %v4893_v0  ;;  %4765 = vmatmul.bf16.gmra.mxu2 %v6405_v24  ;;  %4276 = vmatmul.bf16.gmra.mxu1 %v6153_v30  ;;  %v6172_v30 = vld [vmem:[%s10409_s5 + $0x1b0] sm:$0xf]  ;;  %v6847_v0 = vld [vmem:[%s10409_s5 + $0x1b4] sm:$0xf] }
 0x5d7   : > { %4934 = vmatmul.bf16.gmra.mxu3 %v6409_v58  ;;  %v6784_v58 = vld [vmem:[%s10408_s4 + $0x1b4] sm:$0xf0] }
 0x5d8   : > { %v6429_v7 = vor.u32 %v6784_v58, %v6428_v51 }
 0x5d9   : > { %v4726_v32 = vpop.f32.mrf.mxu2 }
 0x5da   : > { %v4727_v9 = vadd.f32 %v4726_v32, %v4238_v57  ;;  %v4895_v11 = vpop.f32.mrf.mxu3  ;;  %v4070_v59 = vpop.f32.mrf.mxu0  ;;  %v6174_v57 = vld [vmem:[%s10409_s5 + $0x1b8] sm:$0xf0] }
 0x5db   : > { %v4239_v5 = vpop.f32.mrf.mxu1  ;;  %v6177_v19 = vor.u32 %v6847_v0, %v6174_v57 }
 0x5dc   : > { %v4896_v36 = vadd.f32 %v4895_v11, %v4727_v9  ;;  %v4240_v4 = vadd.f32 %v4239_v5, %v4070_v59  ;;  %v6783_v9 = vld [vmem:[%s10408_s4 + $0x1b4] sm:$0xf]  ;;  %v6430_v11 = vld [vmem:[%s10408_s4 + $0x1b8] sm:$0xf0]  ;;  %v6173_v5 = vor.u32 %v6848_v8, %v6172_v30 }
 0x5dd   : > { %v6433_v44 = vor.u32 %v6783_v9, %v6430_v11 }
 0x5de   : > { %6498 = vst [vmem:[%s8637_s0 + $0x448] sm:$0xff] %v4896_v36 }
 0x5e1   : > { %v4728_v20 = vpop.f32.mrf.mxu2 }
 0x5e2   : > { %v4729_v2 = vadd.f32 %v4728_v20, %v4240_v4  ;;  %v4897_v40 = vpop.f32.mrf.mxu3  ;;  %v4073_v6 = vpop.f32.mrf.mxu0 }
 0x5e3   : > { %v4242_v50 = vpop.f32.mrf.mxu1 }
 0x5e4   : > { %v4898_v31 = vadd.f32 %v4897_v40, %v4729_v2  ;;  %v4243_v42 = vadd.f32 %v4242_v50, %v4073_v6  ;;  %v6436_v6 = vld [vmem:[%s10408_s4 + $0x1c0] sm:$0xf]  ;;  %v6850_v50 = vld [vmem:[%s10409_s5 + $0x1c4] sm:$0xf0] }
 0x5e5   : > { %4112 = vmatmul.bf16.gmra.mxu0 %v6157_v16 }
 0x5e6   : > { %6499 = vst [vmem:[%s8637_s0 + $0x458] sm:$0xff] %v4898_v31  ;;  %4770 = vmatmul.bf16.gmra.mxu2 %v6413_v52  ;;  %4281 = vmatmul.bf16.gmra.mxu1 %v6161_v12  ;;  %v6180_v12 = vld [vmem:[%s10409_s5 + $0x1c0] sm:$0xf]  ;;  %v6849_v31 = vld [vmem:[%s10409_s5 + $0x1c4] sm:$0xf] }
 0x5e7   : > { %4939 = vmatmul.bf16.gmra.mxu3 %v6417_v33  ;;  %v6786_v33 = vld [vmem:[%s10408_s4 + $0x1c4] sm:$0xf0] }
 0x5e8   : > { %v6437_v28 = vor.u32 %v6786_v33, %v6436_v6 }
 0x5e9   : > { %v4731_v38 = vpop.f32.mrf.mxu2 }
 0x5ea   : > { %v4732_v53 = vadd.f32 %v4731_v38, %v4243_v42  ;;  %v4900_v26 = vpop.f32.mrf.mxu3  ;;  %v4075_v22 = vpop.f32.mrf.mxu0  ;;  %v6182_v42 = vld [vmem:[%s10409_s5 + $0x1c8] sm:$0xf0] }
 0x5eb   : > { %v4244_v1 = vpop.f32.mrf.mxu1  ;;  %v6185_v41 = vor.u32 %v6849_v31, %v6182_v42 }
 0x5ec   : > { %v4901_v3 = vadd.f32 %v4900_v26, %v4732_v53  ;;  %v4245_v39 = vadd.f32 %v4244_v1, %v4075_v22  ;;  %v6785_v53 = vld [vmem:[%s10408_s4 + $0x1c4] sm:$0xf]  ;;  %v6438_v26 = vld [vmem:[%s10408_s4 + $0x1c8] sm:$0xf0]  ;;  %v6181_v1 = vor.u32 %v6850_v50, %v6180_v12 }
 0x5ed   : > { %v6441_v54 = vor.u32 %v6785_v53, %v6438_v26 }
 0x5ee   : > { %6500 = vst [vmem:[%s8637_s0 + $0x468] sm:$0xff] %v4901_v3 }
 0x5f1   : > { %v4733_v21 = vpop.f32.mrf.mxu2 }
 0x5f2   : > { %v4734_v55 = vadd.f32 %v4733_v21, %v4245_v39  ;;  %v4902_v49 = vpop.f32.mrf.mxu3  ;;  %v4078_v29 = vpop.f32.mrf.mxu0 }
 0x5f3   : > { %v4247_v56 = vpop.f32.mrf.mxu1 }
 0x5f4   : > { %v4903_v17 = vadd.f32 %v4902_v49, %v4734_v55  ;;  %v4248_v25 = vadd.f32 %v4247_v56, %v4078_v29  ;;  %v6444_v29 = vld [vmem:[%s10408_s4 + $0x1d0] sm:$0xf]  ;;  %v6852_v56 = vld [vmem:[%s10409_s5 + $0x1d4] sm:$0xf0] }
 0x5f5   : > { %4117 = vmatmul.bf16.gmra.mxu0 %v6165_v15 }
 0x5f6   : > { %6501 = vst [vmem:[%s8637_s0 + $0x478] sm:$0xff] %v4903_v17  ;;  %4775 = vmatmul.bf16.gmra.mxu2 %v6421_v63  ;;  %4286 = vmatmul.bf16.gmra.mxu1 %v6169_v48  ;;  %v6188_v48 = vld [vmem:[%s10409_s5 + $0x1d0] sm:$0xf]  ;;  %v6851_v17 = vld [vmem:[%s10409_s5 + $0x1d4] sm:$0xf] }
 0x5f7   : > { %4944 = vmatmul.bf16.gmra.mxu3 %v6425_v45  ;;  %v6788_v45 = vld [vmem:[%s10408_s4 + $0x1d4] sm:$0xf0] }
 0x5f8   : > { %v6445_v30 = vor.u32 %v6788_v45, %v6444_v29 }
 0x5f9   : > { %v4736_v10 = vpop.f32.mrf.mxu2 }
 0x5fa   : > { %v4737_v18 = vadd.f32 %v4736_v10, %v4248_v25  ;;  %v4905_v43 = vpop.f32.mrf.mxu3  ;;  %v4080_v46 = vpop.f32.mrf.mxu0  ;;  %v6190_v25 = vld [vmem:[%s10409_s5 + $0x1d8] sm:$0xf0] }
 0x5fb   : > { %v4249_v13 = vpop.f32.mrf.mxu1  ;;  %v6193_v58 = vor.u32 %v6851_v17, %v6190_v25 }
 0x5fc   : > { %v4906_v24 = vadd.f32 %v4905_v43, %v4737_v18  ;;  %v4250_v32 = vadd.f32 %v4249_v13, %v4080_v46  ;;  %v6787_v18 = vld [vmem:[%s10408_s4 + $0x1d4] sm:$0xf]  ;;  %v6446_v43 = vld [vmem:[%s10408_s4 + $0x1d8] sm:$0xf0]  ;;  %v6189_v13 = vor.u32 %v6852_v56, %v6188_v48 }
 0x5fd   : > { %v6449_v57 = vor.u32 %v6787_v18, %v6446_v43 }
 0x5fe   : > { %6502 = vst [vmem:[%s8637_s0 + $0x4c8] sm:$0xff] %v4906_v24 }
 0x601   : > { %v4738_v59 = vpop.f32.mrf.mxu2 }
 0x602   : > { %v4739_v36 = vadd.f32 %v4738_v59, %v4250_v32  ;;  %v4907_v34 = vpop.f32.mrf.mxu3  ;;  %v4083_v14 = vpop.f32.mrf.mxu0 }
 0x603   : > { %v4252_v27 = vpop.f32.mrf.mxu1 }
 0x604   : > { %v4908_v4 = vadd.f32 %v4907_v34, %v4739_v36  ;;  %v4253_v60 = vadd.f32 %v4252_v27, %v4083_v14  ;;  %v6452_v14 = vld [vmem:[%s10408_s4 + $0x1e0] sm:$0xf]  ;;  %v6854_v27 = vld [vmem:[%s10409_s5 + $0x1e4] sm:$0xf0] }
 0x605   : > { %4122 = vmatmul.bf16.gmra.mxu0 %v6173_v5 }
 0x606   : > { %6503 = vst [vmem:[%s8637_s0 + $0x4d8] sm:$0xff] %v4908_v4  ;;  %4780 = vmatmul.bf16.gmra.mxu2 %v6429_v7  ;;  %4291 = vmatmul.bf16.gmra.mxu1 %v6177_v19  ;;  %v6196_v19 = vld [vmem:[%s10409_s5 + $0x1e0] sm:$0xf]  ;;  %v6853_v4 = vld [vmem:[%s10409_s5 + $0x1e4] sm:$0xf] }
 0x607   : > { %4949 = vmatmul.bf16.gmra.mxu3 %v6433_v44  ;;  %v6790_v44 = vld [vmem:[%s10408_s4 + $0x1e4] sm:$0xf0] }
 0x608   : > { %v6453_v12 = vor.u32 %v6790_v44, %v6452_v14 }
 0x609   : > { %v4741_v62 = vpop.f32.mrf.mxu2 }
 0x60a   : > { %v4742_v20 = vadd.f32 %v4741_v62, %v4253_v60  ;;  %v4910_v16 = vpop.f32.mrf.mxu3  ;;  %v4085_v2 = vpop.f32.mrf.mxu0  ;;  %v6198_v60 = vld [vmem:[%s10409_s5 + $0x1e8] sm:$0xf0] }
 0x60b   : > { %v4254_v40 = vpop.f32.mrf.mxu1  ;;  %v6201_v33 = vor.u32 %v6853_v4, %v6198_v60 }
 0x60c   : > { %v4911_v52 = vadd.f32 %v4910_v16, %v4742_v20  ;;  %v4255_v38 = vadd.f32 %v4254_v40, %v4085_v2  ;;  %v6789_v20 = vld [vmem:[%s10408_s4 + $0x1e4] sm:$0xf]  ;;  %v6454_v16 = vld [vmem:[%s10408_s4 + $0x1e8] sm:$0xf0]  ;;  %v6197_v40 = vor.u32 %v6854_v27, %v6196_v19 }
 0x60d   : > { %v6457_v42 = vor.u32 %v6789_v20, %v6454_v16 }
 0x60e   : > { %6504 = vst [vmem:[%s8637_s0 + $0x4e8] sm:$0xff] %v4911_v52 }
 0x611   : > { %v4743_v22 = vpop.f32.mrf.mxu2 }
 0x612   : > { %v4744_v3 = vadd.f32 %v4743_v22, %v4255_v38  ;;  %v4912_v35 = vpop.f32.mrf.mxu3  ;;  %v4088_v23 = vpop.f32.mrf.mxu0 }
 0x613   : > { %v4257_v37 = vpop.f32.mrf.mxu1 }
 0x614   : > { %v4913_v39 = vadd.f32 %v4912_v35, %v4744_v3  ;;  %v4258_v61 = vadd.f32 %v4257_v37, %v4088_v23  ;;  %v6460_v23 = vld [vmem:[%s10408_s4 + $0x1f0] sm:$0xf]  ;;  %v6856_v37 = vld [vmem:[%s10409_s5 + $0x1f4] sm:$0xf0] }
 0x615   : > { %4127 = vmatmul.bf16.gmra.mxu0 %v6181_v1 }
 0x616   : > { %6505 = vst [vmem:[%s8637_s0 + $0x4f8] sm:$0xff] %v4913_v39  ;;  %4785 = vmatmul.bf16.gmra.mxu2 %v6437_v28  ;;  %4296 = vmatmul.bf16.gmra.mxu1 %v6185_v41  ;;  %v6204_v41 = vld [vmem:[%s10409_s5 + $0x1f0] sm:$0xf]  ;;  %v6855_v39 = vld [vmem:[%s10409_s5 + $0x1f4] sm:$0xf] }
 0x617   : > { %4954 = vmatmul.bf16.gmra.mxu3 %v6441_v54  ;;  %v6792_v54 = vld [vmem:[%s10408_s4 + $0x1f4] sm:$0xf0] }
 0x618   : > { %v6461_v48 = vor.u32 %v6792_v54, %v6460_v23 }
 0x619   : > { %v4746_v47 = vpop.f32.mrf.mxu2 }
 0x61a   : > { %v4747_v21 = vadd.f32 %v4746_v47, %v4258_v61  ;;  %v4915_v15 = vpop.f32.mrf.mxu3  ;;  %v4090_v55 = vpop.f32.mrf.mxu0  ;;  %v6206_v61 = vld [vmem:[%s10409_s5 + $0x1f8] sm:$0xf0] }
 0x61b   : > { %v4259_v49 = vpop.f32.mrf.mxu1  ;;  %v6209_v45 = vor.u32 %v6855_v39, %v6206_v61 }
 0x61c   : > { %v4916_v63 = vadd.f32 %v4915_v15, %v4747_v21  ;;  %v4260_v10 = vadd.f32 %v4259_v49, %v4090_v55  ;;  %v6791_v21 = vld [vmem:[%s10408_s4 + $0x1f4] sm:$0xf]  ;;  %v6462_v15 = vld [vmem:[%s10408_s4 + $0x1f8] sm:$0xf0]  ;;  %v6205_v49 = vor.u32 %v6856_v37, %v6204_v41 }
 0x61d   : > { %v6465_v25 = vor.u32 %v6791_v21, %v6462_v15 }
 0x61e   : > { %6506 = vst [vmem:[%s8637_s0 + $0x548] sm:$0xff] %v4916_v63 }
 0x621   : > { %v4748_v46 = vpop.f32.mrf.mxu2 }
 0x622   : > { %v4749_v24 = vadd.f32 %v4748_v46, %v4260_v10  ;;  %v4917_v51 = vpop.f32.mrf.mxu3  ;;  %v4093_v8 = vpop.f32.mrf.mxu0 }
 0x623   : > { %v4262_v0 = vpop.f32.mrf.mxu1 }
 0x624   : > { %v4918_v32 = vadd.f32 %v4917_v51, %v4749_v24  ;;  %v4263_v9 = vadd.f32 %v4262_v0, %v4093_v8 }
 0x625   : > { %4132 = vmatmul.bf16.gmra.mxu0 %v6189_v13 }
 0x626   : > { %6507 = vst [vmem:[%s8637_s0 + $0x558] sm:$0xff] %v4918_v32  ;;  %4790 = vmatmul.bf16.gmra.mxu2 %v6445_v30  ;;  %4301 = vmatmul.bf16.gmra.mxu1 %v6193_v58 }
 0x627   : > { %4959 = vmatmul.bf16.gmra.mxu3 %v6449_v57 }
 0x629   : > { %v4751_v11 = vpop.f32.mrf.mxu2 }
 0x62a   : > { %v4752_v59 = vadd.f32 %v4751_v11, %v4263_v9  ;;  %v4920_v5 = vpop.f32.mrf.mxu3  ;;  %v4095_v36 = vpop.f32.mrf.mxu0 }
 0x62b   : > { %v4264_v34 = vpop.f32.mrf.mxu1 }
 0x62c   : > { %v4921_v7 = vadd.f32 %v4920_v5, %v4752_v59  ;;  %v4265_v62 = vadd.f32 %v4264_v34, %v4095_v36 }
 0x62e   : > { %6508 = vst [vmem:[%s8637_s0 + $0x568] sm:$0xff] %v4921_v7 }
 0x631   : > { %v4753_v2 = vpop.f32.mrf.mxu2 }
 0x632   : > { %v4754_v52 = vadd.f32 %v4753_v2, %v4265_v62  ;;  %v4922_v6 = vpop.f32.mrf.mxu3  ;;  %v4098_v50 = vpop.f32.mrf.mxu0 }
 0x633   : > { %v4267_v31 = vpop.f32.mrf.mxu1 }
 0x634   : > { %v4923_v38 = vadd.f32 %v4922_v6, %v4754_v52  ;;  %v4268_v53 = vadd.f32 %v4267_v31, %v4098_v50 }
 0x635   : > { %4137 = vmatmul.bf16.gmra.mxu0 %v6197_v40 }
 0x636   : > { %6509 = vst [vmem:[%s8637_s0 + $0x578] sm:$0xff] %v4923_v38  ;;  %4795 = vmatmul.bf16.gmra.mxu2 %v6453_v12  ;;  %4306 = vmatmul.bf16.gmra.mxu1 %v6201_v33 }
 0x637   : > { %4964 = vmatmul.bf16.gmra.mxu3 %v6457_v42 }
 0x639   : > { %v4756_v26 = vpop.f32.mrf.mxu2 }
 0x63a   : > { %v4757_v22 = vadd.f32 %v4756_v26, %v4268_v53  ;;  %v4925_v1 = vpop.f32.mrf.mxu3  ;;  %v4100_v3 = vpop.f32.mrf.mxu0 }
 0x63b   : > { %v4269_v35 = vpop.f32.mrf.mxu1 }
 0x63c   : > { %v4926_v28 = vadd.f32 %v4925_v1, %v4757_v22  ;;  %v4270_v47 = vadd.f32 %v4269_v35, %v4100_v3 }
 0x63e   : > { %6510 = vst [vmem:[%s8637_s0 + $0x5c8] sm:$0xff] %v4926_v28 }
 0x641   : > { %v4758_v55 = vpop.f32.mrf.mxu2 }
 0x642   : > { %v4759_v63 = vadd.f32 %v4758_v55, %v4270_v47  ;;  %v4927_v29 = vpop.f32.mrf.mxu3  ;;  %v4103_v56 = vpop.f32.mrf.mxu0 }
 0x643   : > { %v4272_v17 = vpop.f32.mrf.mxu1 }
 0x644   : > { %v4928_v10 = vadd.f32 %v4927_v29, %v4759_v63  ;;  %v4273_v18 = vadd.f32 %v4272_v17, %v4103_v56 }
 0x645   : > { %4142 = vmatmul.bf16.gmra.mxu0 %v6205_v49 }
 0x646   : > { %6511 = vst [vmem:[%s8637_s0 + $0x5d8] sm:$0xff] %v4928_v10  ;;  %4800 = vmatmul.bf16.gmra.mxu2 %v6461_v48  ;;  %4311 = vmatmul.bf16.gmra.mxu1 %v6209_v45 }
 0x647   : > { %4969 = vmatmul.bf16.gmra.mxu3 %v6465_v25 }
 0x649   : > { %v4761_v43 = vpop.f32.mrf.mxu2 }
 0x64a   : > { %v4762_v46 = vadd.f32 %v4761_v43, %v4273_v18  ;;  %v4930_v13 = vpop.f32.mrf.mxu3  ;;  %v4105_v24 = vpop.f32.mrf.mxu0 }
 0x64b   : > { %v4274_v51 = vpop.f32.mrf.mxu1 }
 0x64c   : > { %v4931_v30 = vadd.f32 %v4930_v13, %v4762_v46  ;;  %v4275_v8 = vadd.f32 %v4274_v51, %v4105_v24 }
 0x64e   : > { %6512 = vst [vmem:[%s8637_s0 + $0x5e8] sm:$0xff] %v4931_v30 }
 0x651   : > { %v4763_v58 = vpop.f32.mrf.mxu2 }
 0x652   : > { %v4764_v0 = vadd.f32 %v4763_v58, %v4275_v8  ;;  %v4932_v57 = vpop.f32.mrf.mxu3  ;;  %v4108_v32 = vpop.f32.mrf.mxu0 }
 0x653   : > { %v4277_v9 = vpop.f32.mrf.mxu1 }
 0x654   : > { %v4933_v11 = vadd.f32 %v4932_v57, %v4764_v0  ;;  %v4278_v59 = vadd.f32 %v4277_v9, %v4108_v32 }
 0x656   : > { %6513 = vst [vmem:[%s8637_s0 + $0x5f8] sm:$0xff] %v4933_v11 }
 0x659   : > { %v4766_v5 = vpop.f32.mrf.mxu2 }
 0x65a   : > { %v4767_v36 = vadd.f32 %v4766_v5, %v4278_v59  ;;  %v4935_v34 = vpop.f32.mrf.mxu3  ;;  %v4110_v7 = vpop.f32.mrf.mxu0 }
 0x65b   : > { %v4279_v14 = vpop.f32.mrf.mxu1 }
 0x65c   : > { %v4936_v19 = vadd.f32 %v4935_v34, %v4767_v36  ;;  %v4280_v27 = vadd.f32 %v4279_v14, %v4110_v7 }
 0x65e   : > { %6514 = vst [vmem:[%s8637_s0 + $0x648] sm:$0xff] %v4936_v19 }
 0x661   : > { %v4768_v44 = vpop.f32.mrf.mxu2 }
 0x662   : > { %v4769_v4 = vadd.f32 %v4768_v44, %v4280_v27  ;;  %v4937_v60 = vpop.f32.mrf.mxu3  ;;  %v4113_v62 = vpop.f32.mrf.mxu0 }
 0x663   : > { %v4282_v20 = vpop.f32.mrf.mxu1 }
 0x664   : > { %v4938_v16 = vadd.f32 %v4937_v60, %v4769_v4  ;;  %v4283_v2 = vadd.f32 %v4282_v20, %v4113_v62 }
 0x666   : > { %6515 = vst [vmem:[%s8637_s0 + $0x658] sm:$0xff] %v4938_v16 }
 0x669   : > { %v4771_v40 = vpop.f32.mrf.mxu2 }
 0x66a   : > { %v4772_v52 = vadd.f32 %v4771_v40, %v4283_v2  ;;  %v4940_v6 = vpop.f32.mrf.mxu3  ;;  %v4115_v12 = vpop.f32.mrf.mxu0 }
 0x66b   : > { %v4284_v50 = vpop.f32.mrf.mxu1 }
 0x66c   : > { %v4941_v33 = vadd.f32 %v4940_v6, %v4772_v52  ;;  %v4285_v31 = vadd.f32 %v4284_v50, %v4115_v12 }
 0x66e   : > { %6516 = vst [vmem:[%s8637_s0 + $0x668] sm:$0xff] %v4941_v33 }
 0x671   : > { %v4773_v42 = vpop.f32.mrf.mxu2 }
 0x672   : > { %v4774_v38 = vadd.f32 %v4773_v42, %v4285_v31  ;;  %v4942_v53 = vpop.f32.mrf.mxu3  ;;  %v4118_v26 = vpop.f32.mrf.mxu0  ;;  %v341_v31 = vld [vmem:[%s7225_s11] sm:$0xff]  ;;  %v342_v42 = vld [vmem:[%s7225_s11 + $0x8] sm:$0xff] }
 0x673   : > { %v4287_v22 = vpop.f32.mrf.mxu1  ;;  %469 = vst [vmem:[%s8637_s0] sm:$0xff] %v341_v31  ;;  %v380_v31 = vld [vmem:[%s7225_s11 + $0x138] sm:$0xff] }
 0x674   : > { %v4943_v1 = vadd.f32 %v4942_v53, %v4774_v38  ;;  %v4288_v3 = vadd.f32 %v4287_v22, %v4118_v26  ;;  %v343_v38 = vld [vmem:[%s7225_s11 + $0x10] sm:$0xff]  ;;  %v344_v53 = vld [vmem:[%s7225_s11 + $0x18] sm:$0xff]  ;;  %v345_v26 = vld [vmem:[%s7225_s11 + $0x20] sm:$0xff]  ;;  %470 = vst [vmem:[%s8637_s0 + $0x10] sm:$0xff] %v342_v42 }
 0x675   : > { %471 = vst [vmem:[%s8637_s0 + $0x20] sm:$0xff] %v343_v38  ;;  %v381_v42 = vld [vmem:[%s7225_s11 + $0x140] sm:$0xff]  ;;  %v382_v38 = vld [vmem:[%s7225_s11 + $0x148] sm:$0xff] }
 0x676   : > { %6517 = vst [vmem:[%s8637_s0 + $0x678] sm:$0xff] %v4943_v1  ;;  %v346_v1 = vld [vmem:[%s7225_s11 + $0x28] sm:$0xff] }
 0x677   : > { %472 = vst [vmem:[%s8637_s0 + $0x30] sm:$0xff] %v344_v53  ;;  %v383_v53 = vld [vmem:[%s7225_s11 + $0x150] sm:$0xff] }
 0x678   : > { %473 = vst [vmem:[%s8637_s0 + $0x40] sm:$0xff] %v345_v26  ;;  %v384_v26 = vld [vmem:[%s7225_s11 + $0x158] sm:$0xff] }
 0x679   : > { %v4776_v35 = vpop.f32.mrf.mxu2  ;;  %474 = vst [vmem:[%s8637_s0 + $0x50] sm:$0xff] %v346_v1  ;;  %v386_v1 = vld [vmem:[%s7225_s11 + $0x168] sm:$0xff] }
 0x67a   : > { %v4777_v28 = vadd.f32 %v4776_v35, %v4288_v3  ;;  %v4945_v23 = vpop.f32.mrf.mxu3  ;;  %v4120_v41 = vpop.f32.mrf.mxu0  ;;  %508 = vst [vmem:[%s8637_s0 + $0x270] sm:$0xff] %v380_v31  ;;  %v444_v31 = vld [vmem:[%s7225_s11 + $0x338] sm:$0xff] }
 0x67b   : > { %v4289_v37 = vpop.f32.mrf.mxu1  ;;  %509 = vst [vmem:[%s8637_s0 + $0x280] sm:$0xff] %v381_v42  ;;  %v445_v42 = vld [vmem:[%s7225_s11 + $0x340] sm:$0xff] }
 0x67c   : > { %v4946_v54 = vadd.f32 %v4945_v23, %v4777_v28  ;;  %v4290_v39 = vadd.f32 %v4289_v37, %v4120_v41  ;;  %v347_v23 = vld [vmem:[%s7225_s11 + $0x30] sm:$0xff]  ;;  %510 = vst [vmem:[%s8637_s0 + $0x290] sm:$0xff] %v382_v38  ;;  %v446_v38 = vld [vmem:[%s7225_s11 + $0x348] sm:$0xff] }
 0x67d   : > { %475 = vst [vmem:[%s8637_s0 + $0x60] sm:$0xff] %v347_v23  ;;  %v390_v23 = vld [vmem:[%s7225_s11 + $0x188] sm:$0xff] }
 0x67e   : > { %6518 = vst [vmem:[%s8637_s0 + $0x6c8] sm:$0xff] %v4946_v54  ;;  %v348_v54 = vld [vmem:[%s7225_s11 + $0x38] sm:$0xff] }
 0x67f   : > { %476 = vst [vmem:[%s8637_s0 + $0x70] sm:$0xff] %v348_v54  ;;  %v393_v54 = vld [vmem:[%s7225_s11 + $0x1a0] sm:$0xff] }
 0x680   : > { %511 = vst [vmem:[%s8637_s0 + $0x2a0] sm:$0xff] %v383_v53  ;;  %v447_v53 = vld [vmem:[%s7225_s11 + $0x350] sm:$0xff] }
 0x681   : > { %v4778_v61 = vpop.f32.mrf.mxu2  ;;  %512 = vst [vmem:[%s8637_s0 + $0x2b0] sm:$0xff] %v384_v26  ;;  %v448_v26 = vld [vmem:[%s7225_s11 + $0x358] sm:$0xff] }
 0x682   : > { %v4779_v47 = vadd.f32 %v4778_v61, %v4290_v39  ;;  %v4947_v21 = vpop.f32.mrf.mxu3  ;;  %v4123_v15 = vpop.f32.mrf.mxu0  ;;  %v349_v39 = vld [vmem:[%s7225_s11 + $0x40] sm:$0xff]  ;;  %v350_v61 = vld [vmem:[%s7225_s11 + $0x48] sm:$0xff]  ;;  %514 = vst [vmem:[%s8637_s0 + $0x2d0] sm:$0xff] %v386_v1 }
 0x683   : > { %v4292_v55 = vpop.f32.mrf.mxu1  ;;  %477 = vst [vmem:[%s8637_s0 + $0x80] sm:$0xff] %v349_v39  ;;  %v394_v39 = vld [vmem:[%s7225_s11 + $0x1a8] sm:$0xff] }
 0x684   : > { %v4948_v49 = vadd.f32 %v4947_v21, %v4779_v47  ;;  %v4293_v63 = vadd.f32 %v4292_v55, %v4123_v15  ;;  %v351_v47 = vld [vmem:[%s7225_s11 + $0x50] sm:$0xff]  ;;  %v352_v15 = vld [vmem:[%s7225_s11 + $0x58] sm:$0xff]  ;;  %478 = vst [vmem:[%s8637_s0 + $0x90] sm:$0xff] %v350_v61  ;;  %v450_v1 = vld [vmem:[%s7225_s11 + $0x368] sm:$0xff] }
 0x685   : > { %479 = vst [vmem:[%s8637_s0 + $0xa0] sm:$0xff] %v351_v47  ;;  %v395_v61 = vld [vmem:[%s7225_s11 + $0x1b0] sm:$0xff]  ;;  %v396_v47 = vld [vmem:[%s7225_s11 + $0x1b8] sm:$0xff] }
 0x686   : > { %6519 = vst [vmem:[%s8637_s0 + $0x6d8] sm:$0xff] %v4948_v49  ;;  %v353_v49 = vld [vmem:[%s7225_s11 + $0x60] sm:$0xff] }
 0x687   : > { %480 = vst [vmem:[%s8637_s0 + $0xb0] sm:$0xff] %v352_v15  ;;  %v398_v15 = vld [vmem:[%s7225_s11 + $0x1c8] sm:$0xff] }
 0x688   : > { %481 = vst [vmem:[%s8637_s0 + $0xc0] sm:$0xff] %v353_v49  ;;  %v400_v49 = vld [vmem:[%s7225_s11 + $0x1d8] sm:$0xff] }
 0x689   : > { %v4781_v29 = vpop.f32.mrf.mxu2  ;;  %518 = vst [vmem:[%s8637_s0 + $0x310] sm:$0xff] %v390_v23  ;;  %v454_v23 = vld [vmem:[%s7225_s11 + $0x388] sm:$0xff] }
 0x68a   : > { %v4782_v48 = vadd.f32 %v4781_v29, %v4293_v63  ;;  %v4950_v56 = vpop.f32.mrf.mxu3  ;;  %v4125_v45 = vpop.f32.mrf.mxu0  ;;  %521 = vst [vmem:[%s8637_s0 + $0x340] sm:$0xff] %v393_v54  ;;  %v457_v54 = vld [vmem:[%s7225_s11 + $0x3a0] sm:$0xff] }
 0x68b   : > { %v4294_v17 = vpop.f32.mrf.mxu1  ;;  %522 = vst [vmem:[%s8637_s0 + $0x350] sm:$0xff] %v394_v39  ;;  %v458_v39 = vld [vmem:[%s7225_s11 + $0x3a8] sm:$0xff] }
 0x68c   : > { %v4951_v25 = vadd.f32 %v4950_v56, %v4782_v48  ;;  %v4295_v10 = vadd.f32 %v4294_v17, %v4125_v45  ;;  %v354_v48 = vld [vmem:[%s7225_s11 + $0x68] sm:$0xff]  ;;  %523 = vst [vmem:[%s8637_s0 + $0x360] sm:$0xff] %v395_v61  ;;  %v459_v61 = vld [vmem:[%s7225_s11 + $0x3b0] sm:$0xff] }
 0x68d   : > { %482 = vst [vmem:[%s8637_s0 + $0xd0] sm:$0xff] %v354_v48  ;;  %v403_v48 = vld [vmem:[%s7225_s11 + $0x1f0] sm:$0xff] }
 0x68e   : > { %6520 = vst [vmem:[%s8637_s0 + $0x6e8] sm:$0xff] %v4951_v25  ;;  %v355_v25 = vld [vmem:[%s7225_s11 + $0x70] sm:$0xff] }
 0x68f   : > { %483 = vst [vmem:[%s8637_s0 + $0xe0] sm:$0xff] %v355_v25  ;;  %v407_v25 = vld [vmem:[%s7225_s11 + $0x210] sm:$0xff] }
 0x690   : > { %524 = vst [vmem:[%s8637_s0 + $0x370] sm:$0xff] %v396_v47  ;;  %v460_v47 = vld [vmem:[%s7225_s11 + $0x3b8] sm:$0xff] }
 0x691   : > { %v4783_v18 = vpop.f32.mrf.mxu2  ;;  %526 = vst [vmem:[%s8637_s0 + $0x390] sm:$0xff] %v398_v15  ;;  %v462_v15 = vld [vmem:[%s7225_s11 + $0x3c8] sm:$0xff] }
 0x692   : > { %v4784_v43 = vadd.f32 %v4783_v18, %v4295_v10  ;;  %v4952_v46 = vpop.f32.mrf.mxu3  ;;  %v4128_v13 = vpop.f32.mrf.mxu0  ;;  %v356_v10 = vld [vmem:[%s7225_s11 + $0x78] sm:$0xff]  ;;  %528 = vst [vmem:[%s8637_s0 + $0x3b0] sm:$0xff] %v400_v49 }
 0x693   : > { %v4297_v24 = vpop.f32.mrf.mxu1  ;;  %484 = vst [vmem:[%s8637_s0 + $0xf0] sm:$0xff] %v356_v10  ;;  %v408_v10 = vld [vmem:[%s7225_s11 + $0x218] sm:$0xff] }
 0x694   : > { %v4953_v51 = vadd.f32 %v4952_v46, %v4784_v43  ;;  %v4298_v30 = vadd.f32 %v4297_v24, %v4128_v13  ;;  %v357_v43 = vld [vmem:[%s7225_s11 + $0x80] sm:$0xff]  ;;  %v358_v46 = vld [vmem:[%s7225_s11 + $0x88] sm:$0xff]  ;;  %v359_v13 = vld [vmem:[%s7225_s11 + $0x90] sm:$0xff]  ;;  %531 = vst [vmem:[%s8637_s0 + $0x3e0] sm:$0xff] %v403_v48 }
 0x695   : > { %485 = vst [vmem:[%s8637_s0 + $0x100] sm:$0xff] %v357_v43  ;;  %v410_v43 = vld [vmem:[%s7225_s11 + $0x228] sm:$0xff]  ;;  %v464_v49 = vld [vmem:[%s7225_s11 + $0x3d8] sm:$0xff]  ;;  %v467_v48 = vld [vmem:[%s7225_s11 + $0x3f0] sm:$0xff] }
 0x696   : > { %6521 = vst [vmem:[%s8637_s0 + $0x6f8] sm:$0xff] %v4953_v51  ;;  %v360_v51 = vld [vmem:[%s7225_s11 + $0x98] sm:$0xff] }
 0x697   : > { %486 = vst [vmem:[%s8637_s0 + $0x110] sm:$0xff] %v358_v46  ;;  %v411_v46 = vld [vmem:[%s7225_s11 + $0x230] sm:$0xff] }
 0x698   : > { %487 = vst [vmem:[%s8637_s0 + $0x120] sm:$0xff] %v359_v13  ;;  %v412_v13 = vld [vmem:[%s7225_s11 + $0x238] sm:$0xff] }
 0x699   : > { %v4786_v8 = vpop.f32.mrf.mxu2  ;;  %488 = vst [vmem:[%s8637_s0 + $0x130] sm:$0xff] %v360_v51  ;;  %v414_v51 = vld [vmem:[%s7225_s11 + $0x248] sm:$0xff] }
 0x69a   : > { %v4787_v58 = vadd.f32 %v4786_v8, %v4298_v30  ;;  %v4955_v0 = vpop.f32.mrf.mxu3  ;;  %v4130_v57 = vpop.f32.mrf.mxu0  ;;  %535 = vst [vmem:[%s8637_s0 + $0x420] sm:$0xff] %v407_v25 }
 0x69b   : > { %v4299_v32 = vpop.f32.mrf.mxu1  ;;  %536 = vst [vmem:[%s8637_s0 + $0x430] sm:$0xff] %v408_v10 }
 0x69c   : > { %v4956_v9 = vadd.f32 %v4955_v0, %v4787_v58  ;;  %v4300_v11 = vadd.f32 %v4299_v32, %v4130_v57  ;;  %v361_v58 = vld [vmem:[%s7225_s11 + $0xa0] sm:$0xff]  ;;  %v362_v57 = vld [vmem:[%s7225_s11 + $0xa8] sm:$0xff]  ;;  %538 = vst [vmem:[%s8637_s0 + $0x450] sm:$0xff] %v410_v43 }
 0x69d   : > { %489 = vst [vmem:[%s8637_s0 + $0x140] sm:$0xff] %v361_v58  ;;  %v417_v58 = vld [vmem:[%s7225_s11 + $0x260] sm:$0xff] }
 0x69e   : > { %6522 = vst [vmem:[%s8637_s0 + $0x748] sm:$0xff] %v4956_v9 }
 0x69f   : > { %490 = vst [vmem:[%s8637_s0 + $0x150] sm:$0xff] %v362_v57  ;;  %v419_v57 = vld [vmem:[%s7225_s11 + $0x270] sm:$0xff] }
 0x6a0   : > { %539 = vst [vmem:[%s8637_s0 + $0x460] sm:$0xff] %v411_v46 }
 0x6a1   : > { %v4788_v59 = vpop.f32.mrf.mxu2  ;;  %540 = vst [vmem:[%s8637_s0 + $0x470] sm:$0xff] %v412_v13 }
 0x6a2   : > { %v4789_v5 = vadd.f32 %v4788_v59, %v4300_v11  ;;  %v4957_v36 = vpop.f32.mrf.mxu3  ;;  %v4133_v34 = vpop.f32.mrf.mxu0  ;;  %v363_v11 = vld [vmem:[%s7225_s11 + $0xb0] sm:$0xff]  ;;  %v364_v59 = vld [vmem:[%s7225_s11 + $0xb8] sm:$0xff]  ;;  %542 = vst [vmem:[%s8637_s0 + $0x490] sm:$0xff] %v414_v51 }
 0x6a3   : > { %v4302_v7 = vpop.f32.mrf.mxu1  ;;  %491 = vst [vmem:[%s8637_s0 + $0x160] sm:$0xff] %v363_v11  ;;  %v422_v11 = vld [vmem:[%s7225_s11 + $0x288] sm:$0xff] }
 0x6a4   : > { %v4958_v14 = vadd.f32 %v4957_v36, %v4789_v5  ;;  %v4303_v19 = vadd.f32 %v4302_v7, %v4133_v34  ;;  %v365_v5 = vld [vmem:[%s7225_s11 + $0xc0] sm:$0xff]  ;;  %v366_v34 = vld [vmem:[%s7225_s11 + $0xc8] sm:$0xff]  ;;  %492 = vst [vmem:[%s8637_s0 + $0x170] sm:$0xff] %v364_v59  ;;  %v423_v59 = vld [vmem:[%s7225_s11 + $0x290] sm:$0xff] }
 0x6a5   : > { %493 = vst [vmem:[%s8637_s0 + $0x180] sm:$0xff] %v365_v5  ;;  %v424_v5 = vld [vmem:[%s7225_s11 + $0x298] sm:$0xff] }
 0x6a6   : > { %6523 = vst [vmem:[%s8637_s0 + $0x758] sm:$0xff] %v4958_v14  ;;  %v367_v14 = vld [vmem:[%s7225_s11 + $0xd0] sm:$0xff] }
 0x6a7   : > { %494 = vst [vmem:[%s8637_s0 + $0x190] sm:$0xff] %v366_v34  ;;  %v426_v34 = vld [vmem:[%s7225_s11 + $0x2a8] sm:$0xff] }
 0x6a8   : > { %495 = vst [vmem:[%s8637_s0 + $0x1a0] sm:$0xff] %v367_v14  ;;  %v428_v14 = vld [vmem:[%s7225_s11 + $0x2b8] sm:$0xff] }
 0x6a9   : > { %v4791_v27 = vpop.f32.mrf.mxu2  ;;  %545 = vst [vmem:[%s8637_s0 + $0x4c0] sm:$0xff] %v417_v58 }
 0x6aa   : > { %v4792_v44 = vadd.f32 %v4791_v27, %v4303_v19  ;;  %v4960_v4 = vpop.f32.mrf.mxu3  ;;  %v4135_v60 = vpop.f32.mrf.mxu0  ;;  %v368_v27 = vld [vmem:[%s7225_s11 + $0xd8] sm:$0xff]  ;;  %547 = vst [vmem:[%s8637_s0 + $0x4e0] sm:$0xff] %v419_v57 }
 0x6ab   : > { %v4304_v62 = vpop.f32.mrf.mxu1  ;;  %496 = vst [vmem:[%s8637_s0 + $0x1b0] sm:$0xff] %v368_v27  ;;  %v430_v27 = vld [vmem:[%s7225_s11 + $0x2c8] sm:$0xff] }
 0x6ac   : > { %v4961_v20 = vadd.f32 %v4960_v4, %v4792_v44  ;;  %v4305_v16 = vadd.f32 %v4304_v62, %v4135_v60  ;;  %v369_v60 = vld [vmem:[%s7225_s11 + $0xe0] sm:$0xff]  ;;  %v370_v62 = vld [vmem:[%s7225_s11 + $0xe8] sm:$0xff]  ;;  %550 = vst [vmem:[%s8637_s0 + $0x510] sm:$0xff] %v422_v11 }
 0x6ad   : > { %497 = vst [vmem:[%s8637_s0 + $0x1c0] sm:$0xff] %v369_v60  ;;  %v433_v60 = vld [vmem:[%s7225_s11 + $0x2e0] sm:$0xff] }
 0x6ae   : > { %6524 = vst [vmem:[%s8637_s0 + $0x768] sm:$0xff] %v4961_v20  ;;  %v371_v20 = vld [vmem:[%s7225_s11 + $0xf0] sm:$0xff] }
 0x6af   : > { %498 = vst [vmem:[%s8637_s0 + $0x1d0] sm:$0xff] %v370_v62  ;;  %v434_v62 = vld [vmem:[%s7225_s11 + $0x2e8] sm:$0xff] }
 0x6b0   : > { %499 = vst [vmem:[%s8637_s0 + $0x1e0] sm:$0xff] %v371_v20  ;;  %v435_v20 = vld [vmem:[%s7225_s11 + $0x2f0] sm:$0xff] }
 0x6b1   : > { %v4793_v2 = vpop.f32.mrf.mxu2  ;;  %551 = vst [vmem:[%s8637_s0 + $0x520] sm:$0xff] %v423_v59 }
 0x6b2   : > { %v4794_v40 = vadd.f32 %v4793_v2, %v4305_v16  ;;  %v4962_v52 = vpop.f32.mrf.mxu3  ;;  %v4138_v6 = vpop.f32.mrf.mxu0  ;;  %v372_v16 = vld [vmem:[%s7225_s11 + $0xf8] sm:$0xff]  ;;  %v373_v2 = vld [vmem:[%s7225_s11 + $0x100] sm:$0xff]  ;;  %552 = vst [vmem:[%s8637_s0 + $0x530] sm:$0xff] %v424_v5 }
 0x6b3   : > { %v4307_v12 = vpop.f32.mrf.mxu1  ;;  %500 = vst [vmem:[%s8637_s0 + $0x1f0] sm:$0xff] %v372_v16  ;;  %v436_v16 = vld [vmem:[%s7225_s11 + $0x2f8] sm:$0xff] }
 0x6b4   : > { %v4963_v50 = vadd.f32 %v4962_v52, %v4794_v40  ;;  %v4308_v33 = vadd.f32 %v4307_v12, %v4138_v6  ;;  %v374_v40 = vld [vmem:[%s7225_s11 + $0x108] sm:$0xff]  ;;  %v375_v52 = vld [vmem:[%s7225_s11 + $0x110] sm:$0xff]  ;;  %v376_v6 = vld [vmem:[%s7225_s11 + $0x118] sm:$0xff]  ;;  %501 = vst [vmem:[%s8637_s0 + $0x200] sm:$0xff] %v373_v2 }
 0x6b5   : > { %v377_v12 = vld [vmem:[%s7225_s11 + $0x120] sm:$0xff]  ;;  %502 = vst [vmem:[%s8637_s0 + $0x210] sm:$0xff] %v374_v40  ;;  %v438_v40 = vld [vmem:[%s7225_s11 + $0x308] sm:$0xff] }
 0x6b6   : > { %6525 = vst [vmem:[%s8637_s0 + $0x778] sm:$0xff] %v4963_v50  ;;  %v378_v50 = vld [vmem:[%s7225_s11 + $0x128] sm:$0xff]  ;;  %v437_v2 = vld [vmem:[%s7225_s11 + $0x300] sm:$0xff] }
 0x6b7   : > { %503 = vst [vmem:[%s8637_s0 + $0x220] sm:$0xff] %v375_v52  ;;  %v439_v52 = vld [vmem:[%s7225_s11 + $0x310] sm:$0xff] }
 0x6b8   : > { %504 = vst [vmem:[%s8637_s0 + $0x230] sm:$0xff] %v376_v6  ;;  %v440_v6 = vld [vmem:[%s7225_s11 + $0x318] sm:$0xff] }
 0x6b9   : > { %v4796_v22 = vpop.f32.mrf.mxu2  ;;  %505 = vst [vmem:[%s8637_s0 + $0x240] sm:$0xff] %v377_v12  ;;  %v441_v12 = vld [vmem:[%s7225_s11 + $0x320] sm:$0xff] }
 0x6ba   : > { %v4797_v3 = vadd.f32 %v4796_v22, %v4308_v33  ;;  %v4965_v35 = vpop.f32.mrf.mxu3  ;;  %v4140_v28 = vpop.f32.mrf.mxu0  ;;  %v379_v33 = vld [vmem:[%s7225_s11 + $0x130] sm:$0xff]  ;;  %506 = vst [vmem:[%s8637_s0 + $0x250] sm:$0xff] %v378_v50  ;;  %v385_v22 = vld [vmem:[%s7225_s11 + $0x160] sm:$0xff]  ;;  %v442_v50 = vld [vmem:[%s7225_s11 + $0x328] sm:$0xff] }
 0x6bb   : > { %v4309_v41 = vpop.f32.mrf.mxu1  ;;  %507 = vst [vmem:[%s8637_s0 + $0x260] sm:$0xff] %v379_v33  ;;  %v443_v33 = vld [vmem:[%s7225_s11 + $0x330] sm:$0xff] }
 0x6bc   : > { %v4966_v37 = vadd.f32 %v4965_v35, %v4797_v3  ;;  %v4310_v21 = vadd.f32 %v4309_v41, %v4140_v28  ;;  %v387_v3 = vld [vmem:[%s7225_s11 + $0x170] sm:$0xff]  ;;  %v388_v35 = vld [vmem:[%s7225_s11 + $0x178] sm:$0xff]  ;;  %513 = vst [vmem:[%s8637_s0 + $0x2c0] sm:$0xff] %v385_v22  ;;  %v389_v28 = vld [vmem:[%s7225_s11 + $0x180] sm:$0xff] }
 0x6bd   : > { %515 = vst [vmem:[%s8637_s0 + $0x2e0] sm:$0xff] %v387_v3  ;;  %v391_v41 = vld [vmem:[%s7225_s11 + $0x190] sm:$0xff]  ;;  %v449_v22 = vld [vmem:[%s7225_s11 + $0x360] sm:$0xff] }
 0x6be   : > { %6526 = vst [vmem:[%s8637_s0 + $0x7c8] sm:$0xff] %v4966_v37  ;;  %v392_v37 = vld [vmem:[%s7225_s11 + $0x198] sm:$0xff]  ;;  %v451_v3 = vld [vmem:[%s7225_s11 + $0x370] sm:$0xff] }
 0x6bf   : > { %516 = vst [vmem:[%s8637_s0 + $0x2f0] sm:$0xff] %v388_v35  ;;  %v452_v35 = vld [vmem:[%s7225_s11 + $0x378] sm:$0xff] }
 0x6c0   : > { %517 = vst [vmem:[%s8637_s0 + $0x300] sm:$0xff] %v389_v28  ;;  %v453_v28 = vld [vmem:[%s7225_s11 + $0x380] sm:$0xff] }
 0x6c1   : > { %v4798_v55 = vpop.f32.mrf.mxu2  ;;  %519 = vst [vmem:[%s8637_s0 + $0x320] sm:$0xff] %v391_v41  ;;  %v455_v41 = vld [vmem:[%s7225_s11 + $0x390] sm:$0xff] }
 0x6c2   : > { %v4799_v63 = vadd.f32 %v4798_v55, %v4310_v21  ;;  %v4967_v29 = vpop.f32.mrf.mxu3  ;;  %v4143_v56 = vpop.f32.mrf.mxu0  ;;  %520 = vst [vmem:[%s8637_s0 + $0x330] sm:$0xff] %v392_v37  ;;  %v397_v21 = vld [vmem:[%s7225_s11 + $0x1c0] sm:$0xff]  ;;  %v399_v55 = vld [vmem:[%s7225_s11 + $0x1d0] sm:$0xff]  ;;  %v456_v37 = vld [vmem:[%s7225_s11 + $0x398] sm:$0xff] }
 0x6c3   : > { %v4312_v45 = vpop.f32.mrf.mxu1  ;;  %525 = vst [vmem:[%s8637_s0 + $0x380] sm:$0xff] %v397_v21  ;;  %v461_v21 = vld [vmem:[%s7225_s11 + $0x3c0] sm:$0xff] }
 0x6c4   : > { %v4968_v17 = vadd.f32 %v4967_v29, %v4799_v63  ;;  %v4313_v18 = vadd.f32 %v4312_v45, %v4143_v56  ;;  %v401_v63 = vld [vmem:[%s7225_s11 + $0x1e0] sm:$0xff]  ;;  %v402_v29 = vld [vmem:[%s7225_s11 + $0x1e8] sm:$0xff]  ;;  %527 = vst [vmem:[%s8637_s0 + $0x3a0] sm:$0xff] %v399_v55  ;;  %v404_v56 = vld [vmem:[%s7225_s11 + $0x1f8] sm:$0xff] }
 0x6c5   : > { %529 = vst [vmem:[%s8637_s0 + $0x3c0] sm:$0xff] %v401_v63  ;;  %v405_v45 = vld [vmem:[%s7225_s11 + $0x200] sm:$0xff]  ;;  %v463_v55 = vld [vmem:[%s7225_s11 + $0x3d0] sm:$0xff] }
 0x6c6   : > { %6527 = vst [vmem:[%s8637_s0 + $0x7d8] sm:$0xff] %v4968_v17  ;;  %v406_v17 = vld [vmem:[%s7225_s11 + $0x208] sm:$0xff]  ;;  %v465_v63 = vld [vmem:[%s7225_s11 + $0x3e0] sm:$0xff] }
 0x6c7   : > { %530 = vst [vmem:[%s8637_s0 + $0x3d0] sm:$0xff] %v402_v29  ;;  %v466_v29 = vld [vmem:[%s7225_s11 + $0x3e8] sm:$0xff] }
 0x6c8   : > { %532 = vst [vmem:[%s8637_s0 + $0x3f0] sm:$0xff] %v404_v56  ;;  %v468_v56 = vld [vmem:[%s7225_s11 + $0x3f8] sm:$0xff] }
 0x6c9   : > { %v4801_v24 = vpop.f32.mrf.mxu2  ;;  %533 = vst [vmem:[%s8637_s0 + $0x400] sm:$0xff] %v405_v45 }
 0x6ca   : > { %v4802_v30 = vadd.f32 %v4801_v24, %v4313_v18  ;;  %v4970_v8 = vpop.f32.mrf.mxu3  ;;  %v4145_v32 = vpop.f32.mrf.mxu0  ;;  %v409_v18 = vld [vmem:[%s7225_s11 + $0x220] sm:$0xff]  ;;  %534 = vst [vmem:[%s8637_s0 + $0x410] sm:$0xff] %v406_v17 }
 0x6cb   : > { %v4314_v9 = vpop.f32.mrf.mxu1  ;;  %537 = vst [vmem:[%s8637_s0 + $0x440] sm:$0xff] %v409_v18  ;;  %v413_v24 = vld [vmem:[%s7225_s11 + $0x240] sm:$0xff] }
 0x6cc   : > { %v4971_v0 = vadd.f32 %v4970_v8, %v4802_v30  ;;  %v4315_v36 = vadd.f32 %v4314_v9, %v4145_v32  ;;  %v415_v30 = vld [vmem:[%s7225_s11 + $0x250] sm:$0xff]  ;;  %v416_v8 = vld [vmem:[%s7225_s11 + $0x258] sm:$0xff]  ;;  %541 = vst [vmem:[%s8637_s0 + $0x480] sm:$0xff] %v413_v24  ;;  %v421_v9 = vld [vmem:[%s7225_s11 + $0x280] sm:$0xff] }
 0x6cd   : > { %543 = vst [vmem:[%s8637_s0 + $0x4a0] sm:$0xff] %v415_v30  ;;  %v420_v32 = vld [vmem:[%s7225_s11 + $0x278] sm:$0xff] }
 0x6ce   : > { %6528 = vst [vmem:[%s8637_s0 + $0x7e8] sm:$0xff] %v4971_v0  ;;  %v418_v0 = vld [vmem:[%s7225_s11 + $0x268] sm:$0xff] }
 0x6cf   : > { %544 = vst [vmem:[%s8637_s0 + $0x4b0] sm:$0xff] %v416_v8 }
 0x6d0   : > { %546 = vst [vmem:[%s8637_s0 + $0x4d0] sm:$0xff] %v418_v0 }
 0x6d1   : > { %v4803_v7 = vpop.f32.mrf.mxu2  ;;  %548 = vst [vmem:[%s8637_s0 + $0x4f0] sm:$0xff] %v420_v32 }
 0x6d2   : > { %v4804_v19 = vadd.f32 %v4803_v7, %v4315_v36  ;;  %v4972_v44 = vpop.f32.mrf.mxu3  ;;  %549 = vst [vmem:[%s8637_s0 + $0x500] sm:$0xff] %v421_v9  ;;  %v425_v36 = vld [vmem:[%s7225_s11 + $0x2a0] sm:$0xff]  ;;  %v427_v7 = vld [vmem:[%s7225_s11 + $0x2b0] sm:$0xff] }
 0x6d3   : > { %553 = vst [vmem:[%s8637_s0 + $0x540] sm:$0xff] %v425_v36 }
 0x6d4   : > { %v4973_v4 = vadd.f32 %v4972_v44, %v4804_v19  ;;  %v429_v19 = vld [vmem:[%s7225_s11 + $0x2c0] sm:$0xff]  ;;  %554 = vst [vmem:[%s8637_s0 + $0x550] sm:$0xff] %v426_v34  ;;  %v431_v44 = vld [vmem:[%s7225_s11 + $0x2d0] sm:$0xff] }
 0x6d5   : > { %555 = vst [vmem:[%s8637_s0 + $0x560] sm:$0xff] %v427_v7 }
 0x6d6   : > { %6529 = vst [vmem:[%s8637_s0 + $0x7f8] sm:$0xff] %v4973_v4  ;;  %v432_v4 = vld [vmem:[%s7225_s11 + $0x2d8] sm:$0xff] }
 0x6d7   : > { %556 = vst [vmem:[%s8637_s0 + $0x570] sm:$0xff] %v428_v14 }
 0x6d8   : > { %557 = vst [vmem:[%s8637_s0 + $0x580] sm:$0xff] %v429_v19 }
 0x6d9   : > { %558 = vst [vmem:[%s8637_s0 + $0x590] sm:$0xff] %v430_v27 }
 0x6da   : > { %559 = vst [vmem:[%s8637_s0 + $0x5a0] sm:$0xff] %v431_v44 }
 0x6db   : > { %560 = vst [vmem:[%s8637_s0 + $0x5b0] sm:$0xff] %v432_v4 }
 0x6dc   : > { %561 = vst [vmem:[%s8637_s0 + $0x5c0] sm:$0xff] %v433_v60 }
 0x6dd   : > { %562 = vst [vmem:[%s8637_s0 + $0x5d0] sm:$0xff] %v434_v62 }
 0x6de   : > { %563 = vst [vmem:[%s8637_s0 + $0x5e0] sm:$0xff] %v435_v20 }
 0x6df   : > { %564 = vst [vmem:[%s8637_s0 + $0x5f0] sm:$0xff] %v436_v16 }
 0x6e0   : > { %565 = vst [vmem:[%s8637_s0 + $0x600] sm:$0xff] %v437_v2 }
 0x6e1   : > { %566 = vst [vmem:[%s8637_s0 + $0x610] sm:$0xff] %v438_v40 }
 0x6e2   : > { %567 = vst [vmem:[%s8637_s0 + $0x620] sm:$0xff] %v439_v52 }
 0x6e3   : > { %568 = vst [vmem:[%s8637_s0 + $0x630] sm:$0xff] %v440_v6 }
 0x6e4   : > { %569 = vst [vmem:[%s8637_s0 + $0x640] sm:$0xff] %v441_v12 }
 0x6e5   : > { %570 = vst [vmem:[%s8637_s0 + $0x650] sm:$0xff] %v442_v50 }
 0x6e6   : > { %571 = vst [vmem:[%s8637_s0 + $0x660] sm:$0xff] %v443_v33 }
 0x6e7   : > { %572 = vst [vmem:[%s8637_s0 + $0x670] sm:$0xff] %v444_v31 }
 0x6e8   : > { %573 = vst [vmem:[%s8637_s0 + $0x680] sm:$0xff] %v445_v42 }
 0x6e9   : > { %574 = vst [vmem:[%s8637_s0 + $0x690] sm:$0xff] %v446_v38 }
 0x6ea   : > { %575 = vst [vmem:[%s8637_s0 + $0x6a0] sm:$0xff] %v447_v53 }
 0x6eb   : > { %576 = vst [vmem:[%s8637_s0 + $0x6b0] sm:$0xff] %v448_v26 }
 0x6ec   : > { %577 = vst [vmem:[%s8637_s0 + $0x6c0] sm:$0xff] %v449_v22 }
 0x6ed   : > { %578 = vst [vmem:[%s8637_s0 + $0x6d0] sm:$0xff] %v450_v1 }
 0x6ee   : > { %579 = vst [vmem:[%s8637_s0 + $0x6e0] sm:$0xff] %v451_v3 }
 0x6ef   : > { %580 = vst [vmem:[%s8637_s0 + $0x6f0] sm:$0xff] %v452_v35 }
 0x6f0   : > { %581 = vst [vmem:[%s8637_s0 + $0x700] sm:$0xff] %v453_v28 }
 0x6f1   : > { %582 = vst [vmem:[%s8637_s0 + $0x710] sm:$0xff] %v454_v23 }
 0x6f2   : > { %583 = vst [vmem:[%s8637_s0 + $0x720] sm:$0xff] %v455_v41 }
 0x6f3   : > { %584 = vst [vmem:[%s8637_s0 + $0x730] sm:$0xff] %v456_v37 }
 0x6f4   : > { %585 = vst [vmem:[%s8637_s0 + $0x740] sm:$0xff] %v457_v54 }
 0x6f5   : > { %586 = vst [vmem:[%s8637_s0 + $0x750] sm:$0xff] %v458_v39 }
 0x6f6   : > { %587 = vst [vmem:[%s8637_s0 + $0x760] sm:$0xff] %v459_v61 }
 0x6f7   : > { %588 = vst [vmem:[%s8637_s0 + $0x770] sm:$0xff] %v460_v47 }
 0x6f8   : > { %589 = vst [vmem:[%s8637_s0 + $0x780] sm:$0xff] %v461_v21 }
 0x6f9   : > { %590 = vst [vmem:[%s8637_s0 + $0x790] sm:$0xff] %v462_v15 }
 0x6fa   : > { %591 = vst [vmem:[%s8637_s0 + $0x7a0] sm:$0xff] %v463_v55 }
 0x6fb   : > { %592 = vst [vmem:[%s8637_s0 + $0x7b0] sm:$0xff] %v464_v49 }
 0x6fc   : > { %593 = vst [vmem:[%s8637_s0 + $0x7c0] sm:$0xff] %v465_v63 }
 0x6fd   : > { %594 = vst [vmem:[%s8637_s0 + $0x7d0] sm:$0xff] %v466_v29 }
 0x6fe   : > { %595 = vst [vmem:[%s8637_s0 + $0x7e0] sm:$0xff] %v467_v48 }
 0x6ff   : > { %596 = vst [vmem:[%s8637_s0 + $0x7f0] sm:$0xff] %v468_v56 }
 0x700   : > { %7019 = shalt.err (!%p7016_p13)
}
 0x701   : > { %s7084_s29 = smov 256   ;;  %s7085_s0 = smov 16  }
 0x702   : > { %6862 = dma.vmem_to_hbm [thread:$0]  (%p7172_p9), %s5057_s24, 32768, %s5059_s13, %s5041_s30, %s7084_s29, %s7084_s29, %s7085_s0  }
 0x703 PF: > { %s5073_s9 = sand.u32 1, %s7058_s21   ;;  %p6872_p0 = pnand %p5175_p12, %p7179_p11 }
 0x704   : > { %s5074_s18 = scalar_lea.sflag [#allocation4], %s5073_s9 }
 0x705   : > { %p6873_p1 = pneg %p6872_p0 }
 0x707   : > { %7053 = dma.done.wait (%p6873_p1), %s5074_s18, 32768  }
 0x708   : > { %7055 = vsyncadd (%p6873_p1), %s5074_s18, 4294934528  ;;  %s25_s26 = sadd.s32 1, %s7078_s26   ;;  %s10560_s19 = sld [smem:[#allocation11_spill]] }
 0x709   : > { %p22_p2 = scmp.ge.s32.totalorder %s25_s26, 4   ;;  %s10561_s23 = sld [smem:[#allocation13_spill]] }
 0x70a   : > { %s10562_s10 = sld [smem:[#allocation12_spill]]  ;;  %s10563_s21 = smov %s7062_s22 }
 0x70b   : > { %s10565_s24 = smov %s7074_s25 }
 0x70c   :  { %24 = sbr.rel (!%p22_p2) target bundleno = 10 (0xa), region = 103 }
 0x70e   : > { %s10564_s22 = smov %s10560_s19 }
 0x710   : > { %s10566_s25 = smov %s10562_s10 }
 0x711   :  { %5080 = vsyncpa [#allocation3], 1 }
 0x712   :  { %5082 = vsyncpa [#allocation3 + $0x1], 1 }
 0x713   :  { %5083 = vsyncpa [#allocation6], 1 }
 0x714   :  { %5085 = vsyncpa [#allocation6 + $0x1], 1 }
 0x715   :  { %5086 = vsyncpa [#allocation4], 1 }
 0x716   :  { %5088 = vsyncpa [#allocation4 + $0x1], 1 }

</bundles_post_ra>
